<compile_context>
chip_gen: v7x
topology: tpu7x:2x2x1
jax: 0.10.0
libtpu: 0.0.40
codegen_flags: <defaults>
</compile_context>

<pallas_src>
import math

import jax
import jax.numpy as jnp
from jax import lax
from jax.experimental import pallas as pl
from jax.experimental.pallas import tpu as pltpu

# ----------------------------- config ---------------------------------------
BATCH = 2
SEQ = 8
HIDDEN = 32
NUM_HEADS = 4
HEAD_DIM = HIDDEN // NUM_HEADS
INTERMEDIATE = 4 * HIDDEN
NUM_LAYERS = 2
VOCAB = 100
MAX_POS = 16
TYPE_VOCAB = 2
LN_EPS = 1e-12
HEAD_PAD = 128  # lane-dense padded width for the two classification heads


# --------------------------- kernel helpers ----------------------------------
def _layer_norm(x, gamma, beta):
    mu = jnp.mean(x, axis=-1, keepdims=True)
    xc = x - mu
    var = jnp.mean(xc * xc, axis=-1, keepdims=True)
    return xc * lax.rsqrt(var + LN_EPS) * gamma + beta


# --------------------------- fused Pallas kernel ------------------------------
def fused_forward_kernel(
    x_ref, maskbias_ref, emb_g_ref, emb_b_ref,
    wqkv_ref, bqkv_ref, wo_ref, bo_ref, ln1_g_ref, ln1_b_ref,
    w1_ref, b1_ref, w2_ref, b2_ref, ln2_g_ref, ln2_b_ref,
    wh_ref, bh_ref,
    out_ref,
):
    H, HD, S, B = HIDDEN, HEAD_DIM, SEQ, BATCH
    scale = 1.0 / math.sqrt(HD)

    # Embedding LayerNorm (f32).
    x = _layer_norm(x_ref[...], emb_g_ref[...], emb_b_ref[...])          # (B*S, H)

    for l in range(NUM_LAYERS):                                          # static unroll
        # ---- fused QKV projection: one MXU push with N = 3H -----------------
        qkv = jnp.dot(x.astype(jnp.bfloat16), wqkv_ref[l],
                      preferred_element_type=jnp.float32) + bqkv_ref[l]  # (B*S, 3H)
        q = qkv[:, 0 * H:1 * H]
        k = qkv[:, 1 * H:2 * H]
        v = qkv[:, 2 * H:3 * H]

        wo = wo_ref[l]                                                   # (H, H) bf16
        attn_rows = []
        for b in range(B):                                               # B = 2, static
            rows = slice(b * S, (b + 1) * S)
            neg = maskbias_ref[b]                                        # (S, S) additive bias
            acc = jnp.zeros((S, H), jnp.float32)
            for h in range(NUM_HEADS):                                   # 4 heads, static
                cols = slice(h * HD, (h + 1) * HD)
                qh = q[rows, cols].astype(jnp.bfloat16)
                kh = k[rows, cols].astype(jnp.bfloat16)
                vh = v[rows, cols].astype(jnp.bfloat16)
                # q · kᵀ without an explicit transpose (contract last dims).
                scores = lax.dot_general(
                    qh, kh, (((1,), (1,)), ((), ())),
                    preferred_element_type=jnp.float32) * scale + neg
                m = jnp.max(scores, axis=-1, keepdims=True)
                p = jnp.exp(scores - m)
                p = p * pl.reciprocal(jnp.sum(p, axis=-1, keepdims=True), approx=True)
                ctx_h = jnp.dot(p.astype(jnp.bfloat16), vh,
                                preferred_element_type=jnp.float32)      # (S, HD)
                # Fold the output projection in per head (no lane concat).
                acc = acc + jnp.dot(ctx_h.astype(jnp.bfloat16), wo[cols, :],
                                    preferred_element_type=jnp.float32)  # (S, H)
            attn_rows.append(acc)
        attn_out = jnp.concatenate(attn_rows, axis=0) + bo_ref[l]        # (B*S, H)

        x = _layer_norm(x + attn_out, ln1_g_ref[l], ln1_b_ref[l])

        # ---- feed-forward ----------------------------------------------------
        hff = jnp.dot(x.astype(jnp.bfloat16), w1_ref[l],
                      preferred_element_type=jnp.float32) + b1_ref[l]    # (B*S, I)
        # TODO(synk): HF BERT uses exact erf GELU; tanh approximation used here.
        hff = jax.nn.gelu(hff, approximate=True)
        ff = jnp.dot(hff.astype(jnp.bfloat16), w2_ref[l],
                     preferred_element_type=jnp.float32) + b2_ref[l]     # (B*S, H)
        x = _layer_norm(x + ff, ln2_g_ref[l], ln2_b_ref[l])

    # ---- CLS rows (token 0 of each sequence) -> packed lane-dense heads ------
    cls = jnp.concatenate([x[b * S:b * S + 1, :] for b in range(B)], axis=0)  # (B, H)
    out_ref[...] = jnp.dot(cls.astype(jnp.bfloat16), wh_ref[...],
                           preferred_element_type=jnp.float32) + bh_ref[...]  # (B, 128)


# --------------------------- parameter init / packing -------------------------
def init_params(key):
    scale = 0.02
    keys = iter(jax.random.split(key, 8 + NUM_LAYERS * 8))

    def w(shape):
        return (scale * jax.random.normal(next(keys), shape)).astype(jnp.float32)

    zeros = lambda shape: jnp.zeros(shape, jnp.float32)
    ones = lambda shape: jnp.ones(shape, jnp.float32)

    params = {
        "word_emb": w((VOCAB, HIDDEN)),
        "pos_emb": w((MAX_POS, HIDDEN)),
        "type_emb": w((TYPE_VOCAB, HIDDEN)),
        "emb_ln_g": ones((1, HIDDEN)),
        "emb_ln_b": zeros((1, HIDDEN)),
        # relatedness_head: Linear(H, 1); entailment_head: Linear(H, 3)
        "wr": w((HIDDEN, 1)), "br": zeros((1, 1)),
        "we": w((HIDDEN, 3)), "be": zeros((1, 3)),
        "layers": [],
    }
    for _ in range(NUM_LAYERS):
        params["layers"].append({
            "wq": w((HIDDEN, HIDDEN)), "bq": zeros((1, HIDDEN)),
            "wk": w((HIDDEN, HIDDEN)), "bk": zeros((1, HIDDEN)),
            "wv": w((HIDDEN, HIDDEN)), "bv": zeros((1, HIDDEN)),
            "wo": w((HIDDEN, HIDDEN)), "bo": zeros((1, HIDDEN)),
            "ln1_g": ones((1, HIDDEN)), "ln1_b": zeros((1, HIDDEN)),
            "w1": w((HIDDEN, INTERMEDIATE)), "b1": zeros((1, INTERMEDIATE)),
            "w2": w((INTERMEDIATE, HIDDEN)), "b2": zeros((1, HIDDEN)),
            "ln2_g": ones((1, HIDDEN)), "ln2_b": zeros((1, HIDDEN)),
        })
    return params


def pack_params(p):
    """Stack per-layer weights, pack QKV and the two heads, cast matmul weights to bf16."""
    stk = lambda name: jnp.stack([lp[name] for lp in p["layers"]])
    wqkv = jnp.stack([jnp.concatenate([lp["wq"], lp["wk"], lp["wv"]], axis=1)
                      for lp in p["layers"]]).astype(jnp.bfloat16)           # (L, H, 3H)
    bqkv = jnp.stack([jnp.concatenate([lp["bq"], lp["bk"], lp["bv"]], axis=1)
                      for lp in p["layers"]])                                # (L, 1, 3H)
    # Lane-dense packed classification heads: col 0 = relatedness, cols 1..3 = entailment.
    wh = jnp.zeros((HIDDEN, HEAD_PAD), jnp.float32)
    wh = wh.at[:, 0:1].set(p["wr"]).at[:, 1:4].set(p["we"]).astype(jnp.bfloat16)
    bh = jnp.zeros((1, HEAD_PAD), jnp.float32)
    bh = bh.at[:, 0:1].set(p["br"]).at[:, 1:4].set(p["be"])
    return {
        "word_emb": p["word_emb"], "pos_emb": p["pos_emb"], "type_emb": p["type_emb"],
        "emb_ln_g": p["emb_ln_g"], "emb_ln_b": p["emb_ln_b"],
        "wqkv": wqkv, "bqkv": bqkv,
        "wo": stk("wo").astype(jnp.bfloat16), "bo": stk("bo"),
        "ln1_g": stk("ln1_g"), "ln1_b": stk("ln1_b"),
        "w1": stk("w1").astype(jnp.bfloat16), "b1": stk("b1"),
        "w2": stk("w2").astype(jnp.bfloat16), "b2": stk("b2"),
        "ln2_g": stk("ln2_g"), "ln2_b": stk("ln2_b"),
        "wh": wh, "bh": bh,
    }


# --------------------------- full forward ------------------------------------
@jax.jit
def multilabel_forward(packed, input_ids, attention_mask, token_type_ids):
    B, S = input_ids.shape
    # Embedding gathers (plain-JAX glue).
    positions = jnp.arange(S, dtype=jnp.int32)
    x = (packed["word_emb"][input_ids]
         + packed["pos_emb"][positions][None, :, :]
         + packed["type_emb"][token_type_ids])
    x = x.reshape(B * S, HIDDEN).astype(jnp.float32)

    # Additive attention-mask bias, pre-broadcast once to (B, S, S).
    mask_bias = jnp.broadcast_to(
        (1.0 - attention_mask.astype(jnp.float32))[:, None, :] * (-1e9), (B, S, S))

    head_out = pl.pallas_call(
        fused_forward_kernel,
        out_shape=jax.ShapeDtypeStruct((B, HEAD_PAD), jnp.float32),
        compiler_params=pltpu.CompilerParams(vmem_limit_bytes=32 * 1024 * 1024),
    )(
        x, mask_bias, packed["emb_ln_g"], packed["emb_ln_b"],
        packed["wqkv"], packed["bqkv"], packed["wo"], packed["bo"],
        packed["ln1_g"], packed["ln1_b"], packed["w1"], packed["b1"],
        packed["w2"], packed["b2"], packed["ln2_g"], packed["ln2_b"],
        packed["wh"], packed["bh"],
    )
    relatedness_score = head_out[:, 0:1]   # Linear(H, 1)
    entailment_logits = head_out[:, 1:4]   # Linear(H, 3)
    return relatedness_score, entailment_logits


# ------------------------------- main ----------------------------------------
if __name__ == "__main__":
    key = jax.random.PRNGKey(0)
    k_param, k_ids = jax.random.split(key)

    packed = pack_params(init_params(k_param))

    input_ids = jax.random.randint(k_ids, (BATCH, SEQ), 0, VOCAB, dtype=jnp.int32)
    attention_mask = jnp.ones((BATCH, SEQ), jnp.int32).at[1, SEQ - 2:].set(0)
    token_type_ids = jnp.concatenate(
        [jnp.zeros((BATCH, SEQ // 2), jnp.int32),
         jnp.ones((BATCH, SEQ // 2), jnp.int32)], axis=1)

    rel_score, ent_logits = multilabel_forward(
        packed, input_ids, attention_mask, token_type_ids)
    jax.block_until_ready((rel_score, ent_logits))

    assert rel_score.shape == (BATCH, 1)
    assert ent_logits.shape == (BATCH, 3)
    assert bool(jnp.all(jnp.isfinite(rel_score))) and bool(jnp.all(jnp.isfinite(ent_logits)))
    print("KERNEL_OK")
</pallas_src>

<mosaic_0001>
module attributes {stable_mosaic.version = 11 : i64} {
  func.func @fused_forward_kernel(%arg0: memref<16x32xf32, #tpu.memory_space<vmem>>, %arg1: memref<2x8x8xf32, #tpu.memory_space<vmem>>, %arg2: memref<1x32xf32, #tpu.memory_space<vmem>>, %arg3: memref<1x32xf32, #tpu.memory_space<vmem>>, %arg4: memref<2x32x96xbf16, #tpu.memory_space<vmem>>, %arg5: memref<2x1x96xf32, #tpu.memory_space<vmem>>, %arg6: memref<2x32x32xbf16, #tpu.memory_space<vmem>>, %arg7: memref<2x1x32xf32, #tpu.memory_space<vmem>>, %arg8: memref<2x1x32xf32, #tpu.memory_space<vmem>>, %arg9: memref<2x1x32xf32, #tpu.memory_space<vmem>>, %arg10: memref<2x32x128xbf16, #tpu.memory_space<vmem>>, %arg11: memref<2x1x128xf32, #tpu.memory_space<vmem>>, %arg12: memref<2x128x32xbf16, #tpu.memory_space<vmem>>, %arg13: memref<2x1x32xf32, #tpu.memory_space<vmem>>, %arg14: memref<2x1x32xf32, #tpu.memory_space<vmem>>, %arg15: memref<2x1x32xf32, #tpu.memory_space<vmem>>, %arg16: memref<32x128xbf16, #tpu.memory_space<vmem>>, %arg17: memref<1x128xf32, #tpu.memory_space<vmem>>, %arg18: memref<2x128xf32, #tpu.memory_space<vmem>>) attributes {dimension_semantics = [], scalar_prefetch = 0 : i64, scratch_operands = 0 : i64, tpu.core_type = #tpu.core_type<tc>} {
    %c0 = arith.constant 0 : index
    %c0_0 = arith.constant 0 : index
    %0 = vector.load %arg0[%c0, %c0_0] : memref<16x32xf32, #tpu.memory_space<vmem>>, vector<16x32xf32>
    %c0_1 = arith.constant 0 : index
    %c0_2 = arith.constant 0 : index
    %1 = vector.load %arg2[%c0_1, %c0_2] : memref<1x32xf32, #tpu.memory_space<vmem>>, vector<1x32xf32>
    %c0_3 = arith.constant 0 : index
    %c0_4 = arith.constant 0 : index
    %2 = vector.load %arg3[%c0_3, %c0_4] : memref<1x32xf32, #tpu.memory_space<vmem>>, vector<1x32xf32>
    %cst = arith.constant dense<0.000000e+00> : vector<16xf32>
    %3 = vector.multi_reduction <add>, %0, %cst [1] : vector<16x32xf32> to vector<16xf32>
    %4 = vector.shape_cast %3 : vector<16xf32> to vector<16x1xf32>
    %cst_5 = arith.constant 3.200000e+01 : f32
    %5 = vector.broadcast %cst_5 : f32 to vector<16x1xf32>
    %6 = arith.divf %4, %5 : vector<16x1xf32>
    %7 = vector.broadcast %6 : vector<16x1xf32> to vector<16x32xf32>
    %8 = arith.subf %0, %7 : vector<16x32xf32>
    %9 = arith.mulf %8, %8 : vector<16x32xf32>
    %cst_6 = arith.constant dense<0.000000e+00> : vector<16xf32>
    %10 = vector.multi_reduction <add>, %9, %cst_6 [1] : vector<16x32xf32> to vector<16xf32>
    %11 = vector.shape_cast %10 : vector<16xf32> to vector<16x1xf32>
    %cst_7 = arith.constant 3.200000e+01 : f32
    %12 = vector.broadcast %cst_7 : f32 to vector<16x1xf32>
    %13 = arith.divf %11, %12 : vector<16x1xf32>
    %cst_8 = arith.constant 9.99999996E-13 : f32
    %14 = vector.broadcast %cst_8 : f32 to vector<16x1xf32>
    %15 = arith.addf %13, %14 : vector<16x1xf32>
    %16 = math.rsqrt %15 : vector<16x1xf32>
    %17 = vector.broadcast %16 : vector<16x1xf32> to vector<16x32xf32>
    %18 = arith.mulf %8, %17 : vector<16x32xf32>
    %19 = vector.broadcast %1 : vector<1x32xf32> to vector<16x32xf32>
    %20 = arith.mulf %18, %19 : vector<16x32xf32>
    %21 = vector.broadcast %2 : vector<1x32xf32> to vector<16x32xf32>
    %22 = arith.addf %20, %21 : vector<16x32xf32>
    %23 = arith.truncf %22 : vector<16x32xf32> to vector<16x32xbf16>
    %c0_9 = arith.constant 0 : index
    %c0_10 = arith.constant 0 : index
    %c0_11 = arith.constant 0 : index
    %24 = vector.load %arg4[%c0_9, %c0_10, %c0_11] : memref<2x32x96xbf16, #tpu.memory_space<vmem>>, vector<1x32x96xbf16>
    %25 = vector.shape_cast %24 : vector<1x32x96xbf16> to vector<32x96xbf16>
    %cst_12 = arith.constant dense<0.000000e+00> : vector<16x96xf32>
    %26 = tpu.matmul %23, %25, %cst_12 {dimension_numbers = #tpu.dot_dimension_numbers<[1], [0], [0], [1], [0, 0, 1, 1], [], []>} : vector<16x32xbf16>, vector<32x96xbf16>, vector<16x96xf32> -> vector<16x96xf32>
    %c0_13 = arith.constant 0 : index
    %c0_14 = arith.constant 0 : index
    %c0_15 = arith.constant 0 : index
    %27 = vector.load %arg5[%c0_13, %c0_14, %c0_15] : memref<2x1x96xf32, #tpu.memory_space<vmem>>, vector<1x1x96xf32>
    %28 = vector.shape_cast %27 : vector<1x1x96xf32> to vector<1x96xf32>
    %29 = vector.broadcast %28 : vector<1x96xf32> to vector<16x96xf32>
    %30 = arith.addf %26, %29 : vector<16x96xf32>
    %31 = vector.extract_strided_slice %30 {offsets = [0, 0], sizes = [16, 32], strides = [1, 1]} : vector<16x96xf32> to vector<16x32xf32>
    %32 = vector.extract_strided_slice %30 {offsets = [0, 32], sizes = [16, 32], strides = [1, 1]} : vector<16x96xf32> to vector<16x32xf32>
    %33 = vector.extract_strided_slice %30 {offsets = [0, 64], sizes = [16, 32], strides = [1, 1]} : vector<16x96xf32> to vector<16x32xf32>
    %c0_16 = arith.constant 0 : index
    %c0_17 = arith.constant 0 : index
    %c0_18 = arith.constant 0 : index
    %34 = vector.load %arg6[%c0_16, %c0_17, %c0_18] : memref<2x32x32xbf16, #tpu.memory_space<vmem>>, vector<1x32x32xbf16>
    %35 = vector.shape_cast %34 : vector<1x32x32xbf16> to vector<32x32xbf16>
    %c0_19 = arith.constant 0 : index
    %c0_20 = arith.constant 0 : index
    %c0_21 = arith.constant 0 : index
    %36 = vector.load %arg1[%c0_19, %c0_20, %c0_21] : memref<2x8x8xf32, #tpu.memory_space<vmem>>, vector<1x8x8xf32>
    %37 = vector.shape_cast %36 : vector<1x8x8xf32> to vector<8x8xf32>
    %cst_22 = arith.constant 0.000000e+00 : f32
    %38 = vector.broadcast %cst_22 : f32 to vector<8x32xf32>
    %39 = vector.extract_strided_slice %31 {offsets = [0, 0], sizes = [8, 8], strides = [1, 1]} : vector<16x32xf32> to vector<8x8xf32>
    %40 = arith.truncf %39 : vector<8x8xf32> to vector<8x8xbf16>
    %41 = vector.extract_strided_slice %32 {offsets = [0, 0], sizes = [8, 8], strides = [1, 1]} : vector<16x32xf32> to vector<8x8xf32>
    %42 = arith.truncf %41 : vector<8x8xf32> to vector<8x8xbf16>
    %43 = vector.extract_strided_slice %33 {offsets = [0, 0], sizes = [8, 8], strides = [1, 1]} : vector<16x32xf32> to vector<8x8xf32>
    %44 = arith.truncf %43 : vector<8x8xf32> to vector<8x8xbf16>
    %cst_23 = arith.constant dense<0.000000e+00> : vector<8x8xf32>
    %45 = tpu.matmul %40, %42, %cst_23 {dimension_numbers = #tpu.dot_dimension_numbers<[1], [1], [0], [0], [0, 0, 1, 0], [], []>} : vector<8x8xbf16>, vector<8x8xbf16>, vector<8x8xf32> -> vector<8x8xf32>
    %cst_24 = arith.constant 0.353553385 : f32
    %46 = vector.broadcast %cst_24 : f32 to vector<8x8xf32>
    %47 = arith.mulf %45, %46 : vector<8x8xf32>
    %48 = arith.addf %47, %37 : vector<8x8xf32>
    %cst_25 = arith.constant dense<0xFF800000> : vector<8xf32>
    %49 = vector.multi_reduction <maximumf>, %48, %cst_25 [1] : vector<8x8xf32> to vector<8xf32>
    %50 = vector.shape_cast %49 : vector<8xf32> to vector<8x1xf32>
    %51 = vector.broadcast %50 : vector<8x1xf32> to vector<8x8xf32>
    %52 = arith.subf %48, %51 : vector<8x8xf32>
    %53 = math.exp %52 : vector<8x8xf32>
    %cst_26 = arith.constant dense<0.000000e+00> : vector<8xf32>
    %54 = vector.multi_reduction <add>, %53, %cst_26 [1] : vector<8x8xf32> to vector<8xf32>
    %55 = vector.shape_cast %54 : vector<8xf32> to vector<8x1xf32>
    %56 = tpu.reciprocal %55 {approx = true} : vector<8x1xf32> -> vector<8x1xf32>
    %57 = vector.broadcast %56 : vector<8x1xf32> to vector<8x8xf32>
    %58 = arith.mulf %53, %57 : vector<8x8xf32>
    %59 = arith.truncf %58 : vector<8x8xf32> to vector<8x8xbf16>
    %cst_27 = arith.constant dense<0.000000e+00> : vector<8x8xf32>
    %60 = tpu.matmul %59, %44, %cst_27 {dimension_numbers = #tpu.dot_dimension_numbers<[1], [0], [0], [1], [0, 0, 1, 1], [], []>} : vector<8x8xbf16>, vector<8x8xbf16>, vector<8x8xf32> -> vector<8x8xf32>
    %61 = arith.truncf %60 : vector<8x8xf32> to vector<8x8xbf16>
    %62 = vector.extract_strided_slice %35 {offsets = [0, 0], sizes = [8, 32], strides = [1, 1]} : vector<32x32xbf16> to vector<8x32xbf16>
    %cst_28 = arith.constant dense<0.000000e+00> : vector<8x32xf32>
    %63 = tpu.matmul %61, %62, %cst_28 {dimension_numbers = #tpu.dot_dimension_numbers<[1], [0], [0], [1], [0, 0, 1, 1], [], []>} : vector<8x8xbf16>, vector<8x32xbf16>, vector<8x32xf32> -> vector<8x32xf32>
    %64 = arith.addf %38, %63 : vector<8x32xf32>
    %65 = vector.extract_strided_slice %31 {offsets = [0, 8], sizes = [8, 8], strides = [1, 1]} : vector<16x32xf32> to vector<8x8xf32>
    %66 = arith.truncf %65 : vector<8x8xf32> to vector<8x8xbf16>
    %67 = vector.extract_strided_slice %32 {offsets = [0, 8], sizes = [8, 8], strides = [1, 1]} : vector<16x32xf32> to vector<8x8xf32>
    %68 = arith.truncf %67 : vector<8x8xf32> to vector<8x8xbf16>
    %69 = vector.extract_strided_slice %33 {offsets = [0, 8], sizes = [8, 8], strides = [1, 1]} : vector<16x32xf32> to vector<8x8xf32>
    %70 = arith.truncf %69 : vector<8x8xf32> to vector<8x8xbf16>
    %cst_29 = arith.constant dense<0.000000e+00> : vector<8x8xf32>
    %71 = tpu.matmul %66, %68, %cst_29 {dimension_numbers = #tpu.dot_dimension_numbers<[1], [1], [0], [0], [0, 0, 1, 0], [], []>} : vector<8x8xbf16>, vector<8x8xbf16>, vector<8x8xf32> -> vector<8x8xf32>
    %cst_30 = arith.constant 0.353553385 : f32
    %72 = vector.broadcast %cst_30 : f32 to vector<8x8xf32>
    %73 = arith.mulf %71, %72 : vector<8x8xf32>
    %74 = arith.addf %73, %37 : vector<8x8xf32>
    %cst_31 = arith.constant dense<0xFF800000> : vector<8xf32>
    %75 = vector.multi_reduction <maximumf>, %74, %cst_31 [1] : vector<8x8xf32> to vector<8xf32>
    %76 = vector.shape_cast %75 : vector<8xf32> to vector<8x1xf32>
    %77 = vector.broadcast %76 : vector<8x1xf32> to vector<8x8xf32>
    %78 = arith.subf %74, %77 : vector<8x8xf32>
    %79 = math.exp %78 : vector<8x8xf32>
    %cst_32 = arith.constant dense<0.000000e+00> : vector<8xf32>
    %80 = vector.multi_reduction <add>, %79, %cst_32 [1] : vector<8x8xf32> to vector<8xf32>
    %81 = vector.shape_cast %80 : vector<8xf32> to vector<8x1xf32>
    %82 = tpu.reciprocal %81 {approx = true} : vector<8x1xf32> -> vector<8x1xf32>
    %83 = vector.broadcast %82 : vector<8x1xf32> to vector<8x8xf32>
    %84 = arith.mulf %79, %83 : vector<8x8xf32>
    %85 = arith.truncf %84 : vector<8x8xf32> to vector<8x8xbf16>
    %cst_33 = arith.constant dense<0.000000e+00> : vector<8x8xf32>
    %86 = tpu.matmul %85, %70, %cst_33 {dimension_numbers = #tpu.dot_dimension_numbers<[1], [0], [0], [1], [0, 0, 1, 1], [], []>} : vector<8x8xbf16>, vector<8x8xbf16>, vector<8x8xf32> -> vector<8x8xf32>
    %87 = arith.truncf %86 : vector<8x8xf32> to vector<8x8xbf16>
    %88 = vector.extract_strided_slice %35 {offsets = [8, 0], sizes = [8, 32], strides = [1, 1]} : vector<32x32xbf16> to vector<8x32xbf16>
    %cst_34 = arith.constant dense<0.000000e+00> : vector<8x32xf32>
    %89 = tpu.matmul %87, %88, %cst_34 {dimension_numbers = #tpu.dot_dimension_numbers<[1], [0], [0], [1], [0, 0, 1, 1], [], []>} : vector<8x8xbf16>, vector<8x32xbf16>, vector<8x32xf32> -> vector<8x32xf32>
    %90 = arith.addf %64, %89 : vector<8x32xf32>
    %91 = vector.extract_strided_slice %31 {offsets = [0, 16], sizes = [8, 8], strides = [1, 1]} : vector<16x32xf32> to vector<8x8xf32>
    %92 = arith.truncf %91 : vector<8x8xf32> to vector<8x8xbf16>
    %93 = vector.extract_strided_slice %32 {offsets = [0, 16], sizes = [8, 8], strides = [1, 1]} : vector<16x32xf32> to vector<8x8xf32>
    %94 = arith.truncf %93 : vector<8x8xf32> to vector<8x8xbf16>
    %95 = vector.extract_strided_slice %33 {offsets = [0, 16], sizes = [8, 8], strides = [1, 1]} : vector<16x32xf32> to vector<8x8xf32>
    %96 = arith.truncf %95 : vector<8x8xf32> to vector<8x8xbf16>
    %cst_35 = arith.constant dense<0.000000e+00> : vector<8x8xf32>
    %97 = tpu.matmul %92, %94, %cst_35 {dimension_numbers = #tpu.dot_dimension_numbers<[1], [1], [0], [0], [0, 0, 1, 0], [], []>} : vector<8x8xbf16>, vector<8x8xbf16>, vector<8x8xf32> -> vector<8x8xf32>
    %cst_36 = arith.constant 0.353553385 : f32
    %98 = vector.broadcast %cst_36 : f32 to vector<8x8xf32>
    %99 = arith.mulf %97, %98 : vector<8x8xf32>
    %100 = arith.addf %99, %37 : vector<8x8xf32>
    %cst_37 = arith.constant dense<0xFF800000> : vector<8xf32>
    %101 = vector.multi_reduction <maximumf>, %100, %cst_37 [1] : vector<8x8xf32> to vector<8xf32>
    %102 = vector.shape_cast %101 : vector<8xf32> to vector<8x1xf32>
    %103 = vector.broadcast %102 : vector<8x1xf32> to vector<8x8xf32>
    %104 = arith.subf %100, %103 : vector<8x8xf32>
    %105 = math.exp %104 : vector<8x8xf32>
    %cst_38 = arith.constant dense<0.000000e+00> : vector<8xf32>
    %106 = vector.multi_reduction <add>, %105, %cst_38 [1] : vector<8x8xf32> to vector<8xf32>
    %107 = vector.shape_cast %106 : vector<8xf32> to vector<8x1xf32>
    %108 = tpu.reciprocal %107 {approx = true} : vector<8x1xf32> -> vector<8x1xf32>
    %109 = vector.broadcast %108 : vector<8x1xf32> to vector<8x8xf32>
    %110 = arith.mulf %105, %109 : vector<8x8xf32>
    %111 = arith.truncf %110 : vector<8x8xf32> to vector<8x8xbf16>
    %cst_39 = arith.constant dense<0.000000e+00> : vector<8x8xf32>
    %112 = tpu.matmul %111, %96, %cst_39 {dimension_numbers = #tpu.dot_dimension_numbers<[1], [0], [0], [1], [0, 0, 1, 1], [], []>} : vector<8x8xbf16>, vector<8x8xbf16>, vector<8x8xf32> -> vector<8x8xf32>
    %113 = arith.truncf %112 : vector<8x8xf32> to vector<8x8xbf16>
    %114 = vector.extract_strided_slice %35 {offsets = [16, 0], sizes = [8, 32], strides = [1, 1]} : vector<32x32xbf16> to vector<8x32xbf16>
    %cst_40 = arith.constant dense<0.000000e+00> : vector<8x32xf32>
    %115 = tpu.matmul %113, %114, %cst_40 {dimension_numbers = #tpu.dot_dimension_numbers<[1], [0], [0], [1], [0, 0, 1, 1], [], []>} : vector<8x8xbf16>, vector<8x32xbf16>, vector<8x32xf32> -> vector<8x32xf32>
    %116 = arith.addf %90, %115 : vector<8x32xf32>
    %117 = vector.extract_strided_slice %31 {offsets = [0, 24], sizes = [8, 8], strides = [1, 1]} : vector<16x32xf32> to vector<8x8xf32>
    %118 = arith.truncf %117 : vector<8x8xf32> to vector<8x8xbf16>
    %119 = vector.extract_strided_slice %32 {offsets = [0, 24], sizes = [8, 8], strides = [1, 1]} : vector<16x32xf32> to vector<8x8xf32>
    %120 = arith.truncf %119 : vector<8x8xf32> to vector<8x8xbf16>
    %121 = vector.extract_strided_slice %33 {offsets = [0, 24], sizes = [8, 8], strides = [1, 1]} : vector<16x32xf32> to vector<8x8xf32>
    %122 = arith.truncf %121 : vector<8x8xf32> to vector<8x8xbf16>
    %cst_41 = arith.constant dense<0.000000e+00> : vector<8x8xf32>
    %123 = tpu.matmul %118, %120, %cst_41 {dimension_numbers = #tpu.dot_dimension_numbers<[1], [1], [0], [0], [0, 0, 1, 0], [], []>} : vector<8x8xbf16>, vector<8x8xbf16>, vector<8x8xf32> -> vector<8x8xf32>
    %cst_42 = arith.constant 0.353553385 : f32
    %124 = vector.broadcast %cst_42 : f32 to vector<8x8xf32>
    %125 = arith.mulf %123, %124 : vector<8x8xf32>
    %126 = arith.addf %125, %37 : vector<8x8xf32>
    %cst_43 = arith.constant dense<0xFF800000> : vector<8xf32>
    %127 = vector.multi_reduction <maximumf>, %126, %cst_43 [1] : vector<8x8xf32> to vector<8xf32>
    %128 = vector.shape_cast %127 : vector<8xf32> to vector<8x1xf32>
    %129 = vector.broadcast %128 : vector<8x1xf32> to vector<8x8xf32>
    %130 = arith.subf %126, %129 : vector<8x8xf32>
    %131 = math.exp %130 : vector<8x8xf32>
    %cst_44 = arith.constant dense<0.000000e+00> : vector<8xf32>
    %132 = vector.multi_reduction <add>, %131, %cst_44 [1] : vector<8x8xf32> to vector<8xf32>
    %133 = vector.shape_cast %132 : vector<8xf32> to vector<8x1xf32>
    %134 = tpu.reciprocal %133 {approx = true} : vector<8x1xf32> -> vector<8x1xf32>
    %135 = vector.broadcast %134 : vector<8x1xf32> to vector<8x8xf32>
    %136 = arith.mulf %131, %135 : vector<8x8xf32>
    %137 = arith.truncf %136 : vector<8x8xf32> to vector<8x8xbf16>
    %cst_45 = arith.constant dense<0.000000e+00> : vector<8x8xf32>
    %138 = tpu.matmul %137, %122, %cst_45 {dimension_numbers = #tpu.dot_dimension_numbers<[1], [0], [0], [1], [0, 0, 1, 1], [], []>} : vector<8x8xbf16>, vector<8x8xbf16>, vector<8x8xf32> -> vector<8x8xf32>
    %139 = arith.truncf %138 : vector<8x8xf32> to vector<8x8xbf16>
    %140 = vector.extract_strided_slice %35 {offsets = [24, 0], sizes = [8, 32], strides = [1, 1]} : vector<32x32xbf16> to vector<8x32xbf16>
    %cst_46 = arith.constant dense<0.000000e+00> : vector<8x32xf32>
    %141 = tpu.matmul %139, %140, %cst_46 {dimension_numbers = #tpu.dot_dimension_numbers<[1], [0], [0], [1], [0, 0, 1, 1], [], []>} : vector<8x8xbf16>, vector<8x32xbf16>, vector<8x32xf32> -> vector<8x32xf32>
    %142 = arith.addf %116, %141 : vector<8x32xf32>
    %c1 = arith.constant 1 : index
    %c0_47 = arith.constant 0 : index
    %c0_48 = arith.constant 0 : index
    %143 = vector.load %arg1[%c1, %c0_47, %c0_48] : memref<2x8x8xf32, #tpu.memory_space<vmem>>, vector<1x8x8xf32>
    %144 = vector.shape_cast %143 : vector<1x8x8xf32> to vector<8x8xf32>
    %cst_49 = arith.constant 0.000000e+00 : f32
    %145 = vector.broadcast %cst_49 : f32 to vector<8x32xf32>
    %146 = vector.extract_strided_slice %31 {offsets = [8, 0], sizes = [8, 8], strides = [1, 1]} : vector<16x32xf32> to vector<8x8xf32>
    %147 = arith.truncf %146 : vector<8x8xf32> to vector<8x8xbf16>
    %148 = vector.extract_strided_slice %32 {offsets = [8, 0], sizes = [8, 8], strides = [1, 1]} : vector<16x32xf32> to vector<8x8xf32>
    %149 = arith.truncf %148 : vector<8x8xf32> to vector<8x8xbf16>
    %150 = vector.extract_strided_slice %33 {offsets = [8, 0], sizes = [8, 8], strides = [1, 1]} : vector<16x32xf32> to vector<8x8xf32>
    %151 = arith.truncf %150 : vector<8x8xf32> to vector<8x8xbf16>
    %cst_50 = arith.constant dense<0.000000e+00> : vector<8x8xf32>
    %152 = tpu.matmul %147, %149, %cst_50 {dimension_numbers = #tpu.dot_dimension_numbers<[1], [1], [0], [0], [0, 0, 1, 0], [], []>} : vector<8x8xbf16>, vector<8x8xbf16>, vector<8x8xf32> -> vector<8x8xf32>
    %cst_51 = arith.constant 0.353553385 : f32
    %153 = vector.broadcast %cst_51 : f32 to vector<8x8xf32>
    %154 = arith.mulf %152, %153 : vector<8x8xf32>
    %155 = arith.addf %154, %144 : vector<8x8xf32>
    %cst_52 = arith.constant dense<0xFF800000> : vector<8xf32>
    %156 = vector.multi_reduction <maximumf>, %155, %cst_52 [1] : vector<8x8xf32> to vector<8xf32>
    %157 = vector.shape_cast %156 : vector<8xf32> to vector<8x1xf32>
    %158 = vector.broadcast %157 : vector<8x1xf32> to vector<8x8xf32>
    %159 = arith.subf %155, %158 : vector<8x8xf32>
    %160 = math.exp %159 : vector<8x8xf32>
    %cst_53 = arith.constant dense<0.000000e+00> : vector<8xf32>
    %161 = vector.multi_reduction <add>, %160, %cst_53 [1] : vector<8x8xf32> to vector<8xf32>
    %162 = vector.shape_cast %161 : vector<8xf32> to vector<8x1xf32>
    %163 = tpu.reciprocal %162 {approx = true} : vector<8x1xf32> -> vector<8x1xf32>
    %164 = vector.broadcast %163 : vector<8x1xf32> to vector<8x8xf32>
    %165 = arith.mulf %160, %164 : vector<8x8xf32>
    %166 = arith.truncf %165 : vector<8x8xf32> to vector<8x8xbf16>
    %cst_54 = arith.constant dense<0.000000e+00> : vector<8x8xf32>
    %167 = tpu.matmul %166, %151, %cst_54 {dimension_numbers = #tpu.dot_dimension_numbers<[1], [0], [0], [1], [0, 0, 1, 1], [], []>} : vector<8x8xbf16>, vector<8x8xbf16>, vector<8x8xf32> -> vector<8x8xf32>
    %168 = arith.truncf %167 : vector<8x8xf32> to vector<8x8xbf16>
    %169 = vector.extract_strided_slice %35 {offsets = [0, 0], sizes = [8, 32], strides = [1, 1]} : vector<32x32xbf16> to vector<8x32xbf16>
    %cst_55 = arith.constant dense<0.000000e+00> : vector<8x32xf32>
    %170 = tpu.matmul %168, %169, %cst_55 {dimension_numbers = #tpu.dot_dimension_numbers<[1], [0], [0], [1], [0, 0, 1, 1], [], []>} : vector<8x8xbf16>, vector<8x32xbf16>, vector<8x32xf32> -> vector<8x32xf32>
    %171 = arith.addf %145, %170 : vector<8x32xf32>
    %172 = vector.extract_strided_slice %31 {offsets = [8, 8], sizes = [8, 8], strides = [1, 1]} : vector<16x32xf32> to vector<8x8xf32>
    %173 = arith.truncf %172 : vector<8x8xf32> to vector<8x8xbf16>
    %174 = vector.extract_strided_slice %32 {offsets = [8, 8], sizes = [8, 8], strides = [1, 1]} : vector<16x32xf32> to vector<8x8xf32>
    %175 = arith.truncf %174 : vector<8x8xf32> to vector<8x8xbf16>
    %176 = vector.extract_strided_slice %33 {offsets = [8, 8], sizes = [8, 8], strides = [1, 1]} : vector<16x32xf32> to vector<8x8xf32>
    %177 = arith.truncf %176 : vector<8x8xf32> to vector<8x8xbf16>
    %cst_56 = arith.constant dense<0.000000e+00> : vector<8x8xf32>
    %178 = tpu.matmul %173, %175, %cst_56 {dimension_numbers = #tpu.dot_dimension_numbers<[1], [1], [0], [0], [0, 0, 1, 0], [], []>} : vector<8x8xbf16>, vector<8x8xbf16>, vector<8x8xf32> -> vector<8x8xf32>
    %cst_57 = arith.constant 0.353553385 : f32
    %179 = vector.broadcast %cst_57 : f32 to vector<8x8xf32>
    %180 = arith.mulf %178, %179 : vector<8x8xf32>
    %181 = arith.addf %180, %144 : vector<8x8xf32>
    %cst_58 = arith.constant dense<0xFF800000> : vector<8xf32>
    %182 = vector.multi_reduction <maximumf>, %181, %cst_58 [1] : vector<8x8xf32> to vector<8xf32>
    %183 = vector.shape_cast %182 : vector<8xf32> to vector<8x1xf32>
    %184 = vector.broadcast %183 : vector<8x1xf32> to vector<8x8xf32>
    %185 = arith.subf %181, %184 : vector<8x8xf32>
    %186 = math.exp %185 : vector<8x8xf32>
    %cst_59 = arith.constant dense<0.000000e+00> : vector<8xf32>
    %187 = vector.multi_reduction <add>, %186, %cst_59 [1] : vector<8x8xf32> to vector<8xf32>
    %188 = vector.shape_cast %187 : vector<8xf32> to vector<8x1xf32>
    %189 = tpu.reciprocal %188 {approx = true} : vector<8x1xf32> -> vector<8x1xf32>
    %190 = vector.broadcast %189 : vector<8x1xf32> to vector<8x8xf32>
    %191 = arith.mulf %186, %190 : vector<8x8xf32>
    %192 = arith.truncf %191 : vector<8x8xf32> to vector<8x8xbf16>
    %cst_60 = arith.constant dense<0.000000e+00> : vector<8x8xf32>
    %193 = tpu.matmul %192, %177, %cst_60 {dimension_numbers = #tpu.dot_dimension_numbers<[1], [0], [0], [1], [0, 0, 1, 1], [], []>} : vector<8x8xbf16>, vector<8x8xbf16>, vector<8x8xf32> -> vector<8x8xf32>
    %194 = arith.truncf %193 : vector<8x8xf32> to vector<8x8xbf16>
    %195 = vector.extract_strided_slice %35 {offsets = [8, 0], sizes = [8, 32], strides = [1, 1]} : vector<32x32xbf16> to vector<8x32xbf16>
    %cst_61 = arith.constant dense<0.000000e+00> : vector<8x32xf32>
    %196 = tpu.matmul %194, %195, %cst_61 {dimension_numbers = #tpu.dot_dimension_numbers<[1], [0], [0], [1], [0, 0, 1, 1], [], []>} : vector<8x8xbf16>, vector<8x32xbf16>, vector<8x32xf32> -> vector<8x32xf32>
    %197 = arith.addf %171, %196 : vector<8x32xf32>
    %198 = vector.extract_strided_slice %31 {offsets = [8, 16], sizes = [8, 8], strides = [1, 1]} : vector<16x32xf32> to vector<8x8xf32>
    %199 = arith.truncf %198 : vector<8x8xf32> to vector<8x8xbf16>
    %200 = vector.extract_strided_slice %32 {offsets = [8, 16], sizes = [8, 8], strides = [1, 1]} : vector<16x32xf32> to vector<8x8xf32>
    %201 = arith.truncf %200 : vector<8x8xf32> to vector<8x8xbf16>
    %202 = vector.extract_strided_slice %33 {offsets = [8, 16], sizes = [8, 8], strides = [1, 1]} : vector<16x32xf32> to vector<8x8xf32>
    %203 = arith.truncf %202 : vector<8x8xf32> to vector<8x8xbf16>
    %cst_62 = arith.constant dense<0.000000e+00> : vector<8x8xf32>
    %204 = tpu.matmul %199, %201, %cst_62 {dimension_numbers = #tpu.dot_dimension_numbers<[1], [1], [0], [0], [0, 0, 1, 0], [], []>} : vector<8x8xbf16>, vector<8x8xbf16>, vector<8x8xf32> -> vector<8x8xf32>
    %cst_63 = arith.constant 0.353553385 : f32
    %205 = vector.broadcast %cst_63 : f32 to vector<8x8xf32>
    %206 = arith.mulf %204, %205 : vector<8x8xf32>
    %207 = arith.addf %206, %144 : vector<8x8xf32>
    %cst_64 = arith.constant dense<0xFF800000> : vector<8xf32>
    %208 = vector.multi_reduction <maximumf>, %207, %cst_64 [1] : vector<8x8xf32> to vector<8xf32>
    %209 = vector.shape_cast %208 : vector<8xf32> to vector<8x1xf32>
    %210 = vector.broadcast %209 : vector<8x1xf32> to vector<8x8xf32>
    %211 = arith.subf %207, %210 : vector<8x8xf32>
    %212 = math.exp %211 : vector<8x8xf32>
    %cst_65 = arith.constant dense<0.000000e+00> : vector<8xf32>
    %213 = vector.multi_reduction <add>, %212, %cst_65 [1] : vector<8x8xf32> to vector<8xf32>
    %214 = vector.shape_cast %213 : vector<8xf32> to vector<8x1xf32>
    %215 = tpu.reciprocal %214 {approx = true} : vector<8x1xf32> -> vector<8x1xf32>
    %216 = vector.broadcast %215 : vector<8x1xf32> to vector<8x8xf32>
    %217 = arith.mulf %212, %216 : vector<8x8xf32>
    %218 = arith.truncf %217 : vector<8x8xf32> to vector<8x8xbf16>
    %cst_66 = arith.constant dense<0.000000e+00> : vector<8x8xf32>
    %219 = tpu.matmul %218, %203, %cst_66 {dimension_numbers = #tpu.dot_dimension_numbers<[1], [0], [0], [1], [0, 0, 1, 1], [], []>} : vector<8x8xbf16>, vector<8x8xbf16>, vector<8x8xf32> -> vector<8x8xf32>
    %220 = arith.truncf %219 : vector<8x8xf32> to vector<8x8xbf16>
    %221 = vector.extract_strided_slice %35 {offsets = [16, 0], sizes = [8, 32], strides = [1, 1]} : vector<32x32xbf16> to vector<8x32xbf16>
    %cst_67 = arith.constant dense<0.000000e+00> : vector<8x32xf32>
    %222 = tpu.matmul %220, %221, %cst_67 {dimension_numbers = #tpu.dot_dimension_numbers<[1], [0], [0], [1], [0, 0, 1, 1], [], []>} : vector<8x8xbf16>, vector<8x32xbf16>, vector<8x32xf32> -> vector<8x32xf32>
    %223 = arith.addf %197, %222 : vector<8x32xf32>
    %224 = vector.extract_strided_slice %31 {offsets = [8, 24], sizes = [8, 8], strides = [1, 1]} : vector<16x32xf32> to vector<8x8xf32>
    %225 = arith.truncf %224 : vector<8x8xf32> to vector<8x8xbf16>
    %226 = vector.extract_strided_slice %32 {offsets = [8, 24], sizes = [8, 8], strides = [1, 1]} : vector<16x32xf32> to vector<8x8xf32>
    %227 = arith.truncf %226 : vector<8x8xf32> to vector<8x8xbf16>
    %228 = vector.extract_strided_slice %33 {offsets = [8, 24], sizes = [8, 8], strides = [1, 1]} : vector<16x32xf32> to vector<8x8xf32>
    %229 = arith.truncf %228 : vector<8x8xf32> to vector<8x8xbf16>
    %cst_68 = arith.constant dense<0.000000e+00> : vector<8x8xf32>
    %230 = tpu.matmul %225, %227, %cst_68 {dimension_numbers = #tpu.dot_dimension_numbers<[1], [1], [0], [0], [0, 0, 1, 0], [], []>} : vector<8x8xbf16>, vector<8x8xbf16>, vector<8x8xf32> -> vector<8x8xf32>
    %cst_69 = arith.constant 0.353553385 : f32
    %231 = vector.broadcast %cst_69 : f32 to vector<8x8xf32>
    %232 = arith.mulf %230, %231 : vector<8x8xf32>
    %233 = arith.addf %232, %144 : vector<8x8xf32>
    %cst_70 = arith.constant dense<0xFF800000> : vector<8xf32>
    %234 = vector.multi_reduction <maximumf>, %233, %cst_70 [1] : vector<8x8xf32> to vector<8xf32>
    %235 = vector.shape_cast %234 : vector<8xf32> to vector<8x1xf32>
    %236 = vector.broadcast %235 : vector<8x1xf32> to vector<8x8xf32>
    %237 = arith.subf %233, %236 : vector<8x8xf32>
    %238 = math.exp %237 : vector<8x8xf32>
    %cst_71 = arith.constant dense<0.000000e+00> : vector<8xf32>
    %239 = vector.multi_reduction <add>, %238, %cst_71 [1] : vector<8x8xf32> to vector<8xf32>
    %240 = vector.shape_cast %239 : vector<8xf32> to vector<8x1xf32>
    %241 = tpu.reciprocal %240 {approx = true} : vector<8x1xf32> -> vector<8x1xf32>
    %242 = vector.broadcast %241 : vector<8x1xf32> to vector<8x8xf32>
    %243 = arith.mulf %238, %242 : vector<8x8xf32>
    %244 = arith.truncf %243 : vector<8x8xf32> to vector<8x8xbf16>
    %cst_72 = arith.constant dense<0.000000e+00> : vector<8x8xf32>
    %245 = tpu.matmul %244, %229, %cst_72 {dimension_numbers = #tpu.dot_dimension_numbers<[1], [0], [0], [1], [0, 0, 1, 1], [], []>} : vector<8x8xbf16>, vector<8x8xbf16>, vector<8x8xf32> -> vector<8x8xf32>
    %246 = arith.truncf %245 : vector<8x8xf32> to vector<8x8xbf16>
    %247 = vector.extract_strided_slice %35 {offsets = [24, 0], sizes = [8, 32], strides = [1, 1]} : vector<32x32xbf16> to vector<8x32xbf16>
    %cst_73 = arith.constant dense<0.000000e+00> : vector<8x32xf32>
    %248 = tpu.matmul %246, %247, %cst_73 {dimension_numbers = #tpu.dot_dimension_numbers<[1], [0], [0], [1], [0, 0, 1, 1], [], []>} : vector<8x8xbf16>, vector<8x32xbf16>, vector<8x32xf32> -> vector<8x32xf32>
    %249 = arith.addf %223, %248 : vector<8x32xf32>
    %250 = tpu.concatenate %142, %249 in 0 : vector<8x32xf32>, vector<8x32xf32> -> vector<16x32xf32>
    %c0_74 = arith.constant 0 : index
    %c0_75 = arith.constant 0 : index
    %c0_76 = arith.constant 0 : index
    %251 = vector.load %arg7[%c0_74, %c0_75, %c0_76] : memref<2x1x32xf32, #tpu.memory_space<vmem>>, vector<1x1x32xf32>
    %252 = vector.shape_cast %251 : vector<1x1x32xf32> to vector<1x32xf32>
    %253 = vector.broadcast %252 : vector<1x32xf32> to vector<16x32xf32>
    %254 = arith.addf %250, %253 : vector<16x32xf32>
    %255 = arith.addf %22, %254 : vector<16x32xf32>
    %c0_77 = arith.constant 0 : index
    %c0_78 = arith.constant 0 : index
    %c0_79 = arith.constant 0 : index
    %256 = vector.load %arg8[%c0_77, %c0_78, %c0_79] : memref<2x1x32xf32, #tpu.memory_space<vmem>>, vector<1x1x32xf32>
    %257 = vector.shape_cast %256 : vector<1x1x32xf32> to vector<1x32xf32>
    %c0_80 = arith.constant 0 : index
    %c0_81 = arith.constant 0 : index
    %c0_82 = arith.constant 0 : index
    %258 = vector.load %arg9[%c0_80, %c0_81, %c0_82] : memref<2x1x32xf32, #tpu.memory_space<vmem>>, vector<1x1x32xf32>
    %259 = vector.shape_cast %258 : vector<1x1x32xf32> to vector<1x32xf32>
    %cst_83 = arith.constant dense<0.000000e+00> : vector<16xf32>
    %260 = vector.multi_reduction <add>, %255, %cst_83 [1] : vector<16x32xf32> to vector<16xf32>
    %261 = vector.shape_cast %260 : vector<16xf32> to vector<16x1xf32>
    %cst_84 = arith.constant 3.200000e+01 : f32
    %262 = vector.broadcast %cst_84 : f32 to vector<16x1xf32>
    %263 = arith.divf %261, %262 : vector<16x1xf32>
    %264 = vector.broadcast %263 : vector<16x1xf32> to vector<16x32xf32>
    %265 = arith.subf %255, %264 : vector<16x32xf32>
    %266 = arith.mulf %265, %265 : vector<16x32xf32>
    %cst_85 = arith.constant dense<0.000000e+00> : vector<16xf32>
    %267 = vector.multi_reduction <add>, %266, %cst_85 [1] : vector<16x32xf32> to vector<16xf32>
    %268 = vector.shape_cast %267 : vector<16xf32> to vector<16x1xf32>
    %cst_86 = arith.constant 3.200000e+01 : f32
    %269 = vector.broadcast %cst_86 : f32 to vector<16x1xf32>
    %270 = arith.divf %268, %269 : vector<16x1xf32>
    %cst_87 = arith.constant 9.99999996E-13 : f32
    %271 = vector.broadcast %cst_87 : f32 to vector<16x1xf32>
    %272 = arith.addf %270, %271 : vector<16x1xf32>
    %273 = math.rsqrt %272 : vector<16x1xf32>
    %274 = vector.broadcast %273 : vector<16x1xf32> to vector<16x32xf32>
    %275 = arith.mulf %265, %274 : vector<16x32xf32>
    %276 = vector.broadcast %257 : vector<1x32xf32> to vector<16x32xf32>
    %277 = arith.mulf %275, %276 : vector<16x32xf32>
    %278 = vector.broadcast %259 : vector<1x32xf32> to vector<16x32xf32>
    %279 = arith.addf %277, %278 : vector<16x32xf32>
    %280 = arith.truncf %279 : vector<16x32xf32> to vector<16x32xbf16>
    %c0_88 = arith.constant 0 : index
    %c0_89 = arith.constant 0 : index
    %c0_90 = arith.constant 0 : index
    %281 = vector.load %arg10[%c0_88, %c0_89, %c0_90] : memref<2x32x128xbf16, #tpu.memory_space<vmem>>, vector<1x32x128xbf16>
    %282 = vector.shape_cast %281 : vector<1x32x128xbf16> to vector<32x128xbf16>
    %cst_91 = arith.constant dense<0.000000e+00> : vector<16x128xf32>
    %283 = tpu.matmul %280, %282, %cst_91 {dimension_numbers = #tpu.dot_dimension_numbers<[1], [0], [0], [1], [0, 0, 1, 1], [], []>} : vector<16x32xbf16>, vector<32x128xbf16>, vector<16x128xf32> -> vector<16x128xf32>
    %c0_92 = arith.constant 0 : index
    %c0_93 = arith.constant 0 : index
    %c0_94 = arith.constant 0 : index
    %284 = vector.load %arg11[%c0_92, %c0_93, %c0_94] : memref<2x1x128xf32, #tpu.memory_space<vmem>>, vector<1x1x128xf32>
    %285 = vector.shape_cast %284 : vector<1x1x128xf32> to vector<1x128xf32>
    %286 = vector.broadcast %285 : vector<1x128xf32> to vector<16x128xf32>
    %287 = arith.addf %283, %286 : vector<16x128xf32>
    %288 = arith.mulf %287, %287 : vector<16x128xf32>
    %289 = arith.mulf %287, %288 : vector<16x128xf32>
    %cst_95 = arith.constant 4.471500e-02 : f32
    %290 = vector.broadcast %cst_95 : f32 to vector<16x128xf32>
    %291 = arith.mulf %290, %289 : vector<16x128xf32>
    %292 = arith.addf %287, %291 : vector<16x128xf32>
    %cst_96 = arith.constant 0.797884583 : f32
    %293 = vector.broadcast %cst_96 : f32 to vector<16x128xf32>
    %294 = arith.mulf %293, %292 : vector<16x128xf32>
    %295 = math.tanh %294 : vector<16x128xf32>
    %cst_97 = arith.constant 1.000000e+00 : f32
    %296 = vector.broadcast %cst_97 : f32 to vector<16x128xf32>
    %297 = arith.addf %296, %295 : vector<16x128xf32>
    %cst_98 = arith.constant 5.000000e-01 : f32
    %298 = vector.broadcast %cst_98 : f32 to vector<16x128xf32>
    %299 = arith.mulf %298, %297 : vector<16x128xf32>
    %300 = arith.mulf %287, %299 : vector<16x128xf32>
    %301 = arith.truncf %300 : vector<16x128xf32> to vector<16x128xbf16>
    %c0_99 = arith.constant 0 : index
    %c0_100 = arith.constant 0 : index
    %c0_101 = arith.constant 0 : index
    %302 = vector.load %arg12[%c0_99, %c0_100, %c0_101] : memref<2x128x32xbf16, #tpu.memory_space<vmem>>, vector<1x128x32xbf16>
    %303 = vector.shape_cast %302 : vector<1x128x32xbf16> to vector<128x32xbf16>
    %cst_102 = arith.constant dense<0.000000e+00> : vector<16x32xf32>
    %304 = tpu.matmul %301, %303, %cst_102 {dimension_numbers = #tpu.dot_dimension_numbers<[1], [0], [0], [1], [0, 0, 1, 1], [], []>} : vector<16x128xbf16>, vector<128x32xbf16>, vector<16x32xf32> -> vector<16x32xf32>
    %c0_103 = arith.constant 0 : index
    %c0_104 = arith.constant 0 : index
    %c0_105 = arith.constant 0 : index
    %305 = vector.load %arg13[%c0_103, %c0_104, %c0_105] : memref<2x1x32xf32, #tpu.memory_space<vmem>>, vector<1x1x32xf32>
    %306 = vector.shape_cast %305 : vector<1x1x32xf32> to vector<1x32xf32>
    %307 = vector.broadcast %306 : vector<1x32xf32> to vector<16x32xf32>
    %308 = arith.addf %304, %307 : vector<16x32xf32>
    %309 = arith.addf %279, %308 : vector<16x32xf32>
    %c0_106 = arith.constant 0 : index
    %c0_107 = arith.constant 0 : index
    %c0_108 = arith.constant 0 : index
    %310 = vector.load %arg14[%c0_106, %c0_107, %c0_108] : memref<2x1x32xf32, #tpu.memory_space<vmem>>, vector<1x1x32xf32>
    %311 = vector.shape_cast %310 : vector<1x1x32xf32> to vector<1x32xf32>
    %c0_109 = arith.constant 0 : index
    %c0_110 = arith.constant 0 : index
    %c0_111 = arith.constant 0 : index
    %312 = vector.load %arg15[%c0_109, %c0_110, %c0_111] : memref<2x1x32xf32, #tpu.memory_space<vmem>>, vector<1x1x32xf32>
    %313 = vector.shape_cast %312 : vector<1x1x32xf32> to vector<1x32xf32>
    %cst_112 = arith.constant dense<0.000000e+00> : vector<16xf32>
    %314 = vector.multi_reduction <add>, %309, %cst_112 [1] : vector<16x32xf32> to vector<16xf32>
    %315 = vector.shape_cast %314 : vector<16xf32> to vector<16x1xf32>
    %cst_113 = arith.constant 3.200000e+01 : f32
    %316 = vector.broadcast %cst_113 : f32 to vector<16x1xf32>
    %317 = arith.divf %315, %316 : vector<16x1xf32>
    %318 = vector.broadcast %317 : vector<16x1xf32> to vector<16x32xf32>
    %319 = arith.subf %309, %318 : vector<16x32xf32>
    %320 = arith.mulf %319, %319 : vector<16x32xf32>
    %cst_114 = arith.constant dense<0.000000e+00> : vector<16xf32>
    %321 = vector.multi_reduction <add>, %320, %cst_114 [1] : vector<16x32xf32> to vector<16xf32>
    %322 = vector.shape_cast %321 : vector<16xf32> to vector<16x1xf32>
    %cst_115 = arith.constant 3.200000e+01 : f32
    %323 = vector.broadcast %cst_115 : f32 to vector<16x1xf32>
    %324 = arith.divf %322, %323 : vector<16x1xf32>
    %cst_116 = arith.constant 9.99999996E-13 : f32
    %325 = vector.broadcast %cst_116 : f32 to vector<16x1xf32>
    %326 = arith.addf %324, %325 : vector<16x1xf32>
    %327 = math.rsqrt %326 : vector<16x1xf32>
    %328 = vector.broadcast %327 : vector<16x1xf32> to vector<16x32xf32>
    %329 = arith.mulf %319, %328 : vector<16x32xf32>
    %330 = vector.broadcast %311 : vector<1x32xf32> to vector<16x32xf32>
    %331 = arith.mulf %329, %330 : vector<16x32xf32>
    %332 = vector.broadcast %313 : vector<1x32xf32> to vector<16x32xf32>
    %333 = arith.addf %331, %332 : vector<16x32xf32>
    %334 = arith.truncf %333 : vector<16x32xf32> to vector<16x32xbf16>
    %c1_117 = arith.constant 1 : index
    %c0_118 = arith.constant 0 : index
    %c0_119 = arith.constant 0 : index
    %335 = vector.load %arg4[%c1_117, %c0_118, %c0_119] : memref<2x32x96xbf16, #tpu.memory_space<vmem>>, vector<1x32x96xbf16>
    %336 = vector.shape_cast %335 : vector<1x32x96xbf16> to vector<32x96xbf16>
    %cst_120 = arith.constant dense<0.000000e+00> : vector<16x96xf32>
    %337 = tpu.matmul %334, %336, %cst_120 {dimension_numbers = #tpu.dot_dimension_numbers<[1], [0], [0], [1], [0, 0, 1, 1], [], []>} : vector<16x32xbf16>, vector<32x96xbf16>, vector<16x96xf32> -> vector<16x96xf32>
    %c1_121 = arith.constant 1 : index
    %c0_122 = arith.constant 0 : index
    %c0_123 = arith.constant 0 : index
    %338 = vector.load %arg5[%c1_121, %c0_122, %c0_123] : memref<2x1x96xf32, #tpu.memory_space<vmem>>, vector<1x1x96xf32>
    %339 = vector.shape_cast %338 : vector<1x1x96xf32> to vector<1x96xf32>
    %340 = vector.broadcast %339 : vector<1x96xf32> to vector<16x96xf32>
    %341 = arith.addf %337, %340 : vector<16x96xf32>
    %342 = vector.extract_strided_slice %341 {offsets = [0, 0], sizes = [16, 32], strides = [1, 1]} : vector<16x96xf32> to vector<16x32xf32>
    %343 = vector.extract_strided_slice %341 {offsets = [0, 32], sizes = [16, 32], strides = [1, 1]} : vector<16x96xf32> to vector<16x32xf32>
    %344 = vector.extract_strided_slice %341 {offsets = [0, 64], sizes = [16, 32], strides = [1, 1]} : vector<16x96xf32> to vector<16x32xf32>
    %c1_124 = arith.constant 1 : index
    %c0_125 = arith.constant 0 : index
    %c0_126 = arith.constant 0 : index
    %345 = vector.load %arg6[%c1_124, %c0_125, %c0_126] : memref<2x32x32xbf16, #tpu.memory_space<vmem>>, vector<1x32x32xbf16>
    %346 = vector.shape_cast %345 : vector<1x32x32xbf16> to vector<32x32xbf16>
    %c0_127 = arith.constant 0 : index
    %c0_128 = arith.constant 0 : index
    %c0_129 = arith.constant 0 : index
    %347 = vector.load %arg1[%c0_127, %c0_128, %c0_129] : memref<2x8x8xf32, #tpu.memory_space<vmem>>, vector<1x8x8xf32>
    %348 = vector.shape_cast %347 : vector<1x8x8xf32> to vector<8x8xf32>
    %cst_130 = arith.constant 0.000000e+00 : f32
    %349 = vector.broadcast %cst_130 : f32 to vector<8x32xf32>
    %350 = vector.extract_strided_slice %342 {offsets = [0, 0], sizes = [8, 8], strides = [1, 1]} : vector<16x32xf32> to vector<8x8xf32>
    %351 = arith.truncf %350 : vector<8x8xf32> to vector<8x8xbf16>
    %352 = vector.extract_strided_slice %343 {offsets = [0, 0], sizes = [8, 8], strides = [1, 1]} : vector<16x32xf32> to vector<8x8xf32>
    %353 = arith.truncf %352 : vector<8x8xf32> to vector<8x8xbf16>
    %354 = vector.extract_strided_slice %344 {offsets = [0, 0], sizes = [8, 8], strides = [1, 1]} : vector<16x32xf32> to vector<8x8xf32>
    %355 = arith.truncf %354 : vector<8x8xf32> to vector<8x8xbf16>
    %cst_131 = arith.constant dense<0.000000e+00> : vector<8x8xf32>
    %356 = tpu.matmul %351, %353, %cst_131 {dimension_numbers = #tpu.dot_dimension_numbers<[1], [1], [0], [0], [0, 0, 1, 0], [], []>} : vector<8x8xbf16>, vector<8x8xbf16>, vector<8x8xf32> -> vector<8x8xf32>
    %cst_132 = arith.constant 0.353553385 : f32
    %357 = vector.broadcast %cst_132 : f32 to vector<8x8xf32>
    %358 = arith.mulf %356, %357 : vector<8x8xf32>
    %359 = arith.addf %358, %348 : vector<8x8xf32>
    %cst_133 = arith.constant dense<0xFF800000> : vector<8xf32>
    %360 = vector.multi_reduction <maximumf>, %359, %cst_133 [1] : vector<8x8xf32> to vector<8xf32>
    %361 = vector.shape_cast %360 : vector<8xf32> to vector<8x1xf32>
    %362 = vector.broadcast %361 : vector<8x1xf32> to vector<8x8xf32>
    %363 = arith.subf %359, %362 : vector<8x8xf32>
    %364 = math.exp %363 : vector<8x8xf32>
    %cst_134 = arith.constant dense<0.000000e+00> : vector<8xf32>
    %365 = vector.multi_reduction <add>, %364, %cst_134 [1] : vector<8x8xf32> to vector<8xf32>
    %366 = vector.shape_cast %365 : vector<8xf32> to vector<8x1xf32>
    %367 = tpu.reciprocal %366 {approx = true} : vector<8x1xf32> -> vector<8x1xf32>
    %368 = vector.broadcast %367 : vector<8x1xf32> to vector<8x8xf32>
    %369 = arith.mulf %364, %368 : vector<8x8xf32>
    %370 = arith.truncf %369 : vector<8x8xf32> to vector<8x8xbf16>
    %cst_135 = arith.constant dense<0.000000e+00> : vector<8x8xf32>
    %371 = tpu.matmul %370, %355, %cst_135 {dimension_numbers = #tpu.dot_dimension_numbers<[1], [0], [0], [1], [0, 0, 1, 1], [], []>} : vector<8x8xbf16>, vector<8x8xbf16>, vector<8x8xf32> -> vector<8x8xf32>
    %372 = arith.truncf %371 : vector<8x8xf32> to vector<8x8xbf16>
    %373 = vector.extract_strided_slice %346 {offsets = [0, 0], sizes = [8, 32], strides = [1, 1]} : vector<32x32xbf16> to vector<8x32xbf16>
    %cst_136 = arith.constant dense<0.000000e+00> : vector<8x32xf32>
    %374 = tpu.matmul %372, %373, %cst_136 {dimension_numbers = #tpu.dot_dimension_numbers<[1], [0], [0], [1], [0, 0, 1, 1], [], []>} : vector<8x8xbf16>, vector<8x32xbf16>, vector<8x32xf32> -> vector<8x32xf32>
    %375 = arith.addf %349, %374 : vector<8x32xf32>
    %376 = vector.extract_strided_slice %342 {offsets = [0, 8], sizes = [8, 8], strides = [1, 1]} : vector<16x32xf32> to vector<8x8xf32>
    %377 = arith.truncf %376 : vector<8x8xf32> to vector<8x8xbf16>
    %378 = vector.extract_strided_slice %343 {offsets = [0, 8], sizes = [8, 8], strides = [1, 1]} : vector<16x32xf32> to vector<8x8xf32>
    %379 = arith.truncf %378 : vector<8x8xf32> to vector<8x8xbf16>
    %380 = vector.extract_strided_slice %344 {offsets = [0, 8], sizes = [8, 8], strides = [1, 1]} : vector<16x32xf32> to vector<8x8xf32>
    %381 = arith.truncf %380 : vector<8x8xf32> to vector<8x8xbf16>
    %cst_137 = arith.constant dense<0.000000e+00> : vector<8x8xf32>
    %382 = tpu.matmul %377, %379, %cst_137 {dimension_numbers = #tpu.dot_dimension_numbers<[1], [1], [0], [0], [0, 0, 1, 0], [], []>} : vector<8x8xbf16>, vector<8x8xbf16>, vector<8x8xf32> -> vector<8x8xf32>
    %cst_138 = arith.constant 0.353553385 : f32
    %383 = vector.broadcast %cst_138 : f32 to vector<8x8xf32>
    %384 = arith.mulf %382, %383 : vector<8x8xf32>
    %385 = arith.addf %384, %348 : vector<8x8xf32>
    %cst_139 = arith.constant dense<0xFF800000> : vector<8xf32>
    %386 = vector.multi_reduction <maximumf>, %385, %cst_139 [1] : vector<8x8xf32> to vector<8xf32>
    %387 = vector.shape_cast %386 : vector<8xf32> to vector<8x1xf32>
    %388 = vector.broadcast %387 : vector<8x1xf32> to vector<8x8xf32>
    %389 = arith.subf %385, %388 : vector<8x8xf32>
    %390 = math.exp %389 : vector<8x8xf32>
    %cst_140 = arith.constant dense<0.000000e+00> : vector<8xf32>
    %391 = vector.multi_reduction <add>, %390, %cst_140 [1] : vector<8x8xf32> to vector<8xf32>
    %392 = vector.shape_cast %391 : vector<8xf32> to vector<8x1xf32>
    %393 = tpu.reciprocal %392 {approx = true} : vector<8x1xf32> -> vector<8x1xf32>
    %394 = vector.broadcast %393 : vector<8x1xf32> to vector<8x8xf32>
    %395 = arith.mulf %390, %394 : vector<8x8xf32>
    %396 = arith.truncf %395 : vector<8x8xf32> to vector<8x8xbf16>
    %cst_141 = arith.constant dense<0.000000e+00> : vector<8x8xf32>
    %397 = tpu.matmul %396, %381, %cst_141 {dimension_numbers = #tpu.dot_dimension_numbers<[1], [0], [0], [1], [0, 0, 1, 1], [], []>} : vector<8x8xbf16>, vector<8x8xbf16>, vector<8x8xf32> -> vector<8x8xf32>
    %398 = arith.truncf %397 : vector<8x8xf32> to vector<8x8xbf16>
    %399 = vector.extract_strided_slice %346 {offsets = [8, 0], sizes = [8, 32], strides = [1, 1]} : vector<32x32xbf16> to vector<8x32xbf16>
    %cst_142 = arith.constant dense<0.000000e+00> : vector<8x32xf32>
    %400 = tpu.matmul %398, %399, %cst_142 {dimension_numbers = #tpu.dot_dimension_numbers<[1], [0], [0], [1], [0, 0, 1, 1], [], []>} : vector<8x8xbf16>, vector<8x32xbf16>, vector<8x32xf32> -> vector<8x32xf32>
    %401 = arith.addf %375, %400 : vector<8x32xf32>
    %402 = vector.extract_strided_slice %342 {offsets = [0, 16], sizes = [8, 8], strides = [1, 1]} : vector<16x32xf32> to vector<8x8xf32>
    %403 = arith.truncf %402 : vector<8x8xf32> to vector<8x8xbf16>
    %404 = vector.extract_strided_slice %343 {offsets = [0, 16], sizes = [8, 8], strides = [1, 1]} : vector<16x32xf32> to vector<8x8xf32>
    %405 = arith.truncf %404 : vector<8x8xf32> to vector<8x8xbf16>
    %406 = vector.extract_strided_slice %344 {offsets = [0, 16], sizes = [8, 8], strides = [1, 1]} : vector<16x32xf32> to vector<8x8xf32>
    %407 = arith.truncf %406 : vector<8x8xf32> to vector<8x8xbf16>
    %cst_143 = arith.constant dense<0.000000e+00> : vector<8x8xf32>
    %408 = tpu.matmul %403, %405, %cst_143 {dimension_numbers = #tpu.dot_dimension_numbers<[1], [1], [0], [0], [0, 0, 1, 0], [], []>} : vector<8x8xbf16>, vector<8x8xbf16>, vector<8x8xf32> -> vector<8x8xf32>
    %cst_144 = arith.constant 0.353553385 : f32
    %409 = vector.broadcast %cst_144 : f32 to vector<8x8xf32>
    %410 = arith.mulf %408, %409 : vector<8x8xf32>
    %411 = arith.addf %410, %348 : vector<8x8xf32>
    %cst_145 = arith.constant dense<0xFF800000> : vector<8xf32>
    %412 = vector.multi_reduction <maximumf>, %411, %cst_145 [1] : vector<8x8xf32> to vector<8xf32>
    %413 = vector.shape_cast %412 : vector<8xf32> to vector<8x1xf32>
    %414 = vector.broadcast %413 : vector<8x1xf32> to vector<8x8xf32>
    %415 = arith.subf %411, %414 : vector<8x8xf32>
    %416 = math.exp %415 : vector<8x8xf32>
    %cst_146 = arith.constant dense<0.000000e+00> : vector<8xf32>
    %417 = vector.multi_reduction <add>, %416, %cst_146 [1] : vector<8x8xf32> to vector<8xf32>
    %418 = vector.shape_cast %417 : vector<8xf32> to vector<8x1xf32>
    %419 = tpu.reciprocal %418 {approx = true} : vector<8x1xf32> -> vector<8x1xf32>
    %420 = vector.broadcast %419 : vector<8x1xf32> to vector<8x8xf32>
    %421 = arith.mulf %416, %420 : vector<8x8xf32>
    %422 = arith.truncf %421 : vector<8x8xf32> to vector<8x8xbf16>
    %cst_147 = arith.constant dense<0.000000e+00> : vector<8x8xf32>
    %423 = tpu.matmul %422, %407, %cst_147 {dimension_numbers = #tpu.dot_dimension_numbers<[1], [0], [0], [1], [0, 0, 1, 1], [], []>} : vector<8x8xbf16>, vector<8x8xbf16>, vector<8x8xf32> -> vector<8x8xf32>
    %424 = arith.truncf %423 : vector<8x8xf32> to vector<8x8xbf16>
    %425 = vector.extract_strided_slice %346 {offsets = [16, 0], sizes = [8, 32], strides = [1, 1]} : vector<32x32xbf16> to vector<8x32xbf16>
    %cst_148 = arith.constant dense<0.000000e+00> : vector<8x32xf32>
    %426 = tpu.matmul %424, %425, %cst_148 {dimension_numbers = #tpu.dot_dimension_numbers<[1], [0], [0], [1], [0, 0, 1, 1], [], []>} : vector<8x8xbf16>, vector<8x32xbf16>, vector<8x32xf32> -> vector<8x32xf32>
    %427 = arith.addf %401, %426 : vector<8x32xf32>
    %428 = vector.extract_strided_slice %342 {offsets = [0, 24], sizes = [8, 8], strides = [1, 1]} : vector<16x32xf32> to vector<8x8xf32>
    %429 = arith.truncf %428 : vector<8x8xf32> to vector<8x8xbf16>
    %430 = vector.extract_strided_slice %343 {offsets = [0, 24], sizes = [8, 8], strides = [1, 1]} : vector<16x32xf32> to vector<8x8xf32>
    %431 = arith.truncf %430 : vector<8x8xf32> to vector<8x8xbf16>
    %432 = vector.extract_strided_slice %344 {offsets = [0, 24], sizes = [8, 8], strides = [1, 1]} : vector<16x32xf32> to vector<8x8xf32>
    %433 = arith.truncf %432 : vector<8x8xf32> to vector<8x8xbf16>
    %cst_149 = arith.constant dense<0.000000e+00> : vector<8x8xf32>
    %434 = tpu.matmul %429, %431, %cst_149 {dimension_numbers = #tpu.dot_dimension_numbers<[1], [1], [0], [0], [0, 0, 1, 0], [], []>} : vector<8x8xbf16>, vector<8x8xbf16>, vector<8x8xf32> -> vector<8x8xf32>
    %cst_150 = arith.constant 0.353553385 : f32
    %435 = vector.broadcast %cst_150 : f32 to vector<8x8xf32>
    %436 = arith.mulf %434, %435 : vector<8x8xf32>
    %437 = arith.addf %436, %348 : vector<8x8xf32>
    %cst_151 = arith.constant dense<0xFF800000> : vector<8xf32>
    %438 = vector.multi_reduction <maximumf>, %437, %cst_151 [1] : vector<8x8xf32> to vector<8xf32>
    %439 = vector.shape_cast %438 : vector<8xf32> to vector<8x1xf32>
    %440 = vector.broadcast %439 : vector<8x1xf32> to vector<8x8xf32>
    %441 = arith.subf %437, %440 : vector<8x8xf32>
    %442 = math.exp %441 : vector<8x8xf32>
    %cst_152 = arith.constant dense<0.000000e+00> : vector<8xf32>
    %443 = vector.multi_reduction <add>, %442, %cst_152 [1] : vector<8x8xf32> to vector<8xf32>
    %444 = vector.shape_cast %443 : vector<8xf32> to vector<8x1xf32>
    %445 = tpu.reciprocal %444 {approx = true} : vector<8x1xf32> -> vector<8x1xf32>
    %446 = vector.broadcast %445 : vector<8x1xf32> to vector<8x8xf32>
    %447 = arith.mulf %442, %446 : vector<8x8xf32>
    %448 = arith.truncf %447 : vector<8x8xf32> to vector<8x8xbf16>
    %cst_153 = arith.constant dense<0.000000e+00> : vector<8x8xf32>
    %449 = tpu.matmul %448, %433, %cst_153 {dimension_numbers = #tpu.dot_dimension_numbers<[1], [0], [0], [1], [0, 0, 1, 1], [], []>} : vector<8x8xbf16>, vector<8x8xbf16>, vector<8x8xf32> -> vector<8x8xf32>
    %450 = arith.truncf %449 : vector<8x8xf32> to vector<8x8xbf16>
    %451 = vector.extract_strided_slice %346 {offsets = [24, 0], sizes = [8, 32], strides = [1, 1]} : vector<32x32xbf16> to vector<8x32xbf16>
    %cst_154 = arith.constant dense<0.000000e+00> : vector<8x32xf32>
    %452 = tpu.matmul %450, %451, %cst_154 {dimension_numbers = #tpu.dot_dimension_numbers<[1], [0], [0], [1], [0, 0, 1, 1], [], []>} : vector<8x8xbf16>, vector<8x32xbf16>, vector<8x32xf32> -> vector<8x32xf32>
    %453 = arith.addf %427, %452 : vector<8x32xf32>
    %c1_155 = arith.constant 1 : index
    %c0_156 = arith.constant 0 : index
    %c0_157 = arith.constant 0 : index
    %454 = vector.load %arg1[%c1_155, %c0_156, %c0_157] : memref<2x8x8xf32, #tpu.memory_space<vmem>>, vector<1x8x8xf32>
    %455 = vector.shape_cast %454 : vector<1x8x8xf32> to vector<8x8xf32>
    %cst_158 = arith.constant 0.000000e+00 : f32
    %456 = vector.broadcast %cst_158 : f32 to vector<8x32xf32>
    %457 = vector.extract_strided_slice %342 {offsets = [8, 0], sizes = [8, 8], strides = [1, 1]} : vector<16x32xf32> to vector<8x8xf32>
    %458 = arith.truncf %457 : vector<8x8xf32> to vector<8x8xbf16>
    %459 = vector.extract_strided_slice %343 {offsets = [8, 0], sizes = [8, 8], strides = [1, 1]} : vector<16x32xf32> to vector<8x8xf32>
    %460 = arith.truncf %459 : vector<8x8xf32> to vector<8x8xbf16>
    %461 = vector.extract_strided_slice %344 {offsets = [8, 0], sizes = [8, 8], strides = [1, 1]} : vector<16x32xf32> to vector<8x8xf32>
    %462 = arith.truncf %461 : vector<8x8xf32> to vector<8x8xbf16>
    %cst_159 = arith.constant dense<0.000000e+00> : vector<8x8xf32>
    %463 = tpu.matmul %458, %460, %cst_159 {dimension_numbers = #tpu.dot_dimension_numbers<[1], [1], [0], [0], [0, 0, 1, 0], [], []>} : vector<8x8xbf16>, vector<8x8xbf16>, vector<8x8xf32> -> vector<8x8xf32>
    %cst_160 = arith.constant 0.353553385 : f32
    %464 = vector.broadcast %cst_160 : f32 to vector<8x8xf32>
    %465 = arith.mulf %463, %464 : vector<8x8xf32>
    %466 = arith.addf %465, %455 : vector<8x8xf32>
    %cst_161 = arith.constant dense<0xFF800000> : vector<8xf32>
    %467 = vector.multi_reduction <maximumf>, %466, %cst_161 [1] : vector<8x8xf32> to vector<8xf32>
    %468 = vector.shape_cast %467 : vector<8xf32> to vector<8x1xf32>
    %469 = vector.broadcast %468 : vector<8x1xf32> to vector<8x8xf32>
    %470 = arith.subf %466, %469 : vector<8x8xf32>
    %471 = math.exp %470 : vector<8x8xf32>
    %cst_162 = arith.constant dense<0.000000e+00> : vector<8xf32>
    %472 = vector.multi_reduction <add>, %471, %cst_162 [1] : vector<8x8xf32> to vector<8xf32>
    %473 = vector.shape_cast %472 : vector<8xf32> to vector<8x1xf32>
    %474 = tpu.reciprocal %473 {approx = true} : vector<8x1xf32> -> vector<8x1xf32>
    %475 = vector.broadcast %474 : vector<8x1xf32> to vector<8x8xf32>
    %476 = arith.mulf %471, %475 : vector<8x8xf32>
    %477 = arith.truncf %476 : vector<8x8xf32> to vector<8x8xbf16>
    %cst_163 = arith.constant dense<0.000000e+00> : vector<8x8xf32>
    %478 = tpu.matmul %477, %462, %cst_163 {dimension_numbers = #tpu.dot_dimension_numbers<[1], [0], [0], [1], [0, 0, 1, 1], [], []>} : vector<8x8xbf16>, vector<8x8xbf16>, vector<8x8xf32> -> vector<8x8xf32>
    %479 = arith.truncf %478 : vector<8x8xf32> to vector<8x8xbf16>
    %480 = vector.extract_strided_slice %346 {offsets = [0, 0], sizes = [8, 32], strides = [1, 1]} : vector<32x32xbf16> to vector<8x32xbf16>
    %cst_164 = arith.constant dense<0.000000e+00> : vector<8x32xf32>
    %481 = tpu.matmul %479, %480, %cst_164 {dimension_numbers = #tpu.dot_dimension_numbers<[1], [0], [0], [1], [0, 0, 1, 1], [], []>} : vector<8x8xbf16>, vector<8x32xbf16>, vector<8x32xf32> -> vector<8x32xf32>
    %482 = arith.addf %456, %481 : vector<8x32xf32>
    %483 = vector.extract_strided_slice %342 {offsets = [8, 8], sizes = [8, 8], strides = [1, 1]} : vector<16x32xf32> to vector<8x8xf32>
    %484 = arith.truncf %483 : vector<8x8xf32> to vector<8x8xbf16>
    %485 = vector.extract_strided_slice %343 {offsets = [8, 8], sizes = [8, 8], strides = [1, 1]} : vector<16x32xf32> to vector<8x8xf32>
    %486 = arith.truncf %485 : vector<8x8xf32> to vector<8x8xbf16>
    %487 = vector.extract_strided_slice %344 {offsets = [8, 8], sizes = [8, 8], strides = [1, 1]} : vector<16x32xf32> to vector<8x8xf32>
    %488 = arith.truncf %487 : vector<8x8xf32> to vector<8x8xbf16>
    %cst_165 = arith.constant dense<0.000000e+00> : vector<8x8xf32>
    %489 = tpu.matmul %484, %486, %cst_165 {dimension_numbers = #tpu.dot_dimension_numbers<[1], [1], [0], [0], [0, 0, 1, 0], [], []>} : vector<8x8xbf16>, vector<8x8xbf16>, vector<8x8xf32> -> vector<8x8xf32>
    %cst_166 = arith.constant 0.353553385 : f32
    %490 = vector.broadcast %cst_166 : f32 to vector<8x8xf32>
    %491 = arith.mulf %489, %490 : vector<8x8xf32>
    %492 = arith.addf %491, %455 : vector<8x8xf32>
    %cst_167 = arith.constant dense<0xFF800000> : vector<8xf32>
    %493 = vector.multi_reduction <maximumf>, %492, %cst_167 [1] : vector<8x8xf32> to vector<8xf32>
    %494 = vector.shape_cast %493 : vector<8xf32> to vector<8x1xf32>
    %495 = vector.broadcast %494 : vector<8x1xf32> to vector<8x8xf32>
    %496 = arith.subf %492, %495 : vector<8x8xf32>
    %497 = math.exp %496 : vector<8x8xf32>
    %cst_168 = arith.constant dense<0.000000e+00> : vector<8xf32>
    %498 = vector.multi_reduction <add>, %497, %cst_168 [1] : vector<8x8xf32> to vector<8xf32>
    %499 = vector.shape_cast %498 : vector<8xf32> to vector<8x1xf32>
    %500 = tpu.reciprocal %499 {approx = true} : vector<8x1xf32> -> vector<8x1xf32>
    %501 = vector.broadcast %500 : vector<8x1xf32> to vector<8x8xf32>
    %502 = arith.mulf %497, %501 : vector<8x8xf32>
    %503 = arith.truncf %502 : vector<8x8xf32> to vector<8x8xbf16>
    %cst_169 = arith.constant dense<0.000000e+00> : vector<8x8xf32>
    %504 = tpu.matmul %503, %488, %cst_169 {dimension_numbers = #tpu.dot_dimension_numbers<[1], [0], [0], [1], [0, 0, 1, 1], [], []>} : vector<8x8xbf16>, vector<8x8xbf16>, vector<8x8xf32> -> vector<8x8xf32>
    %505 = arith.truncf %504 : vector<8x8xf32> to vector<8x8xbf16>
    %506 = vector.extract_strided_slice %346 {offsets = [8, 0], sizes = [8, 32], strides = [1, 1]} : vector<32x32xbf16> to vector<8x32xbf16>
    %cst_170 = arith.constant dense<0.000000e+00> : vector<8x32xf32>
    %507 = tpu.matmul %505, %506, %cst_170 {dimension_numbers = #tpu.dot_dimension_numbers<[1], [0], [0], [1], [0, 0, 1, 1], [], []>} : vector<8x8xbf16>, vector<8x32xbf16>, vector<8x32xf32> -> vector<8x32xf32>
    %508 = arith.addf %482, %507 : vector<8x32xf32>
    %509 = vector.extract_strided_slice %342 {offsets = [8, 16], sizes = [8, 8], strides = [1, 1]} : vector<16x32xf32> to vector<8x8xf32>
    %510 = arith.truncf %509 : vector<8x8xf32> to vector<8x8xbf16>
    %511 = vector.extract_strided_slice %343 {offsets = [8, 16], sizes = [8, 8], strides = [1, 1]} : vector<16x32xf32> to vector<8x8xf32>
    %512 = arith.truncf %511 : vector<8x8xf32> to vector<8x8xbf16>
    %513 = vector.extract_strided_slice %344 {offsets = [8, 16], sizes = [8, 8], strides = [1, 1]} : vector<16x32xf32> to vector<8x8xf32>
    %514 = arith.truncf %513 : vector<8x8xf32> to vector<8x8xbf16>
    %cst_171 = arith.constant dense<0.000000e+00> : vector<8x8xf32>
    %515 = tpu.matmul %510, %512, %cst_171 {dimension_numbers = #tpu.dot_dimension_numbers<[1], [1], [0], [0], [0, 0, 1, 0], [], []>} : vector<8x8xbf16>, vector<8x8xbf16>, vector<8x8xf32> -> vector<8x8xf32>
    %cst_172 = arith.constant 0.353553385 : f32
    %516 = vector.broadcast %cst_172 : f32 to vector<8x8xf32>
    %517 = arith.mulf %515, %516 : vector<8x8xf32>
    %518 = arith.addf %517, %455 : vector<8x8xf32>
    %cst_173 = arith.constant dense<0xFF800000> : vector<8xf32>
    %519 = vector.multi_reduction <maximumf>, %518, %cst_173 [1] : vector<8x8xf32> to vector<8xf32>
    %520 = vector.shape_cast %519 : vector<8xf32> to vector<8x1xf32>
    %521 = vector.broadcast %520 : vector<8x1xf32> to vector<8x8xf32>
    %522 = arith.subf %518, %521 : vector<8x8xf32>
    %523 = math.exp %522 : vector<8x8xf32>
    %cst_174 = arith.constant dense<0.000000e+00> : vector<8xf32>
    %524 = vector.multi_reduction <add>, %523, %cst_174 [1] : vector<8x8xf32> to vector<8xf32>
    %525 = vector.shape_cast %524 : vector<8xf32> to vector<8x1xf32>
    %526 = tpu.reciprocal %525 {approx = true} : vector<8x1xf32> -> vector<8x1xf32>
    %527 = vector.broadcast %526 : vector<8x1xf32> to vector<8x8xf32>
    %528 = arith.mulf %523, %527 : vector<8x8xf32>
    %529 = arith.truncf %528 : vector<8x8xf32> to vector<8x8xbf16>
    %cst_175 = arith.constant dense<0.000000e+00> : vector<8x8xf32>
    %530 = tpu.matmul %529, %514, %cst_175 {dimension_numbers = #tpu.dot_dimension_numbers<[1], [0], [0], [1], [0, 0, 1, 1], [], []>} : vector<8x8xbf16>, vector<8x8xbf16>, vector<8x8xf32> -> vector<8x8xf32>
    %531 = arith.truncf %530 : vector<8x8xf32> to vector<8x8xbf16>
    %532 = vector.extract_strided_slice %346 {offsets = [16, 0], sizes = [8, 32], strides = [1, 1]} : vector<32x32xbf16> to vector<8x32xbf16>
    %cst_176 = arith.constant dense<0.000000e+00> : vector<8x32xf32>
    %533 = tpu.matmul %531, %532, %cst_176 {dimension_numbers = #tpu.dot_dimension_numbers<[1], [0], [0], [1], [0, 0, 1, 1], [], []>} : vector<8x8xbf16>, vector<8x32xbf16>, vector<8x32xf32> -> vector<8x32xf32>
    %534 = arith.addf %508, %533 : vector<8x32xf32>
    %535 = vector.extract_strided_slice %342 {offsets = [8, 24], sizes = [8, 8], strides = [1, 1]} : vector<16x32xf32> to vector<8x8xf32>
    %536 = arith.truncf %535 : vector<8x8xf32> to vector<8x8xbf16>
    %537 = vector.extract_strided_slice %343 {offsets = [8, 24], sizes = [8, 8], strides = [1, 1]} : vector<16x32xf32> to vector<8x8xf32>
    %538 = arith.truncf %537 : vector<8x8xf32> to vector<8x8xbf16>
    %539 = vector.extract_strided_slice %344 {offsets = [8, 24], sizes = [8, 8], strides = [1, 1]} : vector<16x32xf32> to vector<8x8xf32>
    %540 = arith.truncf %539 : vector<8x8xf32> to vector<8x8xbf16>
    %cst_177 = arith.constant dense<0.000000e+00> : vector<8x8xf32>
    %541 = tpu.matmul %536, %538, %cst_177 {dimension_numbers = #tpu.dot_dimension_numbers<[1], [1], [0], [0], [0, 0, 1, 0], [], []>} : vector<8x8xbf16>, vector<8x8xbf16>, vector<8x8xf32> -> vector<8x8xf32>
    %cst_178 = arith.constant 0.353553385 : f32
    %542 = vector.broadcast %cst_178 : f32 to vector<8x8xf32>
    %543 = arith.mulf %541, %542 : vector<8x8xf32>
    %544 = arith.addf %543, %455 : vector<8x8xf32>
    %cst_179 = arith.constant dense<0xFF800000> : vector<8xf32>
    %545 = vector.multi_reduction <maximumf>, %544, %cst_179 [1] : vector<8x8xf32> to vector<8xf32>
    %546 = vector.shape_cast %545 : vector<8xf32> to vector<8x1xf32>
    %547 = vector.broadcast %546 : vector<8x1xf32> to vector<8x8xf32>
    %548 = arith.subf %544, %547 : vector<8x8xf32>
    %549 = math.exp %548 : vector<8x8xf32>
    %cst_180 = arith.constant dense<0.000000e+00> : vector<8xf32>
    %550 = vector.multi_reduction <add>, %549, %cst_180 [1] : vector<8x8xf32> to vector<8xf32>
    %551 = vector.shape_cast %550 : vector<8xf32> to vector<8x1xf32>
    %552 = tpu.reciprocal %551 {approx = true} : vector<8x1xf32> -> vector<8x1xf32>
    %553 = vector.broadcast %552 : vector<8x1xf32> to vector<8x8xf32>
    %554 = arith.mulf %549, %553 : vector<8x8xf32>
    %555 = arith.truncf %554 : vector<8x8xf32> to vector<8x8xbf16>
    %cst_181 = arith.constant dense<0.000000e+00> : vector<8x8xf32>
    %556 = tpu.matmul %555, %540, %cst_181 {dimension_numbers = #tpu.dot_dimension_numbers<[1], [0], [0], [1], [0, 0, 1, 1], [], []>} : vector<8x8xbf16>, vector<8x8xbf16>, vector<8x8xf32> -> vector<8x8xf32>
    %557 = arith.truncf %556 : vector<8x8xf32> to vector<8x8xbf16>
    %558 = vector.extract_strided_slice %346 {offsets = [24, 0], sizes = [8, 32], strides = [1, 1]} : vector<32x32xbf16> to vector<8x32xbf16>
    %cst_182 = arith.constant dense<0.000000e+00> : vector<8x32xf32>
    %559 = tpu.matmul %557, %558, %cst_182 {dimension_numbers = #tpu.dot_dimension_numbers<[1], [0], [0], [1], [0, 0, 1, 1], [], []>} : vector<8x8xbf16>, vector<8x32xbf16>, vector<8x32xf32> -> vector<8x32xf32>
    %560 = arith.addf %534, %559 : vector<8x32xf32>
    %561 = tpu.concatenate %453, %560 in 0 : vector<8x32xf32>, vector<8x32xf32> -> vector<16x32xf32>
    %c1_183 = arith.constant 1 : index
    %c0_184 = arith.constant 0 : index
    %c0_185 = arith.constant 0 : index
    %562 = vector.load %arg7[%c1_183, %c0_184, %c0_185] : memref<2x1x32xf32, #tpu.memory_space<vmem>>, vector<1x1x32xf32>
    %563 = vector.shape_cast %562 : vector<1x1x32xf32> to vector<1x32xf32>
    %564 = vector.broadcast %563 : vector<1x32xf32> to vector<16x32xf32>
    %565 = arith.addf %561, %564 : vector<16x32xf32>
    %566 = arith.addf %333, %565 : vector<16x32xf32>
    %c1_186 = arith.constant 1 : index
    %c0_187 = arith.constant 0 : index
    %c0_188 = arith.constant 0 : index
    %567 = vector.load %arg8[%c1_186, %c0_187, %c0_188] : memref<2x1x32xf32, #tpu.memory_space<vmem>>, vector<1x1x32xf32>
    %568 = vector.shape_cast %567 : vector<1x1x32xf32> to vector<1x32xf32>
    %c1_189 = arith.constant 1 : index
    %c0_190 = arith.constant 0 : index
    %c0_191 = arith.constant 0 : index
    %569 = vector.load %arg9[%c1_189, %c0_190, %c0_191] : memref<2x1x32xf32, #tpu.memory_space<vmem>>, vector<1x1x32xf32>
    %570 = vector.shape_cast %569 : vector<1x1x32xf32> to vector<1x32xf32>
    %cst_192 = arith.constant dense<0.000000e+00> : vector<16xf32>
    %571 = vector.multi_reduction <add>, %566, %cst_192 [1] : vector<16x32xf32> to vector<16xf32>
    %572 = vector.shape_cast %571 : vector<16xf32> to vector<16x1xf32>
    %cst_193 = arith.constant 3.200000e+01 : f32
    %573 = vector.broadcast %cst_193 : f32 to vector<16x1xf32>
    %574 = arith.divf %572, %573 : vector<16x1xf32>
    %575 = vector.broadcast %574 : vector<16x1xf32> to vector<16x32xf32>
    %576 = arith.subf %566, %575 : vector<16x32xf32>
    %577 = arith.mulf %576, %576 : vector<16x32xf32>
    %cst_194 = arith.constant dense<0.000000e+00> : vector<16xf32>
    %578 = vector.multi_reduction <add>, %577, %cst_194 [1] : vector<16x32xf32> to vector<16xf32>
    %579 = vector.shape_cast %578 : vector<16xf32> to vector<16x1xf32>
    %cst_195 = arith.constant 3.200000e+01 : f32
    %580 = vector.broadcast %cst_195 : f32 to vector<16x1xf32>
    %581 = arith.divf %579, %580 : vector<16x1xf32>
    %cst_196 = arith.constant 9.99999996E-13 : f32
    %582 = vector.broadcast %cst_196 : f32 to vector<16x1xf32>
    %583 = arith.addf %581, %582 : vector<16x1xf32>
    %584 = math.rsqrt %583 : vector<16x1xf32>
    %585 = vector.broadcast %584 : vector<16x1xf32> to vector<16x32xf32>
    %586 = arith.mulf %576, %585 : vector<16x32xf32>
    %587 = vector.broadcast %568 : vector<1x32xf32> to vector<16x32xf32>
    %588 = arith.mulf %586, %587 : vector<16x32xf32>
    %589 = vector.broadcast %570 : vector<1x32xf32> to vector<16x32xf32>
    %590 = arith.addf %588, %589 : vector<16x32xf32>
    %591 = arith.truncf %590 : vector<16x32xf32> to vector<16x32xbf16>
    %c1_197 = arith.constant 1 : index
    %c0_198 = arith.constant 0 : index
    %c0_199 = arith.constant 0 : index
    %592 = vector.load %arg10[%c1_197, %c0_198, %c0_199] : memref<2x32x128xbf16, #tpu.memory_space<vmem>>, vector<1x32x128xbf16>
    %593 = vector.shape_cast %592 : vector<1x32x128xbf16> to vector<32x128xbf16>
    %cst_200 = arith.constant dense<0.000000e+00> : vector<16x128xf32>
    %594 = tpu.matmul %591, %593, %cst_200 {dimension_numbers = #tpu.dot_dimension_numbers<[1], [0], [0], [1], [0, 0, 1, 1], [], []>} : vector<16x32xbf16>, vector<32x128xbf16>, vector<16x128xf32> -> vector<16x128xf32>
    %c1_201 = arith.constant 1 : index
    %c0_202 = arith.constant 0 : index
    %c0_203 = arith.constant 0 : index
    %595 = vector.load %arg11[%c1_201, %c0_202, %c0_203] : memref<2x1x128xf32, #tpu.memory_space<vmem>>, vector<1x1x128xf32>
    %596 = vector.shape_cast %595 : vector<1x1x128xf32> to vector<1x128xf32>
    %597 = vector.broadcast %596 : vector<1x128xf32> to vector<16x128xf32>
    %598 = arith.addf %594, %597 : vector<16x128xf32>
    %599 = arith.mulf %598, %598 : vector<16x128xf32>
    %600 = arith.mulf %598, %599 : vector<16x128xf32>
    %cst_204 = arith.constant 4.471500e-02 : f32
    %601 = vector.broadcast %cst_204 : f32 to vector<16x128xf32>
    %602 = arith.mulf %601, %600 : vector<16x128xf32>
    %603 = arith.addf %598, %602 : vector<16x128xf32>
    %cst_205 = arith.constant 0.797884583 : f32
    %604 = vector.broadcast %cst_205 : f32 to vector<16x128xf32>
    %605 = arith.mulf %604, %603 : vector<16x128xf32>
    %606 = math.tanh %605 : vector<16x128xf32>
    %cst_206 = arith.constant 1.000000e+00 : f32
    %607 = vector.broadcast %cst_206 : f32 to vector<16x128xf32>
    %608 = arith.addf %607, %606 : vector<16x128xf32>
    %cst_207 = arith.constant 5.000000e-01 : f32
    %609 = vector.broadcast %cst_207 : f32 to vector<16x128xf32>
    %610 = arith.mulf %609, %608 : vector<16x128xf32>
    %611 = arith.mulf %598, %610 : vector<16x128xf32>
    %612 = arith.truncf %611 : vector<16x128xf32> to vector<16x128xbf16>
    %c1_208 = arith.constant 1 : index
    %c0_209 = arith.constant 0 : index
    %c0_210 = arith.constant 0 : index
    %613 = vector.load %arg12[%c1_208, %c0_209, %c0_210] : memref<2x128x32xbf16, #tpu.memory_space<vmem>>, vector<1x128x32xbf16>
    %614 = vector.shape_cast %613 : vector<1x128x32xbf16> to vector<128x32xbf16>
    %cst_211 = arith.constant dense<0.000000e+00> : vector<16x32xf32>
    %615 = tpu.matmul %612, %614, %cst_211 {dimension_numbers = #tpu.dot_dimension_numbers<[1], [0], [0], [1], [0, 0, 1, 1], [], []>} : vector<16x128xbf16>, vector<128x32xbf16>, vector<16x32xf32> -> vector<16x32xf32>
    %c1_212 = arith.constant 1 : index
    %c0_213 = arith.constant 0 : index
    %c0_214 = arith.constant 0 : index
    %616 = vector.load %arg13[%c1_212, %c0_213, %c0_214] : memref<2x1x32xf32, #tpu.memory_space<vmem>>, vector<1x1x32xf32>
    %617 = vector.shape_cast %616 : vector<1x1x32xf32> to vector<1x32xf32>
    %618 = vector.broadcast %617 : vector<1x32xf32> to vector<16x32xf32>
    %619 = arith.addf %615, %618 : vector<16x32xf32>
    %620 = arith.addf %590, %619 : vector<16x32xf32>
    %c1_215 = arith.constant 1 : index
    %c0_216 = arith.constant 0 : index
    %c0_217 = arith.constant 0 : index
    %621 = vector.load %arg14[%c1_215, %c0_216, %c0_217] : memref<2x1x32xf32, #tpu.memory_space<vmem>>, vector<1x1x32xf32>
    %622 = vector.shape_cast %621 : vector<1x1x32xf32> to vector<1x32xf32>
    %c1_218 = arith.constant 1 : index
    %c0_219 = arith.constant 0 : index
    %c0_220 = arith.constant 0 : index
    %623 = vector.load %arg15[%c1_218, %c0_219, %c0_220] : memref<2x1x32xf32, #tpu.memory_space<vmem>>, vector<1x1x32xf32>
    %624 = vector.shape_cast %623 : vector<1x1x32xf32> to vector<1x32xf32>
    %cst_221 = arith.constant dense<0.000000e+00> : vector<16xf32>
    %625 = vector.multi_reduction <add>, %620, %cst_221 [1] : vector<16x32xf32> to vector<16xf32>
    %626 = vector.shape_cast %625 : vector<16xf32> to vector<16x1xf32>
    %cst_222 = arith.constant 3.200000e+01 : f32
    %627 = vector.broadcast %cst_222 : f32 to vector<16x1xf32>
    %628 = arith.divf %626, %627 : vector<16x1xf32>
    %629 = vector.broadcast %628 : vector<16x1xf32> to vector<16x32xf32>
    %630 = arith.subf %620, %629 : vector<16x32xf32>
    %631 = arith.mulf %630, %630 : vector<16x32xf32>
    %cst_223 = arith.constant dense<0.000000e+00> : vector<16xf32>
    %632 = vector.multi_reduction <add>, %631, %cst_223 [1] : vector<16x32xf32> to vector<16xf32>
    %633 = vector.shape_cast %632 : vector<16xf32> to vector<16x1xf32>
    %cst_224 = arith.constant 3.200000e+01 : f32
    %634 = vector.broadcast %cst_224 : f32 to vector<16x1xf32>
    %635 = arith.divf %633, %634 : vector<16x1xf32>
    %cst_225 = arith.constant 9.99999996E-13 : f32
    %636 = vector.broadcast %cst_225 : f32 to vector<16x1xf32>
    %637 = arith.addf %635, %636 : vector<16x1xf32>
    %638 = math.rsqrt %637 : vector<16x1xf32>
    %639 = vector.broadcast %638 : vector<16x1xf32> to vector<16x32xf32>
    %640 = arith.mulf %630, %639 : vector<16x32xf32>
    %641 = vector.broadcast %622 : vector<1x32xf32> to vector<16x32xf32>
    %642 = arith.mulf %640, %641 : vector<16x32xf32>
    %643 = vector.broadcast %624 : vector<1x32xf32> to vector<16x32xf32>
    %644 = arith.addf %642, %643 : vector<16x32xf32>
    %645 = vector.extract_strided_slice %644 {offsets = [0, 0], sizes = [1, 32], strides = [1, 1]} : vector<16x32xf32> to vector<1x32xf32>
    %646 = vector.extract_strided_slice %644 {offsets = [8, 0], sizes = [1, 32], strides = [1, 1]} : vector<16x32xf32> to vector<1x32xf32>
    %647 = tpu.concatenate %645, %646 in 0 : vector<1x32xf32>, vector<1x32xf32> -> vector<2x32xf32>
    %648 = arith.truncf %647 : vector<2x32xf32> to vector<2x32xbf16>
    %c0_226 = arith.constant 0 : index
    %c0_227 = arith.constant 0 : index
    %649 = vector.load %arg16[%c0_226, %c0_227] : memref<32x128xbf16, #tpu.memory_space<vmem>>, vector<32x128xbf16>
    %cst_228 = arith.constant dense<0.000000e+00> : vector<2x128xf32>
    %650 = tpu.matmul %648, %649, %cst_228 {dimension_numbers = #tpu.dot_dimension_numbers<[1], [0], [0], [1], [0, 0, 1, 1], [], []>} : vector<2x32xbf16>, vector<32x128xbf16>, vector<2x128xf32> -> vector<2x128xf32>
    %c0_229 = arith.constant 0 : index
    %c0_230 = arith.constant 0 : index
    %651 = vector.load %arg17[%c0_229, %c0_230] : memref<1x128xf32, #tpu.memory_space<vmem>>, vector<1x128xf32>
    %652 = vector.broadcast %651 : vector<1x128xf32> to vector<2x128xf32>
    %653 = arith.addf %650, %652 : vector<2x128xf32>
    %c0_231 = arith.constant 0 : index
    %c0_232 = arith.constant 0 : index
    %654 = vector.load %arg18[%c0_231, %c0_232] : memref<2x128xf32, #tpu.memory_space<vmem>>, vector<2x128xf32>
    tpu.vector_store %arg18[%c0_231, %c0_232], %653 {strides = array<i32>} : memref<2x128xf32, #tpu.memory_space<vmem>>, vector<2x128xf32>,
    return
  }
}

</mosaic_0001>

<bundles_post_ra>
// kernel: multilabel_forward.1
= control target key start
LH: loop header
LB: loop body
LE: loop exit
PB: predicated region body
PF: predicated region fallthrough
CT: control target
= control target key end

     0   :  { %vm64_vm0 = vcmask 261120   ;;  %v4239_v14 = vmov 0.0   ;;  %vm4240_vm1 = vmmov 0   ;;  %s4243_s30 = smov 120   ;;  %vm185_vm2 = vcmask 64512   ;;  %s4245_s21 = smov 80   ;;  %s5076_s0 = inlined_call_operand.vmem [shape: f32[16,32], index: 0, kind: input, shape index: {}]   ;;  %s5077_s4 = inlined_call_operand.vmem [shape: bf16[2,32,96], index: 4, kind: input, shape index: {}]   ;;  %s5078_s2 = inlined_call_operand.vmem [shape: f32[1,32], index: 2, kind: input, shape index: {}]   ;;  %s5079_s3 = inlined_call_operand.vmem [shape: f32[1,32], index: 3, kind: input, shape index: {}]   ;;  %s5080_s5 = inlined_call_operand.vmem [shape: f32[2,1,96], index: 5, kind: input, shape index: {}]   ;;  %s5081_s1 = inlined_call_operand.vmem [shape: f32[2,8,8], index: 1, kind: input, shape index: {}]   ;;  %s5082_s6 = inlined_call_operand.vmem [shape: bf16[2,32,32], index: 6, kind: input, shape index: {}]   ;;  %s5083_s7 = inlined_call_operand.vmem [shape: f32[2,1,32], index: 7, kind: input, shape index: {}]   ;;  %s5084_s10 = inlined_call_operand.vmem [shape: bf16[2,32,128], index: 10, kind: input, shape index: {}]   ;;  %s5085_s8 = inlined_call_operand.vmem [shape: f32[2,1,32], index: 8, kind: input, shape index: {}]   ;;  %s5086_s9 = inlined_call_operand.vmem [shape: f32[2,1,32], index: 9, kind: input, shape index: {}]   ;;  %s5087_s12 = inlined_call_operand.vmem [shape: bf16[2,128,32], index: 12, kind: input, shape index: {}]   ;;  %s5088_s11 = inlined_call_operand.vmem [shape: f32[2,1,128], index: 11, kind: input, shape index: {}]   ;;  %s5089_s13 = inlined_call_operand.vmem [shape: f32[2,1,32], index: 13, kind: input, shape index: {}]   ;;  %s5090_s14 = inlined_call_operand.vmem [shape: f32[2,1,32], index: 14, kind: input, shape index: {}]   ;;  %s5091_s15 = inlined_call_operand.vmem [shape: f32[2,1,32], index: 15, kind: input, shape index: {}]   ;;  %s5092_s16 = inlined_call_operand.vmem [shape: bf16[32,128], index: 16, kind: input, shape index: {}]   ;;  %s5093_s17 = inlined_call_operand.vmem [shape: f32[1,128], index: 17, kind: input, shape index: {}]   ;;  %s5094_s18 = inlined_call_operand.vmem [shape: f32[2,128], index: 18, kind: output, shape index: {}]  }
   0x1   :  { %5103 = sst [smem:[#allocation2_spill]] %s5076_s0  ;;  %3738 = vmatprep.subr.bf16.mxu1 %v4239_v14  ;;  %3742 = vmatprep.mubr.msk.bf16.mxu1 %vm4240_vm1, %v4239_v14  ;;  %v3475_v29 = vld [vmem:[%s5079_s3] ss:$0 sm:$0xff]  ;;  %s4241_s3 = smov 88   ;;  %vm251_vm3 = vcmask 1043456   ;;  %vm3400_vm4 = vcmask 1040384  }
   0x2   :  { %5104 = sst [smem:[#allocation3_spill]] %s5077_s4  ;;  %s5106_s29 = sld [smem:[#allocation2_spill]]  ;;  %3752 = vmatprep.subr.bf16.mxu0 %v4239_v14  ;;  %3754 = vmatprep.mubr.msk.bf16.mxu0 %vm4240_vm1, %v4239_v14  ;;  %v3476_v34 = vld [vmem:[%s5080_s5] ss:$0 sm:$0xff] }
   0x3   :  { %5105 = sst [smem:[#allocation4_spill]] %s5078_s2  ;;  %s5107_s20 = sld [smem:[#allocation3_spill]]  ;;  %v4413_v48 = vld [vmem:[%s5081_s1] sm:$0xff] }
   0x4   :  { %s5108_s24 = sld [smem:[#allocation4_spill]]  ;;  %s4244_s4 = smov 64  }
   0x5   :  { %s4246_s22 = smov 112   ;;  %s4247_s2 = smov 56  }
   0x6   :  { %s5101_s27 = smov 72   ;;  %s5099_s28 = smov 104  }
   0x7   :  { %s4250_s0 = smov 48   ;;  %s5111_s23 = smov 40  }
   0x8   :  { %v60_v0 = vld [vmem:[%s5106_s29] sm:$0xff]  ;;  %v61_v1 = vld [vmem:[%s5106_s29 + $0x8] sm:$0xff]  ;;  %s4242_s29 = smov 96  }
   0x9   :  { %v65_v2 = vsel %vm64_vm0, %v60_v0, 0.0  ;;  %v68_v3 = vsel %vm64_vm0, %v61_v1, 0.0  ;;  %v4119_v15 = vld [vmem:[%s5107_s20] sm:$0xff]   ;;  %v4120_v16 = vld [vmem:[%s5107_s20 + $0x8] sm:$0xff]  }
   0xa   :  { %66 = vadd.xlane.f32.xlu0 %v65_v2  ;;  %3739 = vmatpush3.bf16.msra.mxu1 %v4119_v15  ;;  %v3474_v25 = vld [vmem:[%s5108_s24] ss:$0 sm:$0xff]  ;;  %s5097_s24 = smov 40  }
   0xb   :  { %3740 = vmatprep.subr.bf16.mxu1 %v4239_v14 }
   0xe   :  { %69 = vadd.xlane.f32.xlu0 %v68_v3  ;;  %3741 = vmatpush3.bf16.msra.mxu1 %v4120_v16 }
   0xf   :  { %3746 = vmatprep.subr.bf16.mxu1 %v4239_v14 }
  0x97   :  { %v67_v4 = vpop.xlane.xlu0 %66 }
  0x98   :  { %v72_v5 = vmul.f32 0.03125, %v67_v4 }
  0x9a   :  { %v74_v6 = vsub.f32 %v60_v0, %v72_v5 }
  0x9b   :  { %v70_v7 = vpop.xlane.xlu0 %69 }
  0x9c   :  { %v73_v8 = vmul.f32 0.03125, %v70_v7  ;;  %v76_v9 = vmul.f32 %v74_v6, %v74_v6 }
  0x9e   :  { %v75_v10 = vsub.f32 %v61_v1, %v73_v8  ;;  %v78_v11 = vsel %vm64_vm0, %v76_v9, 0.0 }
  0x9f   :  { %79 = vadd.xlane.f32.xlu1 %v78_v11 }
  0xa0   :  { %v77_v12 = vmul.f32 %v75_v10, %v75_v10 }
  0xa2   :  { %v81_v13 = vsel %vm64_vm0, %v77_v12, 0.0 }
  0xa3   :  { %82 = vadd.xlane.f32.xlu1 %v81_v13 }
 0x12c   :  { %v80_v17 = vpop.xlane.xlu1 %79 }
 0x12d   :  { %v84_v18 = vmul.f32 0.03125, %v80_v17 }
 0x12f   :  { %v86_v19 = vadd.f32 1e-12, %v84_v18 }
 0x130   :  { %v83_v20 = vpop.xlane.xlu1 %82 }
 0x131   :  { %4145 = vrsqrt.f32 %v86_v19  ;;  %v85_v21 = vmul.f32 0.03125, %v83_v20 }
 0x133   :  { %v87_v22 = vadd.f32 1e-12, %v85_v21  ;;  %v176_v21 = vld [vmem:[%s5082_s6] sm:$0xf] }
 0x135   :  { %4147 = vrsqrt.f32 %v87_v22  ;;  %v4443_v22 = vsel %vm251_vm3, %v176_v21, 0 }
 0x13b   :  { %v4146_v23 = vpop.eup %4145 }
 0x13c   :  { %v90_v24 = vmul.f32 %v4146_v23, %v74_v6  ;;  %v177_v23 = vld [vmem:[%s5082_s6 + $0x4] sm:$0xf] }
 0x13e   :  { %v98_v28 = vmul.f32 %v3474_v25, %v90_v24  ;;  %v4450_v24 = vsel %vm251_vm3, %v177_v23, 0 }
 0x13f   :  { %v4148_v26 = vpop.eup %4147 }
 0x140   :  { %v91_v27 = vmul.f32 %v4148_v26, %v75_v10  ;;  %v4377_v31 = vadd.f32 %v3475_v29, %v98_v28 }
 0x142   :  { %v99_v30 = vmul.f32 %v3474_v25, %v91_v27 }
 0x144   :  { %v4379_v32 = vadd.f32 %v3475_v29, %v99_v30 }
 0x146   :  { %v108_v33 = vpack.c.bf16 %v4379_v32, %v4377_v31 }
 0x148   :  { %3743 = vmatmul.mubr.msk.bf16.vlgmr.msra.gmra.mrb[0].mxu1 %vm64_vm0, %v108_v33 }
 0x149   :  { %3748 = vmatprep.mubr.msk.bf16.mxu1 %vm4240_vm1, %v4239_v14 }
 0x21b   :  { %v169_v35 = vpop.f32.mrb[0].mxu1 }
 0x21c   :  { %v170_v36 = vadd.f32 %v3476_v34, %v169_v35  ;;  %v3744_v37 = vpop.f32.mrb[1].mxu1 }
 0x21d   :  { %v172_v38 = vpop.f32.mrb[2].mxu1 }
 0x21e   :  { %v4389_v39 = vpack.c.bf16 %v170_v36, %v170_v36  ;;  %v4391_v40 = vadd.f32 %v3476_v34, %v172_v38  ;;  %v3745_v41 = vpop.f32.mrb[3].mxu1 }
 0x220   :  { %298 = vrot.lane.b32.xlu1 %v4389_v39, %s4241_s3  ;;  %183 = vrot.lane.b32.xlu0 %v4389_v39, %s4242_s29 }
 0x224   :  { %296 = vrot.lane.b32.xlu1 %v4389_v39, %s4243_s30 }
 0x292   :  { %v184_v42 = vpop.permute.xlu0 %183  ;;  %v299_v44 = vpop.permute.xlu1 %298 }
 0x293   :  { %v190_v43 = vsel %vm185_vm2, %v184_v42, 0  ;;  %v304_v45 = vsel %vm185_vm2, %v299_v44, 0 }
 0x294   :  { %3747 = vmatpush3.bf16.xpose.msra.mxu1 %v190_v43 }
 0x295   :  { %3758 = vmatprep.subr.bf16.mxu1 %v4239_v14 }
 0x296   :  { %v297_v46 = vpop.permute.xlu1 %296 }
 0x29b   :  { %3749 = vmatmul.mubr.msk.bf16.vlgmr.msra.gmra.mrb[4].mxu1 %vm185_vm2, %v4389_v39 }
 0x29c   :  { %3759 = vmatpush3.bf16.xpose.msra.mxu1 %v304_v45  ;;  %3760 = vmatprep.mubr.msk.bf16.mxu1 %vm4240_vm1, %v4239_v14 }
 0x29d   :  { %3770 = vmatprep.subr.bf16.mxu1 %v4239_v14 }
 0x2a3   :  { %3761 = vmatmul.mubr.msk.bf16.vlgmr.msra.gmra.mrb[8].mxu1 %vm185_vm2, %v297_v46 }
 0x2a4   :  { %3772 = vmatprep.mubr.msk.bf16.mxu1 %vm4240_vm1, %v4239_v14  ;;  %3771 = vmatpush3.bf16.msra.mxu1 %v4450_v24 }
 0x2a5   :  { %3782 = vmatprep.subr.bf16.mxu1 %v4239_v14 }
 0x36e   :  { %v226_v47 = vpop.f32.mrb[4].mxu1 }
 0x36f   :  { %v232_v49 = vmul.f32 0.35355338, %v226_v47  ;;  %v3750_v50 = vpop.f32.mrb[5].mxu1 }
 0x370   :  { %v229_v51 = vpop.f32.mrb[6].mxu1 }
 0x371   :  { %v3751_v52 = vpop.f32.mrb[7].mxu1  ;;  %v233_v53 = vadd.f32 %v232_v49, %v4413_v48 }
 0x373   :  { %v234_v54 = vsel %vm185_vm2, %v233_v53, -inf }
 0x374   :  { %235 = vmax.xlane.f32.xlu1 %v234_v54 }
 0x376   :  { %v340_v55 = vpop.f32.mrb[8].mxu1 }
 0x377   :  { %v346_v56 = vmul.f32 0.35355338, %v340_v55  ;;  %v3762_v57 = vpop.f32.mrb[9].mxu1 }
 0x378   :  { %v343_v58 = vpop.f32.mrb[10].mxu1 }
 0x379   :  { %v3763_v59 = vpop.f32.mrb[11].mxu1  ;;  %v347_v60 = vadd.f32 %v346_v56, %v4413_v48 }
 0x37b   :  { %v348_v61 = vsel %vm185_vm2, %v347_v60, -inf }
 0x37c   :  { %349 = vmax.xlane.f32.xlu0 %v348_v61 }
 0x385   :  { %246 = vrot.lane.b32.xlu1 %v4389_v39, %s4244_s4 }
 0x389   :  { %503 = vrot.lane.b32.xlu1 %v4389_v39, %s4245_s21 }
 0x38d   :  { %501 = vrot.lane.b32.xlu1 %v4389_v39, %s4246_s22 }
 0x401   :  { %v236_v62 = vpop.xlane.xlu1 %235 }
 0x402   :  { %v237_v63 = vsub.f32 %v233_v53, %v236_v62 }
 0x404   :  { %v238_v0 = vmul.f32 1.442695, %v237_v63 }
 0x405   :  { %v247_v1 = vpop.permute.xlu1 %246 }
 0x406   :  { %4149 = vpow2.f32 %v238_v0  ;;  %v253_v2 = vsel %vm251_vm3, %v247_v1, 0 }
 0x407   :  { %3753 = vmatpush3.bf16.msra.mxu0 %v253_v2 }
 0x408   :  { %3764 = vmatprep.subr.bf16.mxu0 %v4239_v14 }
 0x409   :  { %v350_v3 = vpop.xlane.xlu0 %349  ;;  %v504_v30 = vpop.permute.xlu1 %503 }
 0x40a   :  { %v351_v4 = vsub.f32 %v347_v60, %v350_v3  ;;  %v509_v37 = vsel %vm185_vm2, %v504_v30, 0 }
 0x40c   :  { %v352_v5 = vmul.f32 1.442695, %v351_v4 }
 0x40d   :  { %v502_v41 = vpop.permute.xlu1 %501 }
 0x40e   :  { %4151 = vpow2.f32 %v352_v5 }
 0x410   :  { %v4150_v6 = vpop.eup %4149 }
 0x411   :  { %v240_v7 = vsel %vm185_vm2, %v4150_v6, 0.0 }
 0x412   :  { %241 = vadd.xlane.f32.xlu0 %v240_v7 }
 0x418   :  { %v4152_v8 = vpop.eup %4151 }
 0x419   :  { %v354_v9 = vsel %vm185_vm2, %v4152_v8, 0.0 }
 0x41a   :  { %355 = vadd.xlane.f32.xlu0 %v354_v9  ;;  %v178_v9 = vld [vmem:[%s5082_s6 + $0x8] sm:$0xf] }
 0x430   :  { %360 = vrot.lane.b32.xlu0 %v4389_v39, %s4247_s2 }
 0x49f   :  { %v242_v10 = vpop.xlane.xlu0 %241 }
 0x4a0   :  { %4153 = vrcp.f32 %v242_v10  ;;  %v4491_v10 = vsel %vm251_vm3, %v178_v9, 0 }
 0x4a7   :  { %v356_v11 = vpop.xlane.xlu0 %355 }
 0x4a8   :  { %4155 = vrcp.f32 %v356_v11 }
 0x4aa   :  { %v4154_v12 = vpop.eup %4153 }
 0x4ab   :  { %v244_v13 = vmul.f32 %v4154_v12, %v4150_v6  ;;  %v361_v15 = vpop.permute.xlu0 %360 }
 0x4ac   :  { %v366_v17 = vsel %vm251_vm3, %v361_v15, 0 }
 0x4ad   :  { %v245_v16 = vpack.c.bf16 %v244_v13, %v244_v13 }
 0x4af   :  { %3755 = vmatmul.mubr.msk.bf16.vlgmr.msra.gmra.mrb[0].mxu0 %vm185_vm2, %v245_v16 }
 0x4b0   :  { %3765 = vmatpush3.bf16.msra.mxu0 %v366_v17  ;;  %3766 = vmatprep.mubr.msk.bf16.mxu0 %vm4240_vm1, %v4239_v14 }
 0x4b1   :  { %3776 = vmatprep.subr.bf16.mxu0 %v4239_v14 }
 0x4b2   :  { %v4156_v18 = vpop.eup %4155 }
 0x4b3   :  { %v358_v19 = vmul.f32 %v4156_v18, %v4152_v8 }
 0x4b5   :  { %v359_v20 = vpack.c.bf16 %v358_v19, %v358_v19 }
 0x4b7   :  { %3767 = vmatmul.mubr.msk.bf16.vlgmr.msra.gmra.mrb[4].mxu0 %vm185_vm2, %v359_v20 }
 0x4b8   :  { %3778 = vmatprep.mubr.msk.bf16.mxu0 %vm4240_vm1, %v4239_v14  ;;  %3777 = vmatpush3.bf16.msra.mxu0 %v4443_v22 }
 0x4b9   :  { %3788 = vmatprep.subr.bf16.mxu0 %v4239_v14 }
 0x582   :  { %v289_v25 = vpop.f32.mrb[0].mxu0 }
 0x583   :  { %v295_v26 = vpack.c.bf16 %v289_v25, %v289_v25  ;;  %v3756_v27 = vpop.f32.mrb[1].mxu0 }
 0x584   :  { %v292_v28 = vpop.f32.mrb[2].mxu0 }
 0x585   :  { %v3757_v29 = vpop.f32.mrb[3].mxu0  ;;  %3779 = vmatmul.mubr.msk.bf16.vlgmr.msra.gmra.mrb[8].mxu0 %vm185_vm2, %v295_v26  ;;  %v4504_v26 = vpack.c.bf16 %v4391_v40, %v4391_v40 }
 0x586   :  { %3790 = vmatprep.mubr.msk.bf16.mxu0 %vm4240_vm1, %v4239_v14 }
 0x58a   :  { %v402_v33 = vpop.f32.mrb[4].mxu0 }
 0x58b   :  { %v408_v34 = vpack.c.bf16 %v402_v33, %v402_v33  ;;  %v3768_v35 = vpop.f32.mrb[5].mxu0 }
 0x58c   :  { %v405_v36 = vpop.f32.mrb[6].mxu0 }
 0x58d   :  { %v3769_v38 = vpop.f32.mrb[7].mxu0  ;;  %3773 = vmatmul.mubr.msk.bf16.vlgmr.msra.gmra.mrb[12].mxu1 %vm185_vm2, %v408_v34 }
 0x58e   :  { %3783 = vmatpush3.bf16.xpose.msra.mxu1 %v509_v37  ;;  %3784 = vmatprep.mubr.msk.bf16.mxu1 %vm4240_vm1, %v4239_v14 }
 0x58f   :  { %3794 = vmatprep.subr.bf16.mxu1 %v4239_v14 }
 0x595   :  { %3785 = vmatmul.mubr.msk.bf16.vlgmr.msra.gmra.mrb[16].mxu1 %vm185_vm2, %v502_v41 }
 0x596   :  { %3796 = vmatprep.mubr.msk.bf16.mxu1 %vm4240_vm1, %v4239_v14  ;;  %3795 = vmatpush3.bf16.msra.mxu1 %v4491_v10 }
 0x597   :  { %3806 = vmatprep.subr.bf16.mxu1 %v4239_v14 }
 0x658   :  { %v495_v42 = vpop.f32.mrb[8].mxu0 }
 0x659   :  { %v3780_v43 = vpop.f32.mrb[9].mxu0 }
 0x65a   :  { %v498_v44 = vpop.f32.mrb[10].mxu0 }
 0x65b   :  { %v3781_v45 = vpop.f32.mrb[11].mxu0 }
 0x660   :  { %v449_v46 = vpop.f32.mrb[12].mxu1 }
 0x661   :  { %v4466_v47 = vadd.f32 %v495_v42, %v449_v46  ;;  %v3774_v49 = vpop.f32.mrb[13].mxu1 }
 0x662   :  { %v452_v50 = vpop.f32.mrb[14].mxu1 }
 0x663   :  { %v3775_v51 = vpop.f32.mrb[15].mxu1  ;;  %v179_v50 = vld [vmem:[%s5082_s6 + $0xc] sm:$0xf] }
 0x664   :  { %v4538_v51 = vsel %vm251_vm3, %v179_v50, 0 }
 0x668   :  { %v545_v52 = vpop.f32.mrb[16].mxu1 }
 0x669   :  { %v551_v53 = vmul.f32 0.35355338, %v545_v52  ;;  %v3786_v54 = vpop.f32.mrb[17].mxu1 }
 0x66a   :  { %v548_v55 = vpop.f32.mrb[18].mxu1 }
 0x66b   :  { %v3787_v56 = vpop.f32.mrb[19].mxu1  ;;  %v552_v57 = vadd.f32 %v551_v53, %v4413_v48 }
 0x66d   :  { %v553_v58 = vsel %vm185_vm2, %v552_v57, -inf }
 0x66e   :  { %554 = vmax.xlane.f32.xlu1 %v553_v58 }
 0x67f   :  { %663 = vrot.lane.b32.xlu1 %v4389_v39, %s5101_s27 }
 0x683   :  { %661 = vrot.lane.b32.xlu1 %v4389_v39, %s5099_s28 }
 0x6fb   :  { %v555_v59 = vpop.xlane.xlu1 %554 }
 0x6fc   :  { %v556_v60 = vsub.f32 %v552_v57, %v555_v59  ;;  %v4548_v57 = vld [vmem:[%s5081_s1 + $0x8] sm:$0xff] }
 0x6fe   :  { %v557_v61 = vmul.f32 1.442695, %v556_v60 }
 0x6ff   :  { %v664_v5 = vpop.permute.xlu1 %663 }
 0x700   :  { %4157 = vpow2.f32 %v557_v61  ;;  %v669_v7 = vsel %vm185_vm2, %v664_v5, 0 }
 0x703   :  { %v662_v8 = vpop.permute.xlu1 %661 }
 0x70a   :  { %v4158_v62 = vpop.eup %4157 }
 0x70b   :  { %v559_v63 = vsel %vm185_vm2, %v4158_v62, 0.0 }
 0x70c   :  { %560 = vadd.xlane.f32.xlu0 %v559_v63 }
 0x722   :  { %565 = vrot.lane.b32.xlu0 %v4389_v39, %s4250_s0 }
 0x799   :  { %v561_v0 = vpop.xlane.xlu0 %560 }
 0x79a   :  { %4159 = vrcp.f32 %v561_v0 }
 0x79d   :  { %v566_v1 = vpop.permute.xlu0 %565 }
 0x79e   :  { %v571_v2 = vsel %vm251_vm3, %v566_v1, 0 }
 0x79f   :  { %3789 = vmatpush3.bf16.msra.mxu0 %v571_v2 }
 0x7a0   :  { %3800 = vmatprep.subr.bf16.mxu0 %v4239_v14 }
 0x7a4   :  { %v4160_v3 = vpop.eup %4159 }
 0x7a5   :  { %v563_v4 = vmul.f32 %v4160_v3, %v4158_v62 }
 0x7a7   :  { %v564_v6 = vpack.c.bf16 %v563_v4, %v563_v4 }
 0x7a9   :  { %3791 = vmatmul.mubr.msk.bf16.vlgmr.msra.gmra.mrb[12].mxu0 %vm185_vm2, %v564_v6 }
 0x7aa   :  { %3801 = vmatpush3.bf16.xpose.msra.mxu0 %v669_v7  ;;  %3802 = vmatprep.mubr.msk.bf16.mxu0 %vm4240_vm1, %v4239_v14 }
 0x7ab   :  { %3812 = vmatprep.subr.bf16.mxu0 %v4239_v14 }
 0x7b1   :  { %3803 = vmatmul.mubr.msk.bf16.vlgmr.msra.gmra.mrb[16].mxu0 %vm185_vm2, %v662_v8 }
 0x7b2   :  { %3814 = vmatprep.mubr.msk.bf16.mxu0 %vm4240_vm1, %v4239_v14  ;;  %3813 = vmatpush3.bf16.msra.mxu0 %v4538_v51 }
 0x7b3   :  { %3824 = vmatprep.subr.bf16.mxu0 %v4239_v14 }
 0x87c   :  { %v607_v11 = vpop.f32.mrb[12].mxu0 }
 0x87d   :  { %v613_v12 = vpack.c.bf16 %v607_v11, %v607_v11  ;;  %v3792_v13 = vpop.f32.mrb[13].mxu0 }
 0x87e   :  { %v610_v15 = vpop.f32.mrb[14].mxu0 }
 0x87f   :  { %v3793_v16 = vpop.f32.mrb[15].mxu0  ;;  %3797 = vmatmul.mubr.msk.bf16.vlgmr.msra.gmra.mrb[20].mxu1 %vm185_vm2, %v613_v12 }
 0x880   :  { %3808 = vmatprep.mubr.msk.bf16.mxu1 %vm4240_vm1, %v4239_v14 }
 0x884   :  { %v705_v17 = vpop.f32.mrb[16].mxu0 }
 0x885   :  { %v711_v18 = vmul.f32 0.35355338, %v705_v17  ;;  %v3804_v19 = vpop.f32.mrb[17].mxu0 }
 0x886   :  { %v708_v20 = vpop.f32.mrb[18].mxu0 }
 0x887   :  { %v3805_v21 = vpop.f32.mrb[19].mxu0  ;;  %v712_v23 = vadd.f32 %v711_v18, %v4413_v48 }
 0x889   :  { %v713_v25 = vsel %vm185_vm2, %v712_v23, -inf }
 0x88a   :  { %714 = vmax.xlane.f32.xlu0 %v713_v25 }
 0x8a0   :  { %725 = vrot.lane.b32.xlu0 %v4389_v39, %s5097_s24 }
 0x8a4   :  { %938 = vrot.lane.b32.xlu0 %v4504_v26, %s4241_s3 }
 0x917   :  { %v715_v27 = vpop.xlane.xlu0 %714 }
 0x918   :  { %v716_v28 = vsub.f32 %v712_v23, %v715_v27 }
 0x91a   :  { %v717_v29 = vmul.f32 1.442695, %v716_v28 }
 0x91b   :  { %v726_v30 = vpop.permute.xlu0 %725 }
 0x91c   :  { %4161 = vpow2.f32 %v717_v29  ;;  %v731_v48 = vsel %vm251_vm3, %v726_v30, 0 }
 0x91d   :  { %3807 = vmatpush3.bf16.msra.mxu1 %v731_v48 }
 0x91e   :  { %3818 = vmatprep.subr.bf16.mxu1 %v4239_v14 }
 0x91f   :  { %v939_v46 = vpop.permute.xlu0 %938 }
 0x926   :  { %v4162_v33 = vpop.eup %4161 }
 0x927   :  { %v719_v39 = vsel %vm185_vm2, %v4162_v33, 0.0 }
 0x928   :  { %720 = vadd.xlane.f32.xlu1 %v719_v39 }
 0x939   :  { %825 = vrot.lane.b32.xlu1 %v4504_v26, %s4242_s29 }
 0x93d   :  { %936 = vrot.lane.b32.xlu1 %v4504_v26, %s4243_s30 }
 0x952   :  { %v654_v40 = vpop.f32.mrb[20].mxu1 }
 0x953   :  { %v4516_v34 = vadd.f32 %v654_v40, %v4466_v47  ;;  %v3798_v35 = vpop.f32.mrb[21].mxu1  ;;  %v944_v47 = vsel %vm185_vm2, %v939_v46, 0 }
 0x954   :  { %v657_v36 = vpop.f32.mrb[22].mxu1 }
 0x955   :  { %v3799_v37 = vpop.f32.mrb[23].mxu1 }
 0x9b5   :  { %v721_v38 = vpop.xlane.xlu1 %720 }
 0x9b6   :  { %4163 = vrcp.f32 %v721_v38 }
 0x9b9   :  { %v826_v43 = vpop.permute.xlu1 %825 }
 0x9ba   :  { %v831_v45 = vsel %vm185_vm2, %v826_v43, 0 }
 0x9bd   :  { %v937_v49 = vpop.permute.xlu1 %936 }
 0x9c0   :  { %v4164_v41 = vpop.eup %4163 }
 0x9c1   :  { %v723_v42 = vmul.f32 %v4164_v41, %v4162_v33 }
 0x9c3   :  { %v724_v44 = vpack.c.bf16 %v723_v42, %v723_v42 }
 0x9c5   :  { %3809 = vmatmul.mubr.msk.bf16.vlgmr.msra.gmra.mrb[24].mxu1 %vm185_vm2, %v724_v44 }
 0x9c6   :  { %3819 = vmatpush3.bf16.xpose.msra.mxu1 %v831_v45  ;;  %3820 = vmatprep.mubr.msk.bf16.mxu1 %vm4240_vm1, %v4239_v14 }
 0x9c7   :  { %3830 = vmatprep.subr.bf16.mxu1 %v4239_v14 }
 0x9cd   :  { %3821 = vmatmul.mubr.msk.bf16.vlgmr.msra.gmra.mrb[28].mxu1 %vm185_vm2, %v4504_v26 }
 0x9ce   :  { %3831 = vmatpush3.bf16.xpose.msra.mxu1 %v944_v47  ;;  %3832 = vmatprep.mubr.msk.bf16.mxu1 %vm4240_vm1, %v4239_v14 }
 0x9cf   :  { %3842 = vmatprep.subr.bf16.mxu1 %v4239_v14 }
 0x9d5   :  { %3833 = vmatmul.mubr.msk.bf16.vlgmr.msra.gmra.mrb[32].mxu1 %vm185_vm2, %v937_v49 }
 0x9d6   :  { %3843 = vmatpush3.bf16.msra.mxu1 %v4450_v24  ;;  %3844 = vmatprep.mubr.msk.bf16.mxu1 %vm4240_vm1, %v4239_v14 }
 0x9d7   :  { %3854 = vmatprep.subr.bf16.mxu1 %v4239_v14 }
 0xa98   :  { %v767_v52 = vpop.f32.mrb[24].mxu1 }
 0xa99   :  { %v773_v53 = vpack.c.bf16 %v767_v52, %v767_v52  ;;  %v3810_v54 = vpop.f32.mrb[25].mxu1 }
 0xa9a   :  { %v770_v24 = vpop.f32.mrb[26].mxu1 }
 0xa9b   :  { %v3811_v55 = vpop.f32.mrb[27].mxu1  ;;  %3815 = vmatmul.mubr.msk.bf16.vlgmr.msra.gmra.mrb[20].mxu0 %vm185_vm2, %v773_v53 }
 0xa9c   :  { %3826 = vmatprep.mubr.msk.bf16.mxu0 %vm4240_vm1, %v4239_v14 }
 0xaa0   :  { %v867_v56 = vpop.f32.mrb[28].mxu1 }
 0xaa1   :  { %v873_v58 = vmul.f32 0.35355338, %v867_v56  ;;  %v3822_v59 = vpop.f32.mrb[29].mxu1 }
 0xaa2   :  { %v870_v60 = vpop.f32.mrb[30].mxu1 }
 0xaa3   :  { %v3823_v61 = vpop.f32.mrb[31].mxu1  ;;  %v874_v62 = vadd.f32 %v4548_v57, %v873_v58 }
 0xaa5   :  { %v875_v63 = vsel %vm185_vm2, %v874_v62, -inf }
 0xaa6   :  { %876 = vmax.xlane.f32.xlu0 %v875_v63 }
 0xaa8   :  { %v980_v0 = vpop.f32.mrb[32].mxu1 }
 0xaa9   :  { %v986_v1 = vmul.f32 0.35355338, %v980_v0  ;;  %v3834_v2 = vpop.f32.mrb[33].mxu1 }
 0xaaa   :  { %v983_v3 = vpop.f32.mrb[34].mxu1 }
 0xaab   :  { %v3835_v4 = vpop.f32.mrb[35].mxu1  ;;  %v987_v5 = vadd.f32 %v4548_v57, %v986_v1 }
 0xaad   :  { %v988_v6 = vsel %vm185_vm2, %v987_v5, -inf }
 0xaae   :  { %989 = vmax.xlane.f32.xlu1 %v988_v6 }
 0xabf   :  { %1000 = vrot.lane.b32.xlu1 %v4504_v26, %s4247_s2 }
 0xac3   :  { %1137 = vrot.lane.b32.xlu1 %v4504_v26, %s4245_s21 }
 0xac7   :  { %1135 = vrot.lane.b32.xlu1 %v4504_v26, %s4246_s22 }
 0xb33   :  { %v877_v7 = vpop.xlane.xlu0 %876 }
 0xb34   :  { %v878_v8 = vsub.f32 %v874_v62, %v877_v7 }
 0xb36   :  { %v879_v9 = vmul.f32 1.442695, %v878_v8 }
 0xb38   :  { %4165 = vpow2.f32 %v879_v9 }
 0xb3b   :  { %v990_v11 = vpop.xlane.xlu1 %989 }
 0xb3c   :  { %v991_v12 = vsub.f32 %v987_v5, %v990_v11 }
 0xb3e   :  { %v992_v13 = vmul.f32 1.442695, %v991_v12 }
 0xb3f   :  { %v1001_v39 = vpop.permute.xlu1 %1000 }
 0xb40   :  { %4167 = vpow2.f32 %v992_v13 }
 0xb42   :  { %v4166_v15 = vpop.eup %4165 }
 0xb43   :  { %v881_v16 = vsel %vm185_vm2, %v4166_v15, 0.0  ;;  %v1138_v45 = vpop.permute.xlu1 %1137 }
 0xb44   :  { %882 = vadd.xlane.f32.xlu0 %v881_v16  ;;  %v1143_v50 = vsel %vm185_vm2, %v1138_v45, 0 }
 0xb47   :  { %v1136_v53 = vpop.permute.xlu1 %1135 }
 0xb4a   :  { %v4168_v17 = vpop.eup %4167 }
 0xb4b   :  { %v994_v18 = vsel %vm185_vm2, %v4168_v17, 0.0 }
 0xb4c   :  { %995 = vadd.xlane.f32.xlu0 %v994_v18 }
 0xb62   :  { %887 = vrot.lane.b32.xlu0 %v4504_v26, %s4244_s4 }
 0xb6e   :  { %v814_v19 = vpop.f32.mrb[20].mxu0 }
 0xb6f   :  { %v4565_v20 = vadd.f32 %v814_v19, %v4516_v34  ;;  %v3816_v21 = vpop.f32.mrb[21].mxu0  ;;  %v1006_v34 = vsel %vm251_vm3, %v1001_v39, 0 }
 0xb70   :  { %v817_v23 = vpop.f32.mrb[22].mxu0 }
 0xb71   :  { %v3817_v25 = vpop.f32.mrb[23].mxu0 }
 0xbd1   :  { %v883_v27 = vpop.xlane.xlu0 %882 }
 0xbd2   :  { %4169 = vrcp.f32 %v883_v27 }
 0xbd9   :  { %v996_v28 = vpop.xlane.xlu0 %995 }
 0xbda   :  { %4171 = vrcp.f32 %v996_v28 }
 0xbdc   :  { %v4170_v29 = vpop.eup %4169 }
 0xbdd   :  { %v885_v30 = vmul.f32 %v4170_v29, %v4166_v15  ;;  %v888_v48 = vpop.permute.xlu0 %887 }
 0xbde   :  { %v893_v33 = vsel %vm251_vm3, %v888_v48, 0 }
 0xbdf   :  { %3825 = vmatpush3.bf16.msra.mxu0 %v893_v33  ;;  %v886_v40 = vpack.c.bf16 %v885_v30, %v885_v30  ;;  %v3505_v30 = vld [vmem:[%s5083_s7] ss:$0 sm:$0xff] }
 0xbe0   :  { %3836 = vmatprep.subr.bf16.mxu0 %v4239_v14  ;;  %v1456_v48 = vadd.f32 %v3505_v30, %v4565_v20 }
 0xbe2   :  { %3827 = vmatmul.mubr.msk.bf16.vlgmr.msra.gmra.mrb[24].mxu0 %vm185_vm2, %v886_v40 }
 0xbe3   :  { %3837 = vmatpush3.bf16.msra.mxu0 %v1006_v34  ;;  %3838 = vmatprep.mubr.msk.bf16.mxu0 %vm4240_vm1, %v4239_v14 }
 0xbe4   :  { %v4172_v35 = vpop.eup %4171  ;;  %3848 = vmatprep.subr.bf16.mxu0 %v4239_v14 }
 0xbe5   :  { %v998_v36 = vmul.f32 %v4172_v35, %v4168_v17 }
 0xbe7   :  { %v999_v37 = vpack.c.bf16 %v998_v36, %v998_v36 }
 0xbea   :  { %3839 = vmatmul.mubr.msk.bf16.vlgmr.msra.gmra.mrb[28].mxu0 %vm185_vm2, %v999_v37  ;;  %v1458_v37 = vadd.f32 %v1456_v48, %v4377_v31 }
 0xbeb   :  { %3849 = vmatpush3.bf16.msra.mxu0 %v4443_v22  ;;  %3850 = vmatprep.mubr.msk.bf16.mxu0 %vm4240_vm1, %v4239_v14 }
 0xbec   :  { %3860 = vmatprep.subr.bf16.mxu0 %v4239_v14 }
 0xcb5   :  { %v929_v38 = vpop.f32.mrb[24].mxu0 }
 0xcb6   :  { %v935_v41 = vpack.c.bf16 %v929_v38, %v929_v38  ;;  %v3828_v42 = vpop.f32.mrb[25].mxu0  ;;  %v1462_v38 = vsel %vm64_vm0, %v1458_v37, 0.0 }
 0xcb7   :  { %v932_v43 = vpop.f32.mrb[26].mxu0 }
 0xcb8   :  { %v3829_v44 = vpop.f32.mrb[27].mxu0  ;;  %3851 = vmatmul.mubr.msk.bf16.vlgmr.msra.gmra.mrb[32].mxu0 %vm185_vm2, %v935_v41 }
 0xcb9   :  { %3862 = vmatprep.mubr.msk.bf16.mxu0 %vm4240_vm1, %v4239_v14 }
 0xcbd   :  { %v1042_v46 = vpop.f32.mrb[28].mxu0 }
 0xcbe   :  { %v1048_v47 = vpack.c.bf16 %v1042_v46, %v1042_v46  ;;  %v3840_v49 = vpop.f32.mrb[29].mxu0 }
 0xcbf   :  { %v1045_v22 = vpop.f32.mrb[30].mxu0 }
 0xcc0   :  { %v3841_v52 = vpop.f32.mrb[31].mxu0  ;;  %3845 = vmatmul.mubr.msk.bf16.vlgmr.msra.gmra.mrb[36].mxu1 %vm185_vm2, %v1048_v47 }
 0xcc1   :  { %3855 = vmatpush3.bf16.xpose.msra.mxu1 %v1143_v50  ;;  %3856 = vmatprep.mubr.msk.bf16.mxu1 %vm4240_vm1, %v4239_v14 }
 0xcc2   :  { %3866 = vmatprep.subr.bf16.mxu1 %v4239_v14 }
 0xcc8   :  { %3857 = vmatmul.mubr.msk.bf16.vlgmr.msra.gmra.mrb[40].mxu1 %vm185_vm2, %v1136_v53 }
 0xcc9   :  { %3867 = vmatpush3.bf16.msra.mxu1 %v4491_v10  ;;  %3868 = vmatprep.mubr.msk.bf16.mxu1 %vm4240_vm1, %v4239_v14 }
 0xcca   :  { %3878 = vmatprep.subr.bf16.mxu1 %v4239_v14 }
 0xd8b   :  { %v1129_v54 = vpop.f32.mrb[32].mxu0 }
 0xd8c   :  { %v3852_v24 = vpop.f32.mrb[33].mxu0 }
 0xd8d   :  { %v1132_v55 = vpop.f32.mrb[34].mxu0 }
 0xd8e   :  { %v3853_v56 = vpop.f32.mrb[35].mxu0 }
 0xd93   :  { %v1086_v58 = vpop.f32.mrb[36].mxu1 }
 0xd94   :  { %v4592_v59 = vadd.f32 %v1129_v54, %v1086_v58  ;;  %v3846_v60 = vpop.f32.mrb[37].mxu1 }
 0xd95   :  { %v1089_v61 = vpop.f32.mrb[38].mxu1 }
 0xd96   :  { %v3847_v62 = vpop.f32.mrb[39].mxu1 }
 0xd9b   :  { %v1179_v63 = vpop.f32.mrb[40].mxu1 }
 0xd9c   :  { %v1185_v0 = vmul.f32 0.35355338, %v1179_v63  ;;  %v3858_v1 = vpop.f32.mrb[41].mxu1 }
 0xd9d   :  { %v1182_v2 = vpop.f32.mrb[42].mxu1 }
 0xd9e   :  { %v3859_v10 = vpop.f32.mrb[43].mxu1  ;;  %v1186_v3 = vadd.f32 %v4548_v57, %v1185_v0 }
 0xda0   :  { %v1187_v4 = vsel %vm185_vm2, %v1186_v3, -inf }
 0xda1   :  { %1188 = vmax.xlane.f32.xlu0 %v1187_v4 }
 0xdb7   :  { %1199 = vrot.lane.b32.xlu0 %v4504_v26, %s4250_s0 }
 0xdbb   :  { %1292 = vrot.lane.b32.xlu0 %v4504_v26, %s5099_s28 }
 0xe2e   :  { %v1189_v5 = vpop.xlane.xlu0 %1188 }
 0xe2f   :  { %v1190_v6 = vsub.f32 %v1186_v3, %v1189_v5 }
 0xe31   :  { %v1191_v7 = vmul.f32 1.442695, %v1190_v6 }
 0xe32   :  { %v1200_v8 = vpop.permute.xlu0 %1199 }
 0xe33   :  { %4173 = vpow2.f32 %v1191_v7  ;;  %v1205_v9 = vsel %vm251_vm3, %v1200_v8, 0 }
 0xe34   :  { %3861 = vmatpush3.bf16.msra.mxu0 %v1205_v9 }
 0xe35   :  { %3872 = vmatprep.subr.bf16.mxu0 %v4239_v14 }
 0xe36   :  { %v1293_v21 = vpop.permute.xlu0 %1292 }
 0xe3d   :  { %v4174_v11 = vpop.eup %4173 }
 0xe3e   :  { %v1193_v12 = vsel %vm185_vm2, %v4174_v11, 0.0 }
 0xe3f   :  { %1194 = vadd.xlane.f32.xlu1 %v1193_v12 }
 0xe50   :  { %1294 = vrot.lane.b32.xlu1 %v4504_v26, %s5101_s27  ;;  %s5110_s27 = smov 104  }
 0xecc   :  { %v1195_v13 = vpop.xlane.xlu1 %1194 }
 0xecd   :  { %4175 = vrcp.f32 %v1195_v13  ;;  %v4121_v13 = vld [vmem:[%s5084_s10] sm:$0xff]  }
 0xed0   :  { %v1295_v17 = vpop.permute.xlu1 %1294 }
 0xed1   :  { %v1300_v19 = vsel %vm185_vm2, %v1295_v17, 0 }
 0xed7   :  { %v4176_v15 = vpop.eup %4175 }
 0xed8   :  { %v1197_v16 = vmul.f32 %v4176_v15, %v4174_v11 }
 0xeda   :  { %v1198_v18 = vpack.c.bf16 %v1197_v16, %v1197_v16 }
 0xedc   :  { %3863 = vmatmul.mubr.msk.bf16.vlgmr.msra.gmra.mrb[36].mxu0 %vm185_vm2, %v1198_v18 }
 0xedd   :  { %3873 = vmatpush3.bf16.xpose.msra.mxu0 %v1300_v19  ;;  %3874 = vmatprep.mubr.msk.bf16.mxu0 %vm4240_vm1, %v4239_v14 }
 0xede   :  { %3884 = vmatprep.subr.bf16.mxu0 %v4239_v14 }
 0xee4   :  { %3875 = vmatmul.mubr.msk.bf16.vlgmr.msra.gmra.mrb[40].mxu0 %vm185_vm2, %v1293_v21 }
 0xee5   :  { %3885 = vmatpush3.bf16.msra.mxu0 %v4538_v51  ;;  %3886 = vmatprep.mubr.msk.bf16.mxu0 %vm4240_vm1, %v4239_v14 }
 0xee6   :  { %3898 = vmatprep.subr.bf16.mxu0 %v4239_v14 }
 0xfaf   :  { %v1241_v23 = vpop.f32.mrb[36].mxu0 }
 0xfb0   :  { %v1247_v25 = vpack.c.bf16 %v1241_v23, %v1241_v23  ;;  %v3864_v27 = vpop.f32.mrb[37].mxu0 }
 0xfb1   :  { %v1244_v28 = vpop.f32.mrb[38].mxu0  ;;  %v3506_v27 = vld [vmem:[%s5085_s8] ss:$0 sm:$0xff] }
 0xfb2   :  { %v3865_v29 = vpop.f32.mrb[39].mxu0  ;;  %3869 = vmatmul.mubr.msk.bf16.vlgmr.msra.gmra.mrb[44].mxu1 %vm185_vm2, %v1247_v25 }
 0xfb3   :  { %3880 = vmatprep.mubr.msk.bf16.mxu1 %vm4240_vm1, %v4239_v14 }
 0xfb7   :  { %v1336_v51 = vpop.f32.mrb[40].mxu0 }
 0xfb8   :  { %v1342_v33 = vmul.f32 0.35355338, %v1336_v51  ;;  %v3876_v39 = vpop.f32.mrb[41].mxu0  ;;  %v3507_v51 = vld [vmem:[%s5086_s9] ss:$0 sm:$0xff] }
 0xfb9   :  { %v1339_v40 = vpop.f32.mrb[42].mxu0 }
 0xfba   :  { %v3877_v34 = vpop.f32.mrb[43].mxu0  ;;  %v1343_v35 = vadd.f32 %v4548_v57, %v1342_v33 }
 0xfbb   :  { %v4123_v34 = vld [vmem:[%s5087_s12] sm:$0xff]  }
 0xfbc   :  { %v1344_v36 = vsel %vm185_vm2, %v1343_v35, -inf }
 0xfbd   :  { %1345 = vmax.xlane.f32.xlu1 %v1344_v36  ;;  %v4125_v36 = vld [vmem:[%s5087_s12 + $0x10] sm:$0xff]  }
 0xfc1   :  { %1463 = vadd.xlane.f32.xlu1 %v1462_v38  ;;  %v4127_v38 = vld [vmem:[%s5087_s12 + $0x20] sm:$0xff]  }
0x104a   :  { %v1346_v41 = vpop.xlane.xlu1 %1345 }
0x104b   :  { %v1347_v42 = vsub.f32 %v1343_v35, %v1346_v41  ;;  %v4124_v35 = vld [vmem:[%s5087_s12 + $0x8] sm:$0xff]  }
0x104c   :  { %v4128_v41 = vld [vmem:[%s5087_s12 + $0x28] sm:$0xff]  }
0x104d   :  { %v1348_v43 = vmul.f32 1.442695, %v1347_v42  ;;  %v4129_v42 = vld [vmem:[%s5087_s12 + $0x30] sm:$0xff]  }
0x104f   :  { %4177 = vpow2.f32 %v1348_v43  ;;  %v4130_v43 = vld [vmem:[%s5087_s12 + $0x38] sm:$0xff]  }
0x1059   :  { %v4178_v44 = vpop.eup %4177 }
0x105a   :  { %v1350_v20 = vsel %vm185_vm2, %v4178_v44, 0.0 }
0x105b   :  { %1351 = vadd.xlane.f32.xlu0 %v1350_v20 }
0x1071   :  { %1356 = vrot.lane.b32.xlu0 %v4504_v26, %s5097_s24  ;;  %s5109_s24 = smov 72  }
0x1085   :  { %v1285_v57 = vpop.f32.mrb[44].mxu1 }
0x1086   :  { %v1291_v45 = vadd.f32 %v1285_v57, %v4592_v59  ;;  %v3870_v46 = vpop.f32.mrb[45].mxu1  ;;  %v1464_v59 = vpop.xlane.xlu1 %1463 }
0x1087   :  { %v1288_v31 = vpop.f32.mrb[46].mxu1  ;;  %v1468_v60 = vmul.f32 0.03125, %v1464_v59 }
0x1088   :  { %v3871_v47 = vpop.f32.mrb[47].mxu1 }
0x1089   :  { %v1470_v1 = vsub.f32 %v1458_v37, %v1468_v60  ;;  %v4126_v37 = vld [vmem:[%s5087_s12 + $0x18] sm:$0xff]  }
0x108b   :  { %v1472_v5 = vmul.f32 %v1470_v1, %v1470_v1 }
0x108d   :  { %v1474_v6 = vsel %vm64_vm0, %v1472_v5, 0.0 }
0x10e8   :  { %v1352_v49 = vpop.xlane.xlu0 %1351 }
0x10e9   :  { %4179 = vrcp.f32 %v1352_v49 }
0x10ec   :  { %v1357_v22 = vpop.permute.xlu0 %1356 }
0x10ed   :  { %v1362_v50 = vsel %vm251_vm3, %v1357_v22, 0 }
0x10ee   :  { %3879 = vmatpush3.bf16.msra.mxu1 %v1362_v50 }
0x10ef   :  { %3890 = vmatprep.subr.bf16.mxu1 %v4239_v14 }
0x10f3   :  { %v4180_v52 = vpop.eup %4179 }
0x10f4   :  { %v1354_v53 = vmul.f32 %v4180_v52, %v4178_v44  ;;  %v3508_v44 = vld [vmem:[%s5088_s11] ss:$0 sm:$0xff] }
0x10f6   :  { %v1355_v54 = vpack.c.bf16 %v1354_v53, %v1354_v53 }
0x10f8   :  { %3881 = vmatmul.mubr.msk.bf16.vlgmr.msra.gmra.mrb[48].mxu1 %vm185_vm2, %v1355_v54 }
0x10f9   :  { %3894 = vmatprep.mubr.msk.bf16.mxu1 %vm4240_vm1, %v4239_v14  ;;  %3891 = vmatpush3.bf16.msra.mxu1 %v4121_v13 }
0x10fa   :  { %3892 = vmatprep.subr.bf16.mxu1 %v4239_v14 }
0x11cb   :  { %v1398_v26 = vpop.f32.mrb[48].mxu1 }
0x11cc   :  { %v1404_v24 = vpack.c.bf16 %v1398_v26, %v1398_v26  ;;  %v3882_v55 = vpop.f32.mrb[49].mxu1 }
0x11cd   :  { %v1401_v56 = vpop.f32.mrb[50].mxu1 }
0x11ce   :  { %v3883_v58 = vpop.f32.mrb[51].mxu1  ;;  %3887 = vmatmul.mubr.msk.bf16.vlgmr.msra.gmra.mrb[44].mxu0 %vm185_vm2, %v1404_v24 }
0x11cf   :  { %3914 = vmatprep.mubr.msk.bf16.mxu0 %vm4240_vm1, %v4239_v14  ;;  %3899 = vmatpush3.bf16.msra.mxu0 %v4123_v34 }
0x11d0   :  { %3900 = vmatprep.subr.bf16.mxu0 %v4239_v14 }
0x11d3   :  { %3901 = vmatpush3.bf16.msra.mxu0 %v4124_v35 }
0x11d4   :  { %3902 = vmatprep.subr.bf16.mxu0 %v4239_v14 }
0x11d7   :  { %3903 = vmatpush3.bf16.msra.mxu0 %v4125_v36  ;;  %v3521_v36 = vld [vmem:[%s5090_s14] ss:$0 sm:$0xff] }
0x11d8   :  { %3904 = vmatprep.subr.bf16.mxu0 %v4239_v14 }
0x11db   :  { %3905 = vmatpush3.bf16.msra.mxu0 %v4126_v37 }
0x11dc   :  { %3906 = vmatprep.subr.bf16.mxu0 %v4239_v14 }
0x11df   :  { %3907 = vmatpush3.bf16.msra.mxu0 %v4127_v38 }
0x11e0   :  { %3908 = vmatprep.subr.bf16.mxu0 %v4239_v14 }
0x11e3   :  { %3909 = vmatpush3.bf16.msra.mxu0 %v4128_v41 }
0x11e4   :  { %3910 = vmatprep.subr.bf16.mxu0 %v4239_v14 }
0x11e7   :  { %3911 = vmatpush3.bf16.msra.mxu0 %v4129_v42  ;;  %v3522_v42 = vld [vmem:[%s5091_s15] ss:$0 sm:$0xff] }
0x11e8   :  { %3912 = vmatprep.subr.bf16.mxu0 %v4239_v14 }
0x11eb   :  { %3913 = vmatpush3.bf16.msra.mxu0 %v4130_v43 }
0x11ec   :  { %3944 = vmatprep.subr.bf16.mxu0 %v4239_v14 }
0x12a1   :  { %v1442_v61 = vpop.f32.mrb[44].mxu0 }
0x12a2   :  { %v1448_v62 = vadd.f32 %v1442_v61, %v1291_v45  ;;  %v3888_v63 = vpop.f32.mrb[45].mxu0 }
0x12a3   :  { %v1445_v0 = vpop.f32.mrb[46].mxu0 }
0x12a4   :  { %v1457_v2 = vadd.f32 %v3505_v30, %v1448_v62  ;;  %v3889_v10 = vpop.f32.mrb[47].mxu0 }
0x12a5   :  { %v3512_v10 = vld [vmem:[%s5089_s13] ss:$0 sm:$0xff] }
0x12a6   :  { %v1459_v3 = vadd.f32 %v1457_v2, %v4379_v32  ;;  %v4122_v32 = vld [vmem:[%s5084_s10 + $0x8] sm:$0xff]  }
0x12a7   :  { %3893 = vmatpush3.bf16.msra.mxu1 %v4122_v32 }
0x12a8   :  { %v1465_v4 = vsel %vm64_vm0, %v1459_v3, 0.0  ;;  %3918 = vmatprep.subr.bf16.mxu1 %v4239_v14 }
0x12a9   :  { %1466 = vadd.xlane.f32.xlu1 %v1465_v4 }
0x12ad   :  { %1475 = vadd.xlane.f32.xlu1 %v1474_v6 }
0x1336   :  { %v1467_v7 = vpop.xlane.xlu1 %1466 }
0x1337   :  { %v1469_v8 = vmul.f32 0.03125, %v1467_v7 }
0x1339   :  { %v1471_v9 = vsub.f32 %v1459_v3, %v1469_v8 }
0x133a   :  { %v1476_v15 = vpop.xlane.xlu1 %1475 }
0x133b   :  { %v1473_v11 = vmul.f32 %v1471_v9, %v1471_v9  ;;  %v1480_v16 = vmul.f32 0.03125, %v1476_v15 }
0x133d   :  { %v1477_v12 = vsel %vm64_vm0, %v1473_v11, 0.0  ;;  %v1482_v17 = vadd.f32 1e-12, %v1480_v16 }
0x133e   :  { %1478 = vadd.xlane.f32.xlu1 %v1477_v12 }
0x133f   :  { %4181 = vrsqrt.f32 %v1482_v17 }
0x1349   :  { %v4182_v23 = vpop.eup %4181 }
0x134a   :  { %v1486_v25 = vmul.f32 %v4182_v23, %v1470_v1 }
0x134c   :  { %v1494_v29 = vmul.f32 %v3506_v27, %v1486_v25 }
0x134e   :  { %v4656_v33 = vadd.f32 %v3507_v51, %v1494_v29  ;;  %v4132_v29 = vld [vmem:[%s5107_s20 + $0x18] sm:$0xff]  }
0x13cb   :  { %v1479_v18 = vpop.xlane.xlu1 %1478 }
0x13cc   :  { %v1481_v19 = vmul.f32 0.03125, %v1479_v18 }
0x13ce   :  { %v1483_v21 = vadd.f32 1e-12, %v1481_v19 }
0x13d0   :  { %4183 = vrsqrt.f32 %v1483_v21 }
0x13da   :  { %v4184_v28 = vpop.eup %4183 }
0x13db   :  { %v1487_v30 = vmul.f32 %v4184_v28, %v1471_v9  ;;  %v4131_v28 = vld [vmem:[%s5107_s20 + $0x10] sm:$0xff]  }
0x13dd   :  { %v1495_v48 = vmul.f32 %v3506_v27, %v1487_v30 }
0x13df   :  { %v4658_v39 = vadd.f32 %v3507_v51, %v1495_v48 }
0x13e1   :  { %v1504_v40 = vpack.c.bf16 %v4658_v39, %v4656_v33 }
0x13e3   :  { %3895 = vmatmul.mubr.msk.bf16.vlgmr.msra.gmra.mrb[52].mxu1 %vm64_vm0, %v1504_v40 }
0x13e4   :  { %3922 = vmatprep.mubr.msk.bf16.mxu1 %vm4240_vm1, %v4239_v14  ;;  %3919 = vmatpush3.bf16.msra.mxu1 %v4131_v28 }
0x13e5   :  { %3920 = vmatprep.subr.bf16.mxu1 %v4239_v14 }
0x13e8   :  { %3921 = vmatpush3.bf16.msra.mxu1 %v4132_v29 }
0x13e9   :  { %3926 = vmatprep.subr.bf16.mxu1 %v4239_v14 }
0x14b6   :  { %v1565_v20 = vpop.f32.mrb[52].mxu1 }
0x14b7   :  { %v1566_v57 = vadd.f32 %v3508_v44, %v1565_v20  ;;  %v3896_v45 = vpop.f32.mrb[53].mxu1 }
0x14b8   :  { %v1568_v46 = vpop.f32.mrb[54].mxu1  ;;  %v3528_v45 = vld [vmem:[%s5080_s5 + $0x1] ss:$0 sm:$0xff] }
0x14b9   :  { %v1572_v31 = vmul.f32 %v1566_v57, %v1566_v57  ;;  %v1569_v47 = vadd.f32 %v3508_v44, %v1568_v46  ;;  %v3897_v49 = vpop.f32.mrb[55].mxu1 }
0x14bb   :  { %v1574_v22 = vmul.f32 %v1572_v31, %v1566_v57  ;;  %v1573_v50 = vmul.f32 %v1569_v47, %v1569_v47 }
0x14bd   :  { %v1576_v52 = vmul.f32 0.044715, %v1574_v22  ;;  %v1575_v53 = vmul.f32 %v1573_v50, %v1569_v47 }
0x14bf   :  { %v1578_v54 = vadd.f32 %v1576_v52, %v1566_v57  ;;  %v1577_v26 = vmul.f32 0.044715, %v1575_v53 }
0x14c1   :  { %v1580_v24 = vmul.f32 0.7978846, %v1578_v54  ;;  %v1579_v55 = vadd.f32 %v1577_v26, %v1569_v47 }
0x14c3   :  { %4185 = vtanh.f32 %v1580_v24  ;;  %v1581_v56 = vmul.f32 0.7978846, %v1579_v55 }
0x14c5   :  { %4187 = vtanh.f32 %v1581_v56 }
0x14cd   :  { %v4186_v58 = vpop.eup %4185 }
0x14ce   :  { %v1584_v59 = vadd.f32 1.0, %v4186_v58 }
0x14cf   :  { %v4188_v60 = vpop.eup %4187 }
0x14d0   :  { %v1586_v61 = vmul.f32 0.5, %v1584_v59  ;;  %v1585_v62 = vadd.f32 1.0, %v4188_v60 }
0x14d2   :  { %v1587_v63 = vmul.f32 0.5, %v1585_v62  ;;  %v1588_v0 = vmul.f32 %v1586_v61, %v1566_v57  ;;  %v4756_v61 = vld [vmem:[%s5081_s1] sm:$0xff] }
0x14d4   :  { %v1589_v1 = vmul.f32 %v1587_v63, %v1569_v47 }
0x14d6   :  { %v1590_v2 = vpack.c.bf16 %v1589_v1, %v1588_v0 }
0x14d8   :  { %3915 = vmatmul.mubr.bf16.vlgmr.msra.gmra.mrb[48].mxu0 %v1590_v2 }
0x14d9   :  { %3946 = vmatprep.mubr.msk.bf16.mxu0 %vm4240_vm1, %v4239_v14 }
0x15ab   :  { %v1696_v3 = vpop.f32.mrb[48].mxu0 }
0x15ac   :  { %v1697_v4 = vadd.f32 %v3512_v10, %v1696_v3  ;;  %v3916_v5 = vpop.f32.mrb[49].mxu0 }
0x15ad   :  { %v1699_v6 = vpop.f32.mrb[50].mxu0 }
0x15ae   :  { %v1700_v7 = vadd.f32 %v3512_v10, %v1699_v6  ;;  %v3917_v8 = vpop.f32.mrb[51].mxu0  ;;  %v1703_v9 = vadd.f32 %v1697_v4, %v4656_v33 }
0x15b0   :  { %v1707_v11 = vsel %vm64_vm0, %v1703_v9, 0.0  ;;  %v1704_v12 = vadd.f32 %v1700_v7, %v4658_v39 }
0x15b1   :  { %1708 = vadd.xlane.f32.xlu1 %v1707_v11 }
0x15b2   :  { %v1710_v13 = vsel %vm64_vm0, %v1704_v12, 0.0 }
0x15b3   :  { %1711 = vadd.xlane.f32.xlu0 %v1710_v13 }
0x163e   :  { %v1709_v32 = vpop.xlane.xlu1 %1708 }
0x163f   :  { %v1713_v15 = vmul.f32 0.03125, %v1709_v32 }
0x1640   :  { %v1712_v16 = vpop.xlane.xlu0 %1711 }
0x1641   :  { %v1715_v17 = vsub.f32 %v1703_v9, %v1713_v15  ;;  %v1714_v18 = vmul.f32 0.03125, %v1712_v16 }
0x1643   :  { %v1716_v19 = vsub.f32 %v1704_v12, %v1714_v18  ;;  %v1717_v21 = vmul.f32 %v1715_v17, %v1715_v17 }
0x1645   :  { %v1719_v23 = vsel %vm64_vm0, %v1717_v21, 0.0  ;;  %v1718_v25 = vmul.f32 %v1716_v19, %v1716_v19 }
0x1646   :  { %1720 = vadd.xlane.f32.xlu1 %v1719_v23 }
0x1647   :  { %v1722_v27 = vsel %vm64_vm0, %v1718_v25, 0.0 }
0x164a   :  { %1723 = vadd.xlane.f32.xlu1 %v1722_v27 }
0x16d3   :  { %v1721_v30 = vpop.xlane.xlu1 %1720 }
0x16d4   :  { %v1725_v51 = vmul.f32 0.03125, %v1721_v30 }
0x16d6   :  { %v1727_v48 = vadd.f32 1e-12, %v1725_v51 }
0x16d7   :  { %v1724_v33 = vpop.xlane.xlu1 %1723 }
0x16d8   :  { %4189 = vrsqrt.f32 %v1727_v48  ;;  %v1726_v39 = vmul.f32 0.03125, %v1724_v33 }
0x16da   :  { %v1728_v40 = vadd.f32 1e-12, %v1726_v39  ;;  %v3533_v39 = vld [vmem:[%s5082_s6 + $0x14] sm:$0xf] }
0x16dc   :  { %4191 = vrsqrt.f32 %v1728_v40  ;;  %v4790_v40 = vsel %vm251_vm3, %v3533_v39, 0 }
0x16e2   :  { %v4190_v34 = vpop.eup %4189 }
0x16e3   :  { %v1731_v35 = vmul.f32 %v4190_v34, %v1715_v17 }
0x16e5   :  { %v1739_v38 = vmul.f32 %v3521_v36, %v1731_v35 }
0x16e6   :  { %v4192_v37 = vpop.eup %4191 }
0x16e7   :  { %v1732_v41 = vmul.f32 %v4192_v37, %v1716_v19  ;;  %v4725_v44 = vadd.f32 %v3522_v42, %v1739_v38 }
0x16e9   :  { %v1740_v43 = vmul.f32 %v3521_v36, %v1732_v41  ;;  %v3532_v36 = vld [vmem:[%s5082_s6 + $0x10] sm:$0xf] }
0x16ea   :  { %v4798_v41 = vsel %vm251_vm3, %v3532_v36, 0 }
0x16eb   :  { %v4727_v20 = vadd.f32 %v3522_v42, %v1740_v43 }
0x16ed   :  { %v1749_v57 = vpack.c.bf16 %v4727_v20, %v4725_v44 }
0x16ef   :  { %3923 = vmatmul.mubr.msk.bf16.vlgmr.msra.gmra.mrb[56].mxu1 %vm64_vm0, %v1749_v57 }
0x16f0   :  { %3928 = vmatprep.mubr.msk.bf16.mxu1 %vm4240_vm1, %v4239_v14 }
0x17c2   :  { %v1812_v46 = vpop.f32.mrb[56].mxu1 }
0x17c3   :  { %v1813_v31 = vadd.f32 %v3528_v45, %v1812_v46  ;;  %v3924_v47 = vpop.f32.mrb[57].mxu1 }
0x17c4   :  { %v1815_v49 = vpop.f32.mrb[58].mxu1 }
0x17c5   :  { %v4737_v22 = vpack.c.bf16 %v1813_v31, %v1813_v31  ;;  %v4739_v50 = vadd.f32 %v3528_v45, %v1815_v49  ;;  %v3925_v52 = vpop.f32.mrb[59].mxu1 }
0x17c7   :  { %1888 = vrot.lane.b32.xlu0 %v4737_v22, %s4244_s4  ;;  %1826 = vrot.lane.b32.xlu1 %v4737_v22, %s4242_s29  ;;  %v4852_v36 = vpack.c.bf16 %v4739_v50, %v4739_v50 }
0x1839   :  { %v1827_v53 = vpop.permute.xlu1 %1826  ;;  %v1889_v26 = vpop.permute.xlu0 %1888 }
0x183a   :  { %v1832_v54 = vsel %vm185_vm2, %v1827_v53, 0  ;;  %v1894_v24 = vsel %vm251_vm3, %v1889_v26, 0 }
0x183b   :  { %3927 = vmatpush3.bf16.xpose.msra.mxu1 %v1832_v54 }
0x183c   :  { %3932 = vmatprep.subr.bf16.mxu1 %v4239_v14 }
0x1842   :  { %3929 = vmatmul.mubr.msk.bf16.vlgmr.msra.gmra.mrb[60].mxu1 %vm185_vm2, %v4737_v22 }
0x1843   :  { %3933 = vmatpush3.bf16.msra.mxu1 %v1894_v24  ;;  %3934 = vmatprep.mubr.msk.bf16.mxu1 %vm4240_vm1, %v4239_v14 }
0x1844   :  { %3938 = vmatprep.subr.bf16.mxu1 %v4239_v14 }
0x1915   :  { %v1868_v55 = vpop.f32.mrb[60].mxu1 }
0x1916   :  { %v1874_v56 = vmul.f32 0.35355338, %v1868_v55  ;;  %v3930_v58 = vpop.f32.mrb[61].mxu1 }
0x1917   :  { %v1871_v59 = vpop.f32.mrb[62].mxu1 }
0x1918   :  { %v3931_v60 = vpop.f32.mrb[63].mxu1  ;;  %v1875_v62 = vadd.f32 %v4756_v61, %v1874_v56 }
0x191a   :  { %v1876_v63 = vsel %vm185_vm2, %v1875_v62, -inf }
0x191b   :  { %1877 = vmax.xlane.f32.xlu1 %v1876_v63 }
0x19a8   :  { %v1878_v0 = vpop.xlane.xlu1 %1877 }
0x19a9   :  { %v1879_v1 = vsub.f32 %v1875_v62, %v1878_v0 }
0x19ab   :  { %v1880_v2 = vmul.f32 1.442695, %v1879_v1 }
0x19ad   :  { %4193 = vpow2.f32 %v1880_v2 }
0x19b7   :  { %v4194_v10 = vpop.eup %4193 }
0x19b8   :  { %v1882_v3 = vsel %vm185_vm2, %v4194_v10, 0.0 }
0x19b9   :  { %1883 = vadd.xlane.f32.xlu0 %v1882_v3 }
0x19cf   :  { %1939 = vrot.lane.b32.xlu0 %v4737_v22, %s4241_s3 }
0x19d3   :  { %1937 = vrot.lane.b32.xlu0 %v4737_v22, %s4243_s30 }
0x1a46   :  { %v1884_v4 = vpop.xlane.xlu0 %1883 }
0x1a47   :  { %4195 = vrcp.f32 %v1884_v4 }
0x1a4a   :  { %v1940_v7 = vpop.permute.xlu0 %1939 }
0x1a4b   :  { %v1945_v9 = vsel %vm185_vm2, %v1940_v7, 0 }
0x1a4e   :  { %v1938_v11 = vpop.permute.xlu0 %1937 }
0x1a51   :  { %v4196_v5 = vpop.eup %4195 }
0x1a52   :  { %v1886_v6 = vmul.f32 %v4196_v5, %v4194_v10 }
0x1a54   :  { %v1887_v8 = vpack.c.bf16 %v1886_v6, %v1886_v6 }
0x1a56   :  { %3935 = vmatmul.mubr.msk.bf16.vlgmr.msra.gmra.mrb[64].mxu1 %vm185_vm2, %v1887_v8 }
0x1a57   :  { %3939 = vmatpush3.bf16.xpose.msra.mxu1 %v1945_v9  ;;  %3940 = vmatprep.mubr.msk.bf16.mxu1 %vm4240_vm1, %v4239_v14 }
0x1a58   :  { %3950 = vmatprep.subr.bf16.mxu1 %v4239_v14 }
0x1a5e   :  { %3941 = vmatmul.mubr.msk.bf16.vlgmr.msra.gmra.mrb[68].mxu1 %vm185_vm2, %v1938_v11 }
0x1a5f   :  { %3952 = vmatprep.mubr.msk.bf16.mxu1 %vm4240_vm1, %v4239_v14  ;;  %3951 = vmatpush3.bf16.msra.mxu1 %v4790_v40 }
0x1a60   :  { %3962 = vmatprep.subr.bf16.mxu1 %v4239_v14 }
0x1b29   :  { %v1930_v12 = vpop.f32.mrb[64].mxu1 }
0x1b2a   :  { %v3936_v13 = vpop.f32.mrb[65].mxu1  ;;  %v1936_v43 = vpack.c.bf16 %v1930_v12, %v1930_v12 }
0x1b2b   :  { %v1933_v32 = vpop.f32.mrb[66].mxu1 }
0x1b2c   :  { %v3937_v15 = vpop.f32.mrb[67].mxu1 }
0x1b31   :  { %v1981_v16 = vpop.f32.mrb[68].mxu1 }
0x1b32   :  { %v1987_v17 = vmul.f32 0.35355338, %v1981_v16  ;;  %v3942_v18 = vpop.f32.mrb[69].mxu1 }
0x1b33   :  { %v1984_v19 = vpop.f32.mrb[70].mxu1 }
0x1b34   :  { %v3943_v21 = vpop.f32.mrb[71].mxu1  ;;  %v1988_v23 = vadd.f32 %v4756_v61, %v1987_v17  ;;  %v3534_v19 = vld [vmem:[%s5082_s6 + $0x18] sm:$0xf] }
0x1b35   :  { %v4839_v21 = vsel %vm251_vm3, %v3534_v19, 0 }
0x1b36   :  { %v1989_v25 = vsel %vm185_vm2, %v1988_v23, -inf }
0x1b37   :  { %1990 = vmax.xlane.f32.xlu1 %v1989_v25 }
0x1b48   :  { %2001 = vrot.lane.b32.xlu1 %v4737_v22, %s4247_s2 }
0x1b4c   :  { %2144 = vrot.lane.b32.xlu1 %v4737_v22, %s4245_s21 }
0x1b50   :  { %2142 = vrot.lane.b32.xlu1 %v4737_v22, %s4246_s22 }
0x1bc4   :  { %v1991_v27 = vpop.xlane.xlu1 %1990 }
0x1bc5   :  { %v1992_v28 = vsub.f32 %v1988_v23, %v1991_v27 }
0x1bc7   :  { %v1993_v29 = vmul.f32 1.442695, %v1992_v28 }
0x1bc8   :  { %v2002_v30 = vpop.permute.xlu1 %2001 }
0x1bc9   :  { %4197 = vpow2.f32 %v1993_v29  ;;  %v2007_v51 = vsel %vm251_vm3, %v2002_v30, 0 }
0x1bca   :  { %3945 = vmatpush3.bf16.msra.mxu0 %v2007_v51 }
0x1bcb   :  { %3956 = vmatprep.subr.bf16.mxu0 %v4239_v14 }
0x1bcc   :  { %v2145_v45 = vpop.permute.xlu1 %2144 }
0x1bcd   :  { %v2150_v52 = vsel %vm185_vm2, %v2145_v45, 0 }
0x1bd0   :  { %v2143_v24 = vpop.permute.xlu1 %2142 }
0x1bd3   :  { %v4198_v48 = vpop.eup %4197 }
0x1bd4   :  { %v1995_v33 = vsel %vm185_vm2, %v4198_v48, 0.0 }
0x1bd5   :  { %1996 = vadd.xlane.f32.xlu0 %v1995_v33 }
0x1beb   :  { %2206 = vrot.lane.b32.xlu0 %v4737_v22, %s4250_s0 }
0x1c62   :  { %v1997_v34 = vpop.xlane.xlu0 %1996 }
0x1c63   :  { %4199 = vrcp.f32 %v1997_v34 }
0x1c66   :  { %v2207_v42 = vpop.permute.xlu0 %2206 }
0x1c67   :  { %v2212_v57 = vsel %vm251_vm3, %v2207_v42, 0 }
0x1c6d   :  { %v4200_v35 = vpop.eup %4199 }
0x1c6e   :  { %v1999_v37 = vmul.f32 %v4200_v35, %v4198_v48 }
0x1c70   :  { %v2000_v38 = vpack.c.bf16 %v1999_v37, %v1999_v37 }
0x1c72   :  { %3947 = vmatmul.mubr.msk.bf16.vlgmr.msra.gmra.mrb[52].mxu0 %vm185_vm2, %v2000_v38 }
0x1c73   :  { %3957 = vmatpush3.bf16.msra.mxu0 %v4798_v41  ;;  %3958 = vmatprep.mubr.msk.bf16.mxu0 %vm4240_vm1, %v4239_v14 }
0x1c74   :  { %3968 = vmatprep.subr.bf16.mxu0 %v4239_v14 }
0x1c7a   :  { %3959 = vmatmul.mubr.msk.bf16.vlgmr.msra.gmra.mrb[56].mxu0 %vm185_vm2, %v1936_v43 }
0x1c7b   :  { %3969 = vmatpush3.bf16.msra.mxu0 %v2212_v57  ;;  %3970 = vmatprep.mubr.msk.bf16.mxu0 %vm4240_vm1, %v4239_v14 }
0x1c7c   :  { %3980 = vmatprep.subr.bf16.mxu0 %v4239_v14 }
0x1d45   :  { %v2043_v46 = vpop.f32.mrb[52].mxu0 }
0x1d46   :  { %v2049_v31 = vpack.c.bf16 %v2043_v46, %v2043_v46  ;;  %v3948_v47 = vpop.f32.mrb[53].mxu0 }
0x1d47   :  { %v2046_v49 = vpop.f32.mrb[54].mxu0 }
0x1d48   :  { %v3949_v53 = vpop.f32.mrb[55].mxu0  ;;  %3953 = vmatmul.mubr.msk.bf16.vlgmr.msra.gmra.mrb[72].mxu1 %vm185_vm2, %v2049_v31 }
0x1d49   :  { %3963 = vmatpush3.bf16.xpose.msra.mxu1 %v2150_v52  ;;  %3964 = vmatprep.mubr.msk.bf16.mxu1 %vm4240_vm1, %v4239_v14 }
0x1d4a   :  { %3974 = vmatprep.subr.bf16.mxu1 %v4239_v14 }
0x1d4d   :  { %v2136_v54 = vpop.f32.mrb[56].mxu0 }
0x1d4e   :  { %v3960_v26 = vpop.f32.mrb[57].mxu0 }
0x1d4f   :  { %v2139_v55 = vpop.f32.mrb[58].mxu0 }
0x1d50   :  { %v3961_v56 = vpop.f32.mrb[59].mxu0  ;;  %3965 = vmatmul.mubr.msk.bf16.vlgmr.msra.gmra.mrb[76].mxu1 %vm185_vm2, %v2143_v24 }
0x1d51   :  { %3976 = vmatprep.mubr.msk.bf16.mxu1 %vm4240_vm1, %v4239_v14  ;;  %3975 = vmatpush3.bf16.msra.mxu1 %v4839_v21 }
0x1d52   :  { %3986 = vmatprep.subr.bf16.mxu1 %v4239_v14 }
0x1e1b   :  { %v2090_v58 = vpop.f32.mrb[72].mxu1 }
0x1e1c   :  { %v4818_v59 = vadd.f32 %v2136_v54, %v2090_v58  ;;  %v3954_v60 = vpop.f32.mrb[73].mxu1 }
0x1e1d   :  { %v2093_v62 = vpop.f32.mrb[74].mxu1 }
0x1e1e   :  { %v3955_v63 = vpop.f32.mrb[75].mxu1 }
0x1e23   :  { %v2186_v0 = vpop.f32.mrb[76].mxu1 }
0x1e24   :  { %v2192_v1 = vmul.f32 0.35355338, %v2186_v0  ;;  %v3966_v2 = vpop.f32.mrb[77].mxu1 }
0x1e25   :  { %v2189_v10 = vpop.f32.mrb[78].mxu1 }
0x1e26   :  { %v3967_v3 = vpop.f32.mrb[79].mxu1  ;;  %v2193_v4 = vadd.f32 %v4756_v61, %v2192_v1 }
0x1e28   :  { %v2194_v5 = vsel %vm185_vm2, %v2193_v4, -inf }
0x1e29   :  { %2195 = vmax.xlane.f32.xlu1 %v2194_v5 }
0x1eb6   :  { %v2196_v6 = vpop.xlane.xlu1 %2195 }
0x1eb7   :  { %v2197_v7 = vsub.f32 %v2193_v4, %v2196_v6  ;;  %v4896_v6 = vld [vmem:[%s5081_s1 + $0x8] sm:$0xff] }
0x1eb9   :  { %v2198_v8 = vmul.f32 1.442695, %v2197_v7 }
0x1ebb   :  { %4201 = vpow2.f32 %v2198_v8 }
0x1ec5   :  { %v4202_v9 = vpop.eup %4201 }
0x1ec6   :  { %v2200_v11 = vsel %vm185_vm2, %v4202_v9, 0.0 }
0x1ec7   :  { %2201 = vadd.xlane.f32.xlu0 %v2200_v11 }
0x1edd   :  { %2304 = vrot.lane.b32.xlu0 %v4737_v22, %s5109_s24 }
0x1ee1   :  { %2302 = vrot.lane.b32.xlu0 %v4737_v22, %s5110_s27 }
0x1f54   :  { %v2202_v12 = vpop.xlane.xlu0 %2201 }
0x1f55   :  { %4203 = vrcp.f32 %v2202_v12 }
0x1f58   :  { %v2305_v15 = vpop.permute.xlu0 %2304 }
0x1f59   :  { %v2310_v17 = vsel %vm185_vm2, %v2305_v15, 0 }
0x1f5c   :  { %v2303_v18 = vpop.permute.xlu0 %2302 }
0x1f5f   :  { %v4204_v13 = vpop.eup %4203 }
0x1f60   :  { %v2204_v32 = vmul.f32 %v4204_v13, %v4202_v9 }
0x1f62   :  { %v2205_v16 = vpack.c.bf16 %v2204_v32, %v2204_v32 }
0x1f64   :  { %3971 = vmatmul.mubr.msk.bf16.vlgmr.msra.gmra.mrb[60].mxu0 %vm185_vm2, %v2205_v16 }
0x1f65   :  { %3981 = vmatpush3.bf16.xpose.msra.mxu0 %v2310_v17  ;;  %3982 = vmatprep.mubr.msk.bf16.mxu0 %vm4240_vm1, %v4239_v14 }
0x1f66   :  { %3992 = vmatprep.subr.bf16.mxu0 %v4239_v14 }
0x1f6c   :  { %3983 = vmatmul.mubr.msk.bf16.vlgmr.msra.gmra.mrb[64].mxu0 %vm185_vm2, %v2303_v18 }
0x1f6d   :  { %3994 = vmatprep.mubr.msk.bf16.mxu0 %vm4240_vm1, %v4239_v14 }
0x2037   :  { %v2248_v23 = vpop.f32.mrb[60].mxu0 }
0x2038   :  { %v2254_v25 = vpack.c.bf16 %v2248_v23, %v2248_v23  ;;  %v3972_v27 = vpop.f32.mrb[61].mxu0 }
0x2039   :  { %v2251_v28 = vpop.f32.mrb[62].mxu0 }
0x203a   :  { %v3973_v29 = vpop.f32.mrb[63].mxu0  ;;  %3977 = vmatmul.mubr.msk.bf16.vlgmr.msra.gmra.mrb[80].mxu1 %vm185_vm2, %v2254_v25 }
0x203b   :  { %3988 = vmatprep.mubr.msk.bf16.mxu1 %vm4240_vm1, %v4239_v14 }
0x203f   :  { %v2346_v30 = vpop.f32.mrb[64].mxu0 }
0x2040   :  { %v2352_v51 = vmul.f32 0.35355338, %v2346_v30  ;;  %v3984_v48 = vpop.f32.mrb[65].mxu0 }
0x2041   :  { %v2349_v33 = vpop.f32.mrb[66].mxu0 }
0x2042   :  { %v3985_v39 = vpop.f32.mrb[67].mxu0  ;;  %v2353_v34 = vadd.f32 %v4756_v61, %v2352_v51 }
0x2044   :  { %v2354_v35 = vsel %vm185_vm2, %v2353_v34, -inf }
0x2045   :  { %2355 = vmax.xlane.f32.xlu1 %v2354_v35 }
0x2056   :  { %2366 = vrot.lane.b32.xlu1 %v4737_v22, %s5111_s23 }
0x205a   :  { %2464 = vrot.lane.b32.xlu1 %v4852_v36, %s4242_s29 }
0x205e   :  { %2577 = vrot.lane.b32.xlu1 %v4852_v36, %s4241_s3 }
0x2062   :  { %2575 = vrot.lane.b32.xlu1 %v4852_v36, %s4243_s30 }
0x20d2   :  { %v2356_v61 = vpop.xlane.xlu1 %2355 }
0x20d3   :  { %v2357_v37 = vsub.f32 %v2353_v34, %v2356_v61 }
0x20d5   :  { %v2358_v38 = vmul.f32 1.442695, %v2357_v37 }
0x20d6   :  { %v2367_v42 = vpop.permute.xlu1 %2366 }
0x20d7   :  { %4205 = vpow2.f32 %v2358_v38  ;;  %v2372_v22 = vsel %vm251_vm3, %v2367_v42, 0 }
0x20d8   :  { %3987 = vmatpush3.bf16.msra.mxu1 %v2372_v22 }
0x20d9   :  { %3998 = vmatprep.subr.bf16.mxu1 %v4239_v14 }
0x20da   :  { %v2465_v54 = vpop.permute.xlu1 %2464 }
0x20db   :  { %v2470_v24 = vsel %vm185_vm2, %v2465_v54, 0 }
0x20de   :  { %v2578_v55 = vpop.permute.xlu1 %2577 }
0x20df   :  { %v2583_v56 = vsel %vm185_vm2, %v2578_v55, 0 }
0x20e1   :  { %v4206_v50 = vpop.eup %4205 }
0x20e2   :  { %v2360_v43 = vsel %vm185_vm2, %v4206_v50, 0.0  ;;  %v2576_v58 = vpop.permute.xlu1 %2575 }
0x20e3   :  { %2361 = vadd.xlane.f32.xlu0 %v2360_v43 }
0x210d   :  { %v2295_v57 = vpop.f32.mrb[80].mxu1 }
0x210e   :  { %v4864_v45 = vadd.f32 %v2295_v57, %v4818_v59  ;;  %v3978_v46 = vpop.f32.mrb[81].mxu1  ;;  %v3535_v59 = vld [vmem:[%s5082_s6 + $0x1c] sm:$0xf] }
0x210f   :  { %v2298_v31 = vpop.f32.mrb[82].mxu1  ;;  %v4886_v60 = vsel %vm251_vm3, %v3535_v59, 0 }
0x2110   :  { %v3979_v47 = vpop.f32.mrb[83].mxu1  ;;  %3993 = vmatpush3.bf16.msra.mxu0 %v4886_v60 }
0x2111   :  { %4004 = vmatprep.subr.bf16.mxu0 %v4239_v14 }
0x2170   :  { %v2362_v49 = vpop.xlane.xlu0 %2361 }
0x2171   :  { %4207 = vrcp.f32 %v2362_v49 }
0x217b   :  { %v4208_v52 = vpop.eup %4207 }
0x217c   :  { %v2364_v53 = vmul.f32 %v4208_v52, %v4206_v50 }
0x217e   :  { %v2365_v26 = vpack.c.bf16 %v2364_v53, %v2364_v53 }
0x2180   :  { %3989 = vmatmul.mubr.msk.bf16.vlgmr.msra.gmra.mrb[84].mxu1 %vm185_vm2, %v2365_v26 }
0x2181   :  { %3999 = vmatpush3.bf16.xpose.msra.mxu1 %v2470_v24  ;;  %4000 = vmatprep.mubr.msk.bf16.mxu1 %vm4240_vm1, %v4239_v14 }
0x2182   :  { %4010 = vmatprep.subr.bf16.mxu1 %v4239_v14 }
0x2188   :  { %4001 = vmatmul.mubr.msk.bf16.vlgmr.msra.gmra.mrb[88].mxu1 %vm185_vm2, %v4852_v36 }
0x2189   :  { %4011 = vmatpush3.bf16.xpose.msra.mxu1 %v2583_v56  ;;  %4012 = vmatprep.mubr.msk.bf16.mxu1 %vm4240_vm1, %v4239_v14 }
0x218a   :  { %4022 = vmatprep.subr.bf16.mxu1 %v4239_v14 }
0x2190   :  { %4013 = vmatmul.mubr.msk.bf16.vlgmr.msra.gmra.mrb[92].mxu1 %vm185_vm2, %v2576_v58 }
0x2191   :  { %4023 = vmatpush3.bf16.msra.mxu1 %v4790_v40  ;;  %4024 = vmatprep.mubr.msk.bf16.mxu1 %vm4240_vm1, %v4239_v14 }
0x2192   :  { %4034 = vmatprep.subr.bf16.mxu1 %v4239_v14 }
0x2253   :  { %v2408_v62 = vpop.f32.mrb[84].mxu1 }
0x2254   :  { %v2414_v63 = vpack.c.bf16 %v2408_v62, %v2408_v62  ;;  %v3990_v0 = vpop.f32.mrb[85].mxu1 }
0x2255   :  { %v2411_v40 = vpop.f32.mrb[86].mxu1 }
0x2256   :  { %v3991_v1 = vpop.f32.mrb[87].mxu1  ;;  %3995 = vmatmul.mubr.msk.bf16.vlgmr.msra.gmra.mrb[68].mxu0 %vm185_vm2, %v2414_v63 }
0x2257   :  { %4006 = vmatprep.mubr.msk.bf16.mxu0 %vm4240_vm1, %v4239_v14 }
0x225b   :  { %v2506_v2 = vpop.f32.mrb[88].mxu1 }
0x225c   :  { %v2512_v10 = vmul.f32 0.35355338, %v2506_v2  ;;  %v4002_v3 = vpop.f32.mrb[89].mxu1 }
0x225d   :  { %v2509_v4 = vpop.f32.mrb[90].mxu1 }
0x225e   :  { %v4003_v5 = vpop.f32.mrb[91].mxu1  ;;  %v2513_v7 = vadd.f32 %v4896_v6, %v2512_v10 }
0x2260   :  { %v2514_v8 = vsel %vm185_vm2, %v2513_v7, -inf }
0x2261   :  { %2515 = vmax.xlane.f32.xlu0 %v2514_v8 }
0x2263   :  { %v2619_v9 = vpop.f32.mrb[92].mxu1 }
0x2264   :  { %v2625_v11 = vmul.f32 0.35355338, %v2619_v9  ;;  %v4014_v12 = vpop.f32.mrb[93].mxu1 }
0x2265   :  { %v2622_v13 = vpop.f32.mrb[94].mxu1 }
0x2266   :  { %v4015_v32 = vpop.f32.mrb[95].mxu1  ;;  %v2626_v15 = vadd.f32 %v4896_v6, %v2625_v11 }
0x2268   :  { %v2627_v16 = vsel %vm185_vm2, %v2626_v15, -inf }
0x2269   :  { %2628 = vmax.xlane.f32.xlu1 %v2627_v16 }
0x2277   :  { %2526 = vrot.lane.b32.xlu0 %v4852_v36, %s4244_s4 }
0x227a   :  { %2776 = vrot.lane.b32.xlu1 %v4852_v36, %s4245_s21 }
0x22ee   :  { %v2516_v17 = vpop.xlane.xlu0 %2515 }
0x22ef   :  { %v2517_v18 = vsub.f32 %v2513_v7, %v2516_v17 }
0x22f1   :  { %v2518_v19 = vmul.f32 1.442695, %v2517_v18 }
0x22f2   :  { %v2527_v23 = vpop.permute.xlu0 %2526 }
0x22f3   :  { %4209 = vpow2.f32 %v2518_v19  ;;  %v2532_v25 = vsel %vm251_vm3, %v2527_v23, 0 }
0x22f4   :  { %4005 = vmatpush3.bf16.msra.mxu0 %v2532_v25 }
0x22f5   :  { %4016 = vmatprep.subr.bf16.mxu0 %v4239_v14 }
0x22f6   :  { %v2629_v27 = vpop.xlane.xlu1 %2628 }
0x22f7   :  { %v2630_v28 = vsub.f32 %v2626_v15, %v2629_v27 }
0x22f9   :  { %v2631_v29 = vmul.f32 1.442695, %v2630_v28 }
0x22fa   :  { %v2777_v24 = vpop.permute.xlu1 %2776 }
0x22fb   :  { %4211 = vpow2.f32 %v2631_v29  ;;  %v2782_v59 = vsel %vm185_vm2, %v2777_v24, 0 }
0x22fd   :  { %v4210_v30 = vpop.eup %4209 }
0x22fe   :  { %v2520_v51 = vsel %vm185_vm2, %v4210_v30, 0.0 }
0x22ff   :  { %2521 = vadd.xlane.f32.xlu0 %v2520_v51 }
0x2305   :  { %v4212_v48 = vpop.eup %4211 }
0x2306   :  { %v2633_v33 = vsel %vm185_vm2, %v4212_v48, 0.0 }
0x2307   :  { %2634 = vadd.xlane.f32.xlu0 %v2633_v33 }
0x231d   :  { %2639 = vrot.lane.b32.xlu0 %v4852_v36, %s4247_s2 }
0x2321   :  { %2774 = vrot.lane.b32.xlu0 %v4852_v36, %s4246_s22 }
0x2329   :  { %v2455_v39 = vpop.f32.mrb[68].mxu0 }
0x232a   :  { %v4915_v34 = vadd.f32 %v2455_v39, %v4864_v45  ;;  %v3996_v35 = vpop.f32.mrb[69].mxu0 }
0x232b   :  { %v2458_v61 = vpop.f32.mrb[70].mxu0 }
0x232c   :  { %v3997_v37 = vpop.f32.mrb[71].mxu0 }
0x238c   :  { %v2522_v38 = vpop.xlane.xlu0 %2521 }
0x238d   :  { %4213 = vrcp.f32 %v2522_v38 }
0x2394   :  { %v2635_v42 = vpop.xlane.xlu0 %2634 }
0x2395   :  { %4215 = vrcp.f32 %v2635_v42 }
0x2397   :  { %v4214_v22 = vpop.eup %4213 }
0x2398   :  { %v2524_v50 = vmul.f32 %v4214_v22, %v4210_v30  ;;  %v2640_v43 = vpop.permute.xlu0 %2639 }
0x2399   :  { %v2645_v46 = vsel %vm251_vm3, %v2640_v43, 0 }
0x239a   :  { %v2525_v57 = vpack.c.bf16 %v2524_v50, %v2524_v50 }
0x239c   :  { %4007 = vmatmul.mubr.msk.bf16.vlgmr.msra.gmra.mrb[72].mxu0 %vm185_vm2, %v2525_v57  ;;  %v2775_v63 = vpop.permute.xlu0 %2774 }
0x239d   :  { %4017 = vmatpush3.bf16.msra.mxu0 %v2645_v46  ;;  %4018 = vmatprep.mubr.msk.bf16.mxu0 %vm4240_vm1, %v4239_v14 }
0x239e   :  { %4028 = vmatprep.subr.bf16.mxu0 %v4239_v14 }
0x239f   :  { %v4216_v45 = vpop.eup %4215 }
0x23a0   :  { %v2637_v31 = vmul.f32 %v4216_v45, %v4212_v48 }
0x23a2   :  { %v2638_v47 = vpack.c.bf16 %v2637_v31, %v2637_v31 }
0x23a4   :  { %4019 = vmatmul.mubr.msk.bf16.vlgmr.msra.gmra.mrb[76].mxu0 %vm185_vm2, %v2638_v47 }
0x23a5   :  { %4029 = vmatpush3.bf16.msra.mxu0 %v4798_v41  ;;  %4030 = vmatprep.mubr.msk.bf16.mxu0 %vm4240_vm1, %v4239_v14 }
0x23a6   :  { %4040 = vmatprep.subr.bf16.mxu0 %v4239_v14 }
0x246f   :  { %v2568_v49 = vpop.f32.mrb[72].mxu0 }
0x2470   :  { %v2574_v52 = vpack.c.bf16 %v2568_v49, %v2568_v49  ;;  %v4008_v53 = vpop.f32.mrb[73].mxu0 }
0x2471   :  { %v2571_v54 = vpop.f32.mrb[74].mxu0 }
0x2472   :  { %v4009_v26 = vpop.f32.mrb[75].mxu0  ;;  %4031 = vmatmul.mubr.msk.bf16.vlgmr.msra.gmra.mrb[80].mxu0 %vm185_vm2, %v2574_v52 }
0x2473   :  { %4042 = vmatprep.mubr.msk.bf16.mxu0 %vm4240_vm1, %v4239_v14 }
0x2477   :  { %v2681_v55 = vpop.f32.mrb[76].mxu0 }
0x2478   :  { %v2687_v56 = vpack.c.bf16 %v2681_v55, %v2681_v55  ;;  %v4020_v58 = vpop.f32.mrb[77].mxu0 }
0x2479   :  { %v2684_v41 = vpop.f32.mrb[78].mxu0 }
0x247a   :  { %v4021_v62 = vpop.f32.mrb[79].mxu0  ;;  %4025 = vmatmul.mubr.msk.bf16.vlgmr.msra.gmra.mrb[96].mxu1 %vm185_vm2, %v2687_v56 }
0x247b   :  { %4035 = vmatpush3.bf16.xpose.msra.mxu1 %v2782_v59  ;;  %4036 = vmatprep.mubr.msk.bf16.mxu1 %vm4240_vm1, %v4239_v14 }
0x247c   :  { %4046 = vmatprep.subr.bf16.mxu1 %v4239_v14 }
0x2482   :  { %4037 = vmatmul.mubr.msk.bf16.vlgmr.msra.gmra.mrb[100].mxu1 %vm185_vm2, %v2775_v63 }
0x2483   :  { %4047 = vmatpush3.bf16.msra.mxu1 %v4839_v21  ;;  %4048 = vmatprep.mubr.msk.bf16.mxu1 %vm4240_vm1, %v4239_v14 }
0x2484   :  { %4058 = vmatprep.subr.bf16.mxu1 %v4239_v14 }
0x2545   :  { %v2768_v0 = vpop.f32.mrb[80].mxu0 }
0x2546   :  { %v4032_v40 = vpop.f32.mrb[81].mxu0 }
0x2547   :  { %v2771_v1 = vpop.f32.mrb[82].mxu0 }
0x2548   :  { %v4033_v2 = vpop.f32.mrb[83].mxu0 }
0x254d   :  { %v2725_v10 = vpop.f32.mrb[96].mxu1 }
0x254e   :  { %v4940_v3 = vadd.f32 %v2768_v0, %v2725_v10  ;;  %v4026_v4 = vpop.f32.mrb[97].mxu1 }
0x254f   :  { %v2728_v5 = vpop.f32.mrb[98].mxu1 }
0x2550   :  { %v4027_v7 = vpop.f32.mrb[99].mxu1 }
0x2555   :  { %v2818_v8 = vpop.f32.mrb[100].mxu1 }
0x2556   :  { %v2824_v9 = vmul.f32 0.35355338, %v2818_v8  ;;  %v4038_v11 = vpop.f32.mrb[101].mxu1 }
0x2557   :  { %v2821_v12 = vpop.f32.mrb[102].mxu1 }
0x2558   :  { %v4039_v21 = vpop.f32.mrb[103].mxu1  ;;  %v2825_v13 = vadd.f32 %v4896_v6, %v2824_v9 }
0x255a   :  { %v2826_v32 = vsel %vm185_vm2, %v2825_v13, -inf }
0x255b   :  { %2827 = vmax.xlane.f32.xlu0 %v2826_v32 }
0x2571   :  { %2838 = vrot.lane.b32.xlu0 %v4852_v36, %s4250_s0 }
0x2575   :  { %2931 = vrot.lane.b32.xlu0 %v4852_v36, %s5110_s27 }
0x25e8   :  { %v2828_v15 = vpop.xlane.xlu0 %2827 }
0x25e9   :  { %v2829_v16 = vsub.f32 %v2825_v13, %v2828_v15 }
0x25eb   :  { %v2830_v17 = vmul.f32 1.442695, %v2829_v16 }
0x25ec   :  { %v2839_v18 = vpop.permute.xlu0 %2838 }
0x25ed   :  { %4217 = vpow2.f32 %v2830_v17  ;;  %v2844_v19 = vsel %vm251_vm3, %v2839_v18, 0 }
0x25ee   :  { %4041 = vmatpush3.bf16.msra.mxu0 %v2844_v19 }
0x25ef   :  { %4052 = vmatprep.subr.bf16.mxu0 %v4239_v14 }
0x25f0   :  { %v2932_v33 = vpop.permute.xlu0 %2931 }
0x25f7   :  { %v4218_v23 = vpop.eup %4217 }
0x25f8   :  { %v2832_v25 = vsel %vm185_vm2, %v4218_v23, 0.0 }
0x25f9   :  { %2833 = vadd.xlane.f32.xlu1 %v2832_v25 }
0x260a   :  { %2933 = vrot.lane.b32.xlu1 %v4852_v36, %s5109_s24 }
0x2686   :  { %v2834_v27 = vpop.xlane.xlu1 %2833 }
0x2687   :  { %4219 = vrcp.f32 %v2834_v27  ;;  %v4133_v27 = vld [vmem:[%s5084_s10 + $0x10] sm:$0xff]  }
0x268a   :  { %v2934_v30 = vpop.permute.xlu1 %2933 }
0x268b   :  { %v2939_v48 = vsel %vm185_vm2, %v2934_v30, 0 }
0x2691   :  { %v4220_v28 = vpop.eup %4219 }
0x2692   :  { %v2836_v29 = vmul.f32 %v4220_v28, %v4218_v23 }
0x2694   :  { %v2837_v51 = vpack.c.bf16 %v2836_v29, %v2836_v29 }
0x2696   :  { %4043 = vmatmul.mubr.msk.bf16.vlgmr.msra.gmra.mrb[84].mxu0 %vm185_vm2, %v2837_v51 }
0x2697   :  { %4053 = vmatpush3.bf16.xpose.msra.mxu0 %v2939_v48  ;;  %4054 = vmatprep.mubr.msk.bf16.mxu0 %vm4240_vm1, %v4239_v14 }
0x2698   :  { %4064 = vmatprep.subr.bf16.mxu0 %v4239_v14 }
0x269e   :  { %4055 = vmatmul.mubr.msk.bf16.vlgmr.msra.gmra.mrb[88].mxu0 %vm185_vm2, %v2932_v33 }
0x269f   :  { %4065 = vmatpush3.bf16.msra.mxu0 %v4886_v60  ;;  %4066 = vmatprep.mubr.msk.bf16.mxu0 %vm4240_vm1, %v4239_v14 }
0x26a0   :  { %4078 = vmatprep.subr.bf16.mxu0 %v4239_v14 }
0x2769   :  { %v2880_v39 = vpop.f32.mrb[84].mxu0 }
0x276a   :  { %v2886_v35 = vpack.c.bf16 %v2880_v39, %v2880_v39  ;;  %v4044_v61 = vpop.f32.mrb[85].mxu0 }
0x276b   :  { %v2883_v37 = vpop.f32.mrb[86].mxu0  ;;  %v3564_v61 = vld [vmem:[%s5085_s8 + $0x1] ss:$0 sm:$0xff] }
0x276c   :  { %v4045_v38 = vpop.f32.mrb[87].mxu0  ;;  %4049 = vmatmul.mubr.msk.bf16.vlgmr.msra.gmra.mrb[104].mxu1 %vm185_vm2, %v2886_v35 }
0x276d   :  { %4060 = vmatprep.mubr.msk.bf16.mxu1 %vm4240_vm1, %v4239_v14 }
0x2771   :  { %v2975_v42 = vpop.f32.mrb[88].mxu0 }
0x2772   :  { %v2981_v22 = vmul.f32 0.35355338, %v2975_v42  ;;  %v4056_v50 = vpop.f32.mrb[89].mxu0 }
0x2773   :  { %v2978_v43 = vpop.f32.mrb[90].mxu0 }
0x2774   :  { %v4057_v60 = vpop.f32.mrb[91].mxu0  ;;  %v2982_v57 = vadd.f32 %v4896_v6, %v2981_v22  ;;  %v3561_v6 = vld [vmem:[%s5083_s7 + $0x1] ss:$0 sm:$0xff] }
0x2775   :  { %v3096_v53 = vadd.f32 %v3561_v6, %v4915_v34  ;;  %v3565_v22 = vld [vmem:[%s5086_s9 + $0x1] ss:$0 sm:$0xff] }
0x2776   :  { %v2983_v46 = vsel %vm185_vm2, %v2982_v57, -inf }
0x2777   :  { %2984 = vmax.xlane.f32.xlu0 %v2983_v46  ;;  %v4135_v46 = vld [vmem:[%s5087_s12 + $0x40] sm:$0xff]  }
0x278d   :  { %2995 = vrot.lane.b32.xlu0 %v4852_v36, %s5111_s23  ;;  %v3098_v36 = vadd.f32 %v3096_v53, %v4725_v44  ;;  %v4142_v53 = vld [vmem:[%s5087_s12 + $0x78] sm:$0xff]  }
0x278f   :  { %v3104_v24 = vsel %vm64_vm0, %v3098_v36, 0.0 }
0x2804   :  { %v2985_v45 = vpop.xlane.xlu0 %2984 }
0x2805   :  { %v2986_v31 = vsub.f32 %v2982_v57, %v2985_v45  ;;  %v4136_v45 = vld [vmem:[%s5087_s12 + $0x48] sm:$0xff]  }
0x2807   :  { %v2987_v47 = vmul.f32 1.442695, %v2986_v31  ;;  %v4137_v31 = vld [vmem:[%s5087_s12 + $0x50] sm:$0xff]  }
0x2808   :  { %v2996_v49 = vpop.permute.xlu0 %2995 }
0x2809   :  { %4221 = vpow2.f32 %v2987_v47  ;;  %v3001_v52 = vsel %vm251_vm3, %v2996_v49, 0  ;;  %v4138_v47 = vld [vmem:[%s5087_s12 + $0x58] sm:$0xff]   ;;  %v4139_v49 = vld [vmem:[%s5087_s12 + $0x60] sm:$0xff]  }
0x280a   :  { %4059 = vmatpush3.bf16.msra.mxu1 %v3001_v52  ;;  %v4140_v52 = vld [vmem:[%s5087_s12 + $0x68] sm:$0xff]  }
0x280b   :  { %4070 = vmatprep.subr.bf16.mxu1 %v4239_v14 }
0x2813   :  { %v4222_v54 = vpop.eup %4221 }
0x2814   :  { %v2989_v26 = vsel %vm185_vm2, %v4222_v54, 0.0 }
0x2815   :  { %2990 = vadd.xlane.f32.xlu1 %v2989_v26 }
0x2819   :  { %3105 = vadd.xlane.f32.xlu1 %v3104_v24 }
0x283f   :  { %v2924_v55 = vpop.f32.mrb[104].mxu1 }
0x2840   :  { %v2930_v56 = vadd.f32 %v2924_v55, %v4940_v3  ;;  %v4050_v58 = vpop.f32.mrb[105].mxu1 }
0x2841   :  { %v2927_v41 = vpop.f32.mrb[106].mxu1 }
0x2842   :  { %v4051_v59 = vpop.f32.mrb[107].mxu1 }
0x28a2   :  { %v2991_v62 = vpop.xlane.xlu1 %2990 }
0x28a3   :  { %4223 = vrcp.f32 %v2991_v62 }
0x28a6   :  { %v3106_v3 = vpop.xlane.xlu1 %3105 }
0x28a7   :  { %v3110_v4 = vmul.f32 0.03125, %v3106_v3 }
0x28a9   :  { %v3112_v11 = vsub.f32 %v3098_v36, %v3110_v4 }
0x28ab   :  { %v3114_v15 = vmul.f32 %v3112_v11, %v3112_v11 }
0x28ad   :  { %v4224_v63 = vpop.eup %4223  ;;  %v3116_v16 = vsel %vm64_vm0, %v3114_v15, 0.0 }
0x28ae   :  { %v2993_v0 = vmul.f32 %v4224_v63, %v4222_v54  ;;  %v3571_v54 = vld [vmem:[%s5088_s11 + $0x1] ss:$0 sm:$0xff] }
0x28b0   :  { %v2994_v34 = vpack.c.bf16 %v2993_v0, %v2993_v0 }
0x28b2   :  { %4061 = vmatmul.mubr.msk.bf16.vlgmr.msra.gmra.mrb[108].mxu1 %vm185_vm2, %v2994_v34 }
0x28b3   :  { %4074 = vmatprep.mubr.msk.bf16.mxu1 %vm4240_vm1, %v4239_v14  ;;  %4071 = vmatpush3.bf16.msra.mxu1 %v4133_v27 }
0x28b4   :  { %4072 = vmatprep.subr.bf16.mxu1 %v4239_v14 }
0x2985   :  { %v3037_v44 = vpop.f32.mrb[108].mxu1 }
0x2986   :  { %v3043_v40 = vpack.c.bf16 %v3037_v44, %v3037_v44  ;;  %v4062_v1 = vpop.f32.mrb[109].mxu1 }
0x2987   :  { %v3040_v2 = vpop.f32.mrb[110].mxu1 }
0x2988   :  { %v4063_v10 = vpop.f32.mrb[111].mxu1  ;;  %4067 = vmatmul.mubr.msk.bf16.vlgmr.msra.gmra.mrb[92].mxu0 %vm185_vm2, %v3043_v40 }
0x2989   :  { %4094 = vmatprep.mubr.msk.bf16.mxu0 %vm4240_vm1, %v4239_v14  ;;  %4079 = vmatpush3.bf16.msra.mxu0 %v4135_v46 }
0x298a   :  { %4080 = vmatprep.subr.bf16.mxu0 %v4239_v14 }
0x298d   :  { %4081 = vmatpush3.bf16.msra.mxu0 %v4136_v45  ;;  %v3603_v45 = vld [vmem:[%s5090_s14 + $0x1] ss:$0 sm:$0xff] }
0x298e   :  { %4082 = vmatprep.subr.bf16.mxu0 %v4239_v14 }
0x2991   :  { %4083 = vmatpush3.bf16.msra.mxu0 %v4137_v31 }
0x2992   :  { %4084 = vmatprep.subr.bf16.mxu0 %v4239_v14 }
0x2995   :  { %4085 = vmatpush3.bf16.msra.mxu0 %v4138_v47 }
0x2996   :  { %4086 = vmatprep.subr.bf16.mxu0 %v4239_v14 }
0x2999   :  { %4087 = vmatpush3.bf16.msra.mxu0 %v4139_v49 }
0x299a   :  { %4088 = vmatprep.subr.bf16.mxu0 %v4239_v14 }
0x299d   :  { %4089 = vmatpush3.bf16.msra.mxu0 %v4140_v52 }
0x299e   :  { %4090 = vmatprep.subr.bf16.mxu0 %v4239_v14 }
0x2a5b   :  { %v3081_v5 = vpop.f32.mrb[92].mxu0 }
0x2a5c   :  { %v3087_v7 = vadd.f32 %v3081_v5, %v2930_v56  ;;  %v4068_v8 = vpop.f32.mrb[93].mxu0 }
0x2a5d   :  { %v3084_v9 = vpop.f32.mrb[94].mxu0 }
0x2a5e   :  { %v3097_v12 = vadd.f32 %v3561_v6, %v3087_v7  ;;  %v4069_v21 = vpop.f32.mrb[95].mxu0  ;;  %v4141_v6 = vld [vmem:[%s5087_s12 + $0x70] sm:$0xff]  }
0x2a5f   :  { %4091 = vmatpush3.bf16.msra.mxu0 %v4141_v6  ;;  %v3592_v21 = vld [vmem:[%s5089_s13 + $0x1] ss:$0 sm:$0xff] }
0x2a60   :  { %v3099_v13 = vadd.f32 %v3097_v12, %v4727_v20  ;;  %v4134_v20 = vld [vmem:[%s5084_s10 + $0x18] sm:$0xff]   ;;  %4092 = vmatprep.subr.bf16.mxu0 %v4239_v14 }
0x2a61   :  { %4073 = vmatpush3.bf16.msra.mxu1 %v4134_v20 }
0x2a62   :  { %v3107_v32 = vsel %vm64_vm0, %v3099_v13, 0.0  ;;  %4098 = vmatprep.subr.bf16.mxu1 %v4239_v14 }
0x2a63   :  { %3108 = vadd.xlane.f32.xlu1 %v3107_v32  ;;  %4093 = vmatpush3.bf16.msra.mxu0 %v4142_v53 }
0x2a67   :  { %3117 = vadd.xlane.f32.xlu1 %v3116_v16 }
0x2af0   :  { %v3109_v17 = vpop.xlane.xlu1 %3108 }
0x2af1   :  { %v3111_v18 = vmul.f32 0.03125, %v3109_v17 }
0x2af3   :  { %v3113_v19 = vsub.f32 %v3099_v13, %v3111_v18 }
0x2af4   :  { %v3118_v28 = vpop.xlane.xlu1 %3117 }
0x2af5   :  { %v3115_v23 = vmul.f32 %v3113_v19, %v3113_v19  ;;  %v3122_v29 = vmul.f32 0.03125, %v3118_v28 }
0x2af7   :  { %v3119_v25 = vsel %vm64_vm0, %v3115_v23, 0.0  ;;  %v3124_v30 = vadd.f32 1e-12, %v3122_v29 }
0x2af8   :  { %3120 = vadd.xlane.f32.xlu0 %v3119_v25 }
0x2af9   :  { %4225 = vrsqrt.f32 %v3124_v30 }
0x2b03   :  { %v4226_v39 = vpop.eup %4225 }
0x2b04   :  { %v3128_v35 = vmul.f32 %v4226_v39, %v3112_v11 }
0x2b06   :  { %v3136_v38 = vmul.f32 %v3564_v61, %v3128_v35 }
0x2b08   :  { %v5004_v43 = vadd.f32 %v3565_v22, %v3136_v38  ;;  %v4144_v38 = vld [vmem:[%s5092_s16 + $0x8] sm:$0xff]  }
0x2b85   :  { %v3121_v51 = vpop.xlane.xlu0 %3120 }
0x2b86   :  { %v3123_v48 = vmul.f32 0.03125, %v3121_v51 }
0x2b88   :  { %v3125_v33 = vadd.f32 1e-12, %v3123_v48 }
0x2b8a   :  { %4227 = vrsqrt.f32 %v3125_v33 }
0x2b94   :  { %v4228_v37 = vpop.eup %4227 }
0x2b95   :  { %v3129_v42 = vmul.f32 %v4228_v37, %v3113_v19  ;;  %v4143_v37 = vld [vmem:[%s5092_s16] sm:$0xff]  }
0x2b97   :  { %v3137_v50 = vmul.f32 %v3564_v61, %v3129_v42 }
0x2b99   :  { %v5006_v60 = vadd.f32 %v3565_v22, %v3137_v50 }
0x2b9b   :  { %v3146_v57 = vpack.c.bf16 %v5006_v60, %v5004_v43 }
0x2b9d   :  { %4075 = vmatmul.mubr.msk.bf16.vlgmr.msra.gmra.mrb[112].mxu1 %vm64_vm0, %v3146_v57 }
0x2b9e   :  { %4102 = vmatprep.mubr.msk.bf16.mxu1 %vm4240_vm1, %v4239_v14  ;;  %4099 = vmatpush3.bf16.msra.mxu1 %v4143_v37 }
0x2b9f   :  { %4100 = vmatprep.subr.bf16.mxu1 %v4239_v14  ;;  %v3604_v14 = vld [vmem:[%s5091_s15 + $0x1] ss:$0 sm:$0xff] }
0x2ba2   :  { %4101 = vmatpush3.bf16.msra.mxu1 %v4144_v38 }
0x2c70   :  { %v3209_v26 = vpop.f32.mrb[112].mxu1 }
0x2c71   :  { %v3210_v36 = vadd.f32 %v3571_v54, %v3209_v26  ;;  %v4076_v24 = vpop.f32.mrb[113].mxu1 }
0x2c72   :  { %v3212_v55 = vpop.f32.mrb[114].mxu1 }
0x2c73   :  { %v3216_v56 = vmul.f32 %v3210_v36, %v3210_v36  ;;  %v3213_v58 = vadd.f32 %v3571_v54, %v3212_v55  ;;  %v4077_v41 = vpop.f32.mrb[115].mxu1  ;;  %v3605_v55 = vld [vmem:[%s5093_s17] ss:$0 sm:$0xff] }
0x2c75   :  { %v3218_v59 = vmul.f32 %v3216_v56, %v3210_v36  ;;  %v3217_v62 = vmul.f32 %v3213_v58, %v3213_v58 }
0x2c77   :  { %v3220_v63 = vmul.f32 0.044715, %v3218_v59  ;;  %v3219_v0 = vmul.f32 %v3217_v62, %v3213_v58 }
0x2c79   :  { %v3222_v34 = vadd.f32 %v3220_v63, %v3210_v36  ;;  %v3221_v44 = vmul.f32 0.044715, %v3219_v0 }
0x2c7b   :  { %v3224_v40 = vmul.f32 0.7978846, %v3222_v34  ;;  %v3223_v1 = vadd.f32 %v3221_v44, %v3213_v58 }
0x2c7d   :  { %4229 = vtanh.f32 %v3224_v40  ;;  %v3225_v2 = vmul.f32 0.7978846, %v3223_v1 }
0x2c7f   :  { %4231 = vtanh.f32 %v3225_v2 }
0x2c87   :  { %v4230_v10 = vpop.eup %4229 }
0x2c88   :  { %v3228_v3 = vadd.f32 1.0, %v4230_v10 }
0x2c89   :  { %v4232_v4 = vpop.eup %4231 }
0x2c8a   :  { %v3230_v5 = vmul.f32 0.5, %v3228_v3  ;;  %v3229_v7 = vadd.f32 1.0, %v4232_v4 }
0x2c8c   :  { %v3231_v8 = vmul.f32 0.5, %v3229_v7  ;;  %v3232_v9 = vmul.f32 %v3230_v5, %v3210_v36 }
0x2c8e   :  { %v3233_v11 = vmul.f32 %v3231_v8, %v3213_v58 }
0x2c90   :  { %v3234_v12 = vpack.c.bf16 %v3233_v11, %v3232_v9 }
0x2c92   :  { %4095 = vmatmul.mubr.bf16.vlgmr.msra.gmra.mrb[96].mxu0 %v3234_v12 }
0x2d65   :  { %v3342_v13 = vpop.f32.mrb[96].mxu0 }
0x2d66   :  { %v4096_v32 = vpop.f32.mrb[97].mxu0  ;;  %v3343_v16 = vadd.f32 %v3592_v21, %v3342_v13 }
0x2d67   :  { %v3345_v15 = vpop.f32.mrb[98].mxu0 }
0x2d68   :  { %v3346_v17 = vadd.f32 %v3592_v21, %v3345_v15  ;;  %v4097_v18 = vpop.f32.mrb[99].mxu0  ;;  %v3349_v23 = vadd.f32 %v3343_v16, %v5004_v43 }
0x2d6a   :  { %v3350_v19 = vadd.f32 %v3346_v17, %v5006_v60  ;;  %v3355_v27 = vsel %vm64_vm0, %v3349_v23, 0.0 }
0x2d6c   :  { %v3358_v25 = vsel %vm64_vm0, %v3350_v19, 0.0 }
0x2d6d   :  { %3359 = vadd.xlane.f32.xlu1 %v3358_v25 }
0x2d71   :  { %3356 = vadd.xlane.f32.xlu1 %v3355_v27 }
0x2dfa   :  { %v3360_v20 = vpop.xlane.xlu1 %3359 }
0x2dfb   :  { %v3362_v28 = vmul.f32 0.03125, %v3360_v20 }
0x2dfd   :  { %v3364_v29 = vsub.f32 %v3350_v19, %v3362_v28 }
0x2dfe   :  { %v3357_v30 = vpop.xlane.xlu1 %3356 }
0x2dff   :  { %v3361_v51 = vmul.f32 0.03125, %v3357_v30  ;;  %v3366_v48 = vmul.f32 %v3364_v29, %v3364_v29 }
0x2e01   :  { %v3363_v33 = vsub.f32 %v3349_v23, %v3361_v51  ;;  %v3370_v39 = vsel %vm64_vm0, %v3366_v48, 0.0 }
0x2e02   :  { %3371 = vadd.xlane.f32.xlu1 %v3370_v39 }
0x2e03   :  { %v3365_v35 = vmul.f32 %v3363_v33, %v3363_v33 }
0x2e05   :  { %v3367_v61 = vsel %vm64_vm0, %v3365_v35, 0.0 }
0x2e06   :  { %3368 = vadd.xlane.f32.xlu1 %v3367_v61 }
0x2e8f   :  { %v3372_v42 = vpop.xlane.xlu1 %3371 }
0x2e90   :  { %v3374_v22 = vmul.f32 0.03125, %v3372_v42 }
0x2e92   :  { %v3376_v50 = vadd.f32 1e-12, %v3374_v22 }
0x2e93   :  { %v3369_v43 = vpop.xlane.xlu1 %3368 }
0x2e94   :  { %4233 = vrsqrt.f32 %v3376_v50  ;;  %v3373_v60 = vmul.f32 0.03125, %v3369_v43 }
0x2e96   :  { %v3375_v57 = vadd.f32 1e-12, %v3373_v60 }
0x2e98   :  { %4235 = vrsqrt.f32 %v3375_v57 }
0x2e9e   :  { %v4234_v46 = vpop.eup %4233 }
0x2e9f   :  { %v3380_v31 = vmul.f32 %v4234_v46, %v3364_v29 }
0x2ea1   :  { %v3388_v47 = vmul.f32 %v3603_v45, %v3380_v31 }
0x2ea2   :  { %v4236_v49 = vpop.eup %4235 }
0x2ea3   :  { %v3396_v52 = vadd.f32 %v3604_v14, %v3388_v47  ;;  %v3379_v6 = vmul.f32 %v4236_v49, %v3363_v33 }
0x2ea5   :  { %v3387_v53 = vmul.f32 %v3603_v45, %v3379_v6  ;;  %v3398_v26 = vrot.slane %v3396_v52, 7 }
0x2ea7   :  { %v3395_v54 = vadd.f32 %v3604_v14, %v3387_v53 }
0x2ea9   :  { %v3401_v36 = vsel %vm3400_vm4, %v3395_v54, %v3398_v26 }
0x2eaa   :  { %v3402_v24 = vpack.c.bf16 %v3401_v36, %v3401_v36 }
0x2eac   :  { %4103 = vmatmul.mubr.msk.bf16.vlgmr.msra.gmra.mrb[116].mxu1 %vm64_vm0, %v3402_v24 }
0x2f7f   :  { %v3463_v56 = vpop.f32.mrb[116].mxu1 }
0x2f80   :  { %v3464_v58 = vadd.f32 %v3605_v55, %v3463_v56  ;;  %v4104_v41 = vpop.f32.mrb[117].mxu1 }
0x2f81   :  { %v3466_v59 = vpop.f32.mrb[118].mxu1 }
0x2f82   :  { %3469 = vst [vmem:[%s5094_s18] sm:$0x3] %v3464_v58  ;;  %v4105_v62 = vpop.f32.mrb[119].mxu1 }

</bundles_post_ra>
